<compile_context>
chip_gen: v7x
topology: tpu7x:2x2x1
jax: 0.10.0
libtpu: 0.0.40
codegen_flags: <defaults>
</compile_context>

<pallas_src>
import jax
import jax.numpy as jnp
from jax.experimental import pallas as pl
from jax.experimental.pallas import tpu as pltpu


# ----------------------------------------------------------------------------
# Pallas kernel: encoder + (folded) survival MLP hot path for one batch tile.
# ----------------------------------------------------------------------------
def deepsurv_aae_kernel(
    x_ref,                          # (TB, X_dim)  f32 (cast to bf16 in-kernel)
    w1_ref, b1_ref,                 # Q_net.lin1 : X_dim -> 256 (250 padded)
    w2_ref, b2_ref,                 # Q_net.lin2 : 256   -> 256 (200 padded)
    w3_ref, b3_ref,                 # Q_net.lin3 : 256   -> 256 (200 padded)
    wf_ref, bf_ref,                 # folded lin3gauss @ model-hidden : 256 -> H_pad
    wo_ref,                         # (1, H_pad) bf16   output weights as a lane row
    sc_ref,                         # (2,) f32 in SMEM: [output bias, lam_0]
    out_ref,                        # (1, TB)    f32    lane-dense output row
):
    f32 = jnp.float32
    bf16 = jnp.bfloat16

    def linear_relu(h, w_ref, b_ref):
        y = jnp.dot(h.astype(bf16), w_ref[...], preferred_element_type=f32)
        return jnp.maximum(y + b_ref[...], 0.0)

    # ---- encoder (Q_net); dropout = identity in eval mode ----
    h = linear_relu(x_ref[...], w1_ref, b1_ref)
    h = linear_relu(h, w2_ref, b2_ref)
    h = linear_relu(h, w3_ref, b3_ref)

    # ---- folded (lin3gauss o survival-hidden) layer + LeakyReLU(0.01) ----
    h = jnp.dot(h.astype(bf16), wf_ref[...], preferred_element_type=f32) + bf_ref[...]
    h = jnp.where(h > 0.0, h, 0.01 * h)

    # ---- output layer (H -> 1): single 1-row MXU pass against h^T so logits
    #      land lane-major as (1, TB) -> unmasked lane-dense writeback, no XLU
    #      transpose.  exp runs on the EUP; lam_0 applied multiplicatively so
    #      any base hazard (including <= 0) matches the reference exactly. ----
    logit = jax.lax.dot_general(
        wo_ref[...], h.astype(bf16),
        dimension_numbers=(((1,), (1,)), ((), ())),
        preferred_element_type=f32)                          # (1, TB)
    out_ref[...] = (sc_ref[1] * jnp.exp(logit + sc_ref[0])).astype(out_ref.dtype)


# ----------------------------------------------------------------------------
# Trace-time parameter preparation: fold, pad to lane multiples, cast to bf16.
# ----------------------------------------------------------------------------
def _round_up(n, m):
    return ((n + m - 1) // m) * m


def _pad2d(a, rows, cols):
    r, c = a.shape
    return jnp.pad(a, ((0, rows - r), (0, cols - c)))


def prepare_params(params, lam_0):
    f32, bf16 = jnp.float32, jnp.bfloat16

    d_in = params["w1"].shape[0]
    n1 = _round_up(params["w1"].shape[1], 128)     # 250 -> 256
    n2 = _round_up(params["w2"].shape[1], 128)     # 200 -> 256
    n3 = _round_up(params["w3"].shape[1], 128)     # 200 -> 256
    hp = _round_up(params["wh"].shape[1], 128)     # 32  -> 128

    # Fold gaussian head into survival hidden layer (both linear, no act
    # in between):  z @ wh + bh  with  z = h @ wg + bg
    #            == h @ (wg @ wh) + (bg @ wh + bh)
    wf = params["wg"] @ params["wh"]               # (200, H)
    bf = params["bg"] @ params["wh"] + params["bh"]

    vmem_weights = (
        _pad2d(params["w1"], d_in, n1).astype(bf16),
        _pad2d(params["b1"], 1, n1).astype(f32),
        _pad2d(params["w2"], n1, n2).astype(bf16),
        _pad2d(params["b2"], 1, n2).astype(f32),
        _pad2d(params["w3"], n2, n3).astype(bf16),
        _pad2d(params["b3"], 1, n3).astype(f32),
        _pad2d(wf, n3, hp).astype(bf16),
        _pad2d(bf, 1, hp).astype(f32),
        _pad2d(params["wo"].T, 1, hp).astype(bf16),   # output weights as a row
    )
    # SMEM scalars: [output bias, lam_0]. lam_0 applied multiplicatively in the
    # kernel so zero/negative base hazards still match the reference.
    scalars = jnp.stack(
        [params["bo"].reshape(()).astype(f32),
         jnp.asarray(lam_0, dtype=f32)])              # (2,) f32
    return vmem_weights, scalars


# ----------------------------------------------------------------------------
# Wrapper: batch-tiled grid, resident weights, lane-dense output, pallas_call.
# ----------------------------------------------------------------------------
def deepsurv_aae_forward(x, params, lam_0, *, tb=512):
    # TODO(synk): only the single-hidden-layer, output_dim == 1 survival head
    #             (the standard rate-model config) is implemented here.
    assert params["wo"].shape[1] == 1, "kernel implements scalar-rate output"

    b, d_in = x.shape
    vmem_weights, scalars = prepare_params(params, lam_0)

    # Batch-tile selection (per perf review):
    #  * default 512 (sweep 512-1024 for production batches): per-step MXU work
    #    at tb=128 is tiny, so fewer/fatter steps amortize the ~0.35us fixed
    #    per-step overhead.
    #  * multiples of 256 fill the 256-wide MXU M dimension on v6e/v7x.
    #  * keep >=2 grid steps when b allows it so the "parallel" batch axis can
    #    shard across both v7x TensorCores.
    tb = min(tb, b)
    if tb < b:
        tb = min(_round_up(tb, 256), b)
    num_tiles = pl.cdiv(b, tb)

    def resident(a):   # full-array block, constant index -> stays VMEM-resident
        return pl.BlockSpec(a.shape, lambda i: (0, 0))

    in_specs = (
        [pl.BlockSpec((tb, d_in), lambda i: (i, 0))]            # x: batch-tiled, f32
        + [resident(a) for a in vmem_weights]                   # resident weights
        + [pl.BlockSpec(memory_space=pltpu.MemorySpace.SMEM)]   # [bias, lam_0] scalars
    )
    # Lane-dense output: one (1, tb) row per grid step into a (1, num_tiles*tb)
    # slab; reshaped back to (b, 1) below.
    out_specs = pl.BlockSpec((1, tb), lambda i: (0, i))

    out = pl.pallas_call(
        deepsurv_aae_kernel,
        out_shape=jax.ShapeDtypeStruct((1, num_tiles * tb), jnp.float32),
        grid=(num_tiles,),
        in_specs=in_specs,
        out_specs=out_specs,
        compiler_params=pltpu.CompilerParams(
            dimension_semantics=("parallel",)),
    )(x, *vmem_weights, scalars)

    # Columns past b (ragged last tile) hold exp() of undefined padded rows;
    # they are harmless and sliced off here.
    return out.reshape(-1, 1)[:b]


# ----------------------------------------------------------------------------
# Deterministic parameter init (PyTorch nn.Linear-style uniform bounds).
# Weights stored as (in, out); biases as (1, out).
# ----------------------------------------------------------------------------
def init_linear(key, in_dim, out_dim):
    kw, kb = jax.random.split(key)
    bound = 1.0 / (in_dim ** 0.5)
    w = jax.random.uniform(kw, (in_dim, out_dim), jnp.float32, -bound, bound)
    bias = jax.random.uniform(kb, (1, out_dim), jnp.float32, -bound, bound)
    return w, bias


def init_params(key, input_dim, z_dim, hidden, output_dim):
    ks = jax.random.split(key, 6)
    w1, b1 = init_linear(ks[0], input_dim, 250)      # Q_net.lin1
    w2, b2 = init_linear(ks[1], 250, 200)            # Q_net.lin2 (N = 200)
    w3, b3 = init_linear(ks[2], 200, 200)            # Q_net.lin3
    wg, bg = init_linear(ks[3], 200, z_dim)          # Q_net.lin3gauss
    wh, bh = init_linear(ks[4], z_dim, hidden)       # model hidden layer
    wo, bo = init_linear(ks[5], hidden, output_dim)  # model output layer
    return dict(w1=w1, b1=b1, w2=w2, b2=b2, w3=w3, b3=b3,
                wg=wg, bg=bg, wh=wh, bh=bh, wo=wo, bo=bo)


# ----------------------------------------------------------------------------
# Pure-JAX f32 reference of the ORIGINAL (unfolded, unpadded) forward.
# ----------------------------------------------------------------------------
def reference_forward(x, p, lam_0):
    h = jnp.maximum(x @ p["w1"] + p["b1"], 0.0)
    h = jnp.maximum(h @ p["w2"] + p["b2"], 0.0)
    h = jnp.maximum(h @ p["w3"] + p["b3"], 0.0)
    z = h @ p["wg"] + p["bg"]
    h = z @ p["wh"] + p["bh"]
    h = jnp.where(h > 0, h, 0.01 * h)
    logit = h @ p["wo"] + p["bo"]
    return lam_0 * jnp.exp(logit)


if __name__ == "__main__":
    # Shapes consistent with the module's forward.  B chosen so the kernel
    # exercises a 2-step batch grid (512 + ragged 256) with tb=512.
    B, INPUT_DIM, Z_DIM, HIDDEN, OUTPUT_DIM = 768, 16, 8, 32, 1
    LAM_0 = 0.5   # non-trivial base hazard

    key = jax.random.PRNGKey(0)
    kx, kp = jax.random.split(key)

    x = jax.random.normal(kx, (B, INPUT_DIM), dtype=jnp.float32)
    params = init_params(kp, INPUT_DIM, Z_DIM, HIDDEN, OUTPUT_DIM)

    out = deepsurv_aae_forward(x, params, LAM_0, tb=512)
    out = jax.block_until_ready(out)

    ref = reference_forward(x, params, LAM_0)
    assert out.shape == (B, OUTPUT_DIM)
    # bf16 weights/activations in the kernel vs f32 reference -> loose tol.
    max_rel = float(jnp.max(jnp.abs(out - ref) / (jnp.abs(ref) + 1e-6)))
    assert jnp.allclose(out, ref, rtol=5e-2, atol=5e-3), (max_rel,)

    print("KERNEL_OK")
</pallas_src>

<mosaic_0001>
module attributes {stable_mosaic.version = 11 : i64} {
  func.func @deepsurv_aae_kernel(%arg0: i32, %arg1: memref<512x16xf32, #tpu.memory_space<vmem>>, %arg2: memref<16x256xbf16, #tpu.memory_space<vmem>>, %arg3: memref<1x256xf32, #tpu.memory_space<vmem>>, %arg4: memref<256x256xbf16, #tpu.memory_space<vmem>>, %arg5: memref<1x256xf32, #tpu.memory_space<vmem>>, %arg6: memref<256x256xbf16, #tpu.memory_space<vmem>>, %arg7: memref<1x256xf32, #tpu.memory_space<vmem>>, %arg8: memref<256x128xbf16, #tpu.memory_space<vmem>>, %arg9: memref<1x128xf32, #tpu.memory_space<vmem>>, %arg10: memref<1x128xbf16, #tpu.memory_space<vmem>>, %arg11: memref<2xf32, #tpu.memory_space<smem>>, %arg12: memref<1x512xf32, #tpu.memory_space<vmem>>) attributes {dimension_semantics = [#tpu.dimension_semantics<parallel>], iteration_bounds = array<i64: 2>, scalar_prefetch = 0 : i64, scratch_operands = 0 : i64, tpu.core_type = #tpu.core_type<tc>, window_params = [{transform_indices = @transform_0, window_bounds = array<i64: 512, 16>}, {pipeline_mode = #tpu.pipeline_mode<synchronous>, transform_indices = @transform_1, window_bounds = array<i64: 16, 256>}, {pipeline_mode = #tpu.pipeline_mode<synchronous>, transform_indices = @transform_2, window_bounds = array<i64: 1, 256>}, {pipeline_mode = #tpu.pipeline_mode<synchronous>, transform_indices = @transform_3, window_bounds = array<i64: 256, 256>}, {pipeline_mode = #tpu.pipeline_mode<synchronous>, transform_indices = @transform_4, window_bounds = array<i64: 1, 256>}, {pipeline_mode = #tpu.pipeline_mode<synchronous>, transform_indices = @transform_5, window_bounds = array<i64: 256, 256>}, {pipeline_mode = #tpu.pipeline_mode<synchronous>, transform_indices = @transform_6, window_bounds = array<i64: 1, 256>}, {pipeline_mode = #tpu.pipeline_mode<synchronous>, transform_indices = @transform_7, window_bounds = array<i64: 256, 128>}, {pipeline_mode = #tpu.pipeline_mode<synchronous>, transform_indices = @transform_8, window_bounds = array<i64: 1, 128>}, {pipeline_mode = #tpu.pipeline_mode<synchronous>, transform_indices = @transform_9, window_bounds = array<i64: 1, 128>}, {transform_indices = @transform_10, window_bounds = array<i64: 2>}, {transform_indices = @transform_11, window_bounds = array<i64: 1, 512>}]} {
    %c0 = arith.constant 0 : index
    %c0_0 = arith.constant 0 : index
    %0 = vector.load %arg1[%c0, %c0_0] : memref<512x16xf32, #tpu.memory_space<vmem>>, vector<512x16xf32>
    %1 = arith.truncf %0 : vector<512x16xf32> to vector<512x16xbf16>
    %c0_1 = arith.constant 0 : index
    %c0_2 = arith.constant 0 : index
    %2 = vector.load %arg2[%c0_1, %c0_2] : memref<16x256xbf16, #tpu.memory_space<vmem>>, vector<16x256xbf16>
    %cst = arith.constant dense<0.000000e+00> : vector<512x256xf32>
    %3 = tpu.matmul %1, %2, %cst {dimension_numbers = #tpu.dot_dimension_numbers<[1], [0], [0], [1], [0, 0, 1, 1], [], []>} : vector<512x16xbf16>, vector<16x256xbf16>, vector<512x256xf32> -> vector<512x256xf32>
    %c0_3 = arith.constant 0 : index
    %c0_4 = arith.constant 0 : index
    %4 = vector.load %arg3[%c0_3, %c0_4] : memref<1x256xf32, #tpu.memory_space<vmem>>, vector<1x256xf32>
    %5 = vector.broadcast %4 : vector<1x256xf32> to vector<512x256xf32>
    %6 = arith.addf %3, %5 : vector<512x256xf32>
    %cst_5 = arith.constant 0.000000e+00 : f32
    %7 = vector.broadcast %cst_5 : f32 to vector<512x256xf32>
    %8 = arith.maximumf %6, %7 : vector<512x256xf32>
    %9 = arith.truncf %8 : vector<512x256xf32> to vector<512x256xbf16>
    %c0_6 = arith.constant 0 : index
    %c0_7 = arith.constant 0 : index
    %10 = vector.load %arg4[%c0_6, %c0_7] : memref<256x256xbf16, #tpu.memory_space<vmem>>, vector<256x256xbf16>
    %cst_8 = arith.constant dense<0.000000e+00> : vector<512x256xf32>
    %11 = tpu.matmul %9, %10, %cst_8 {dimension_numbers = #tpu.dot_dimension_numbers<[1], [0], [0], [1], [0, 0, 1, 1], [], []>} : vector<512x256xbf16>, vector<256x256xbf16>, vector<512x256xf32> -> vector<512x256xf32>
    %c0_9 = arith.constant 0 : index
    %c0_10 = arith.constant 0 : index
    %12 = vector.load %arg5[%c0_9, %c0_10] : memref<1x256xf32, #tpu.memory_space<vmem>>, vector<1x256xf32>
    %13 = vector.broadcast %12 : vector<1x256xf32> to vector<512x256xf32>
    %14 = arith.addf %11, %13 : vector<512x256xf32>
    %cst_11 = arith.constant 0.000000e+00 : f32
    %15 = vector.broadcast %cst_11 : f32 to vector<512x256xf32>
    %16 = arith.maximumf %14, %15 : vector<512x256xf32>
    %17 = arith.truncf %16 : vector<512x256xf32> to vector<512x256xbf16>
    %c0_12 = arith.constant 0 : index
    %c0_13 = arith.constant 0 : index
    %18 = vector.load %arg6[%c0_12, %c0_13] : memref<256x256xbf16, #tpu.memory_space<vmem>>, vector<256x256xbf16>
    %cst_14 = arith.constant dense<0.000000e+00> : vector<512x256xf32>
    %19 = tpu.matmul %17, %18, %cst_14 {dimension_numbers = #tpu.dot_dimension_numbers<[1], [0], [0], [1], [0, 0, 1, 1], [], []>} : vector<512x256xbf16>, vector<256x256xbf16>, vector<512x256xf32> -> vector<512x256xf32>
    %c0_15 = arith.constant 0 : index
    %c0_16 = arith.constant 0 : index
    %20 = vector.load %arg7[%c0_15, %c0_16] : memref<1x256xf32, #tpu.memory_space<vmem>>, vector<1x256xf32>
    %21 = vector.broadcast %20 : vector<1x256xf32> to vector<512x256xf32>
    %22 = arith.addf %19, %21 : vector<512x256xf32>
    %cst_17 = arith.constant 0.000000e+00 : f32
    %23 = vector.broadcast %cst_17 : f32 to vector<512x256xf32>
    %24 = arith.maximumf %22, %23 : vector<512x256xf32>
    %25 = arith.truncf %24 : vector<512x256xf32> to vector<512x256xbf16>
    %c0_18 = arith.constant 0 : index
    %c0_19 = arith.constant 0 : index
    %26 = vector.load %arg8[%c0_18, %c0_19] : memref<256x128xbf16, #tpu.memory_space<vmem>>, vector<256x128xbf16>
    %cst_20 = arith.constant dense<0.000000e+00> : vector<512x128xf32>
    %27 = tpu.matmul %25, %26, %cst_20 {dimension_numbers = #tpu.dot_dimension_numbers<[1], [0], [0], [1], [0, 0, 1, 1], [], []>} : vector<512x256xbf16>, vector<256x128xbf16>, vector<512x128xf32> -> vector<512x128xf32>
    %c0_21 = arith.constant 0 : index
    %c0_22 = arith.constant 0 : index
    %28 = vector.load %arg9[%c0_21, %c0_22] : memref<1x128xf32, #tpu.memory_space<vmem>>, vector<1x128xf32>
    %29 = vector.broadcast %28 : vector<1x128xf32> to vector<512x128xf32>
    %30 = arith.addf %27, %29 : vector<512x128xf32>
    %cst_23 = arith.constant 0.000000e+00 : f32
    %31 = vector.broadcast %cst_23 : f32 to vector<512x128xf32>
    %32 = arith.cmpf ogt, %30, %31 : vector<512x128xf32>
    %cst_24 = arith.constant 0.00999999977 : f32
    %33 = vector.broadcast %cst_24 : f32 to vector<512x128xf32>
    %34 = arith.mulf %33, %30 : vector<512x128xf32>
    %35 = arith.select %32, %30, %34 : vector<512x128xi1>, vector<512x128xf32>
    %c0_25 = arith.constant 0 : index
    %c0_26 = arith.constant 0 : index
    %36 = vector.load %arg10[%c0_25, %c0_26] : memref<1x128xbf16, #tpu.memory_space<vmem>>, vector<1x128xbf16>
    %37 = arith.truncf %35 : vector<512x128xf32> to vector<512x128xbf16>
    %cst_27 = arith.constant dense<0.000000e+00> : vector<1x512xf32>
    %38 = tpu.matmul %36, %37, %cst_27 {dimension_numbers = #tpu.dot_dimension_numbers<[1], [1], [0], [0], [0, 0, 1, 0], [], []>} : vector<1x128xbf16>, vector<512x128xbf16>, vector<1x512xf32> -> vector<1x512xf32>
    %c1 = arith.constant 1 : index
    %39 = memref.load %arg11[%c1] : memref<2xf32, #tpu.memory_space<smem>>
    %c0_28 = arith.constant 0 : index
    %40 = memref.load %arg11[%c0_28] : memref<2xf32, #tpu.memory_space<smem>>
    %41 = vector.broadcast %40 : f32 to vector<1x512xf32>
    %42 = arith.addf %38, %41 : vector<1x512xf32>
    %43 = math.exp %42 : vector<1x512xf32>
    %44 = vector.broadcast %39 : f32 to vector<1x512xf32>
    %45 = arith.mulf %44, %43 : vector<1x512xf32>
    %c0_29 = arith.constant 0 : index
    %c0_30 = arith.constant 0 : index
    %46 = vector.load %arg12[%c0_29, %c0_30] : memref<1x512xf32, #tpu.memory_space<vmem>>, vector<1x512xf32>
    tpu.vector_store %arg12[%c0_29, %c0_30], %45 {strides = array<i32>} : memref<1x512xf32, #tpu.memory_space<vmem>>, vector<1x512xf32>,
    return
  }
  func.func @transform_0(%arg0: i32) -> (i32, i32) {
    %c0_i32 = arith.constant 0 : i32
    %c0_i32_0 = arith.constant 0 : i32
    return %arg0, %c0_i32 : i32, i32
  }
  func.func @transform_1(%arg0: i32) -> (i32, i32) {
    %c0_i32 = arith.constant 0 : i32
    %c0_i32_0 = arith.constant 0 : i32
    %c0_i32_1 = arith.constant 0 : i32
    return %c0_i32, %c0_i32_0 : i32, i32
  }
  func.func @transform_2(%arg0: i32) -> (i32, i32) {
    %c0_i32 = arith.constant 0 : i32
    %c0_i32_0 = arith.constant 0 : i32
    %c0_i32_1 = arith.constant 0 : i32
    return %c0_i32, %c0_i32_0 : i32, i32
  }
  func.func @transform_3(%arg0: i32) -> (i32, i32) {
    %c0_i32 = arith.constant 0 : i32
    %c0_i32_0 = arith.constant 0 : i32
    %c0_i32_1 = arith.constant 0 : i32
    return %c0_i32, %c0_i32_0 : i32, i32
  }
  func.func @transform_4(%arg0: i32) -> (i32, i32) {
    %c0_i32 = arith.constant 0 : i32
    %c0_i32_0 = arith.constant 0 : i32
    %c0_i32_1 = arith.constant 0 : i32
    return %c0_i32, %c0_i32_0 : i32, i32
  }
  func.func @transform_5(%arg0: i32) -> (i32, i32) {
    %c0_i32 = arith.constant 0 : i32
    %c0_i32_0 = arith.constant 0 : i32
    %c0_i32_1 = arith.constant 0 : i32
    return %c0_i32, %c0_i32_0 : i32, i32
  }
  func.func @transform_6(%arg0: i32) -> (i32, i32) {
    %c0_i32 = arith.constant 0 : i32
    %c0_i32_0 = arith.constant 0 : i32
    %c0_i32_1 = arith.constant 0 : i32
    return %c0_i32, %c0_i32_0 : i32, i32
  }
  func.func @transform_7(%arg0: i32) -> (i32, i32) {
    %c0_i32 = arith.constant 0 : i32
    %c0_i32_0 = arith.constant 0 : i32
    %c0_i32_1 = arith.constant 0 : i32
    return %c0_i32, %c0_i32_0 : i32, i32
  }
  func.func @transform_8(%arg0: i32) -> (i32, i32) {
    %c0_i32 = arith.constant 0 : i32
    %c0_i32_0 = arith.constant 0 : i32
    %c0_i32_1 = arith.constant 0 : i32
    return %c0_i32, %c0_i32_0 : i32, i32
  }
  func.func @transform_9(%arg0: i32) -> (i32, i32) {
    %c0_i32 = arith.constant 0 : i32
    %c0_i32_0 = arith.constant 0 : i32
    %c0_i32_1 = arith.constant 0 : i32
    return %c0_i32, %c0_i32_0 : i32, i32
  }
  func.func @transform_10(%arg0: i32) -> i32 {
    %c0_i32 = arith.constant 0 : i32
    %c0_i32_0 = arith.constant 0 : i32
    return %c0_i32 : i32
  }
  func.func @transform_11(%arg0: i32) -> (i32, i32) {
    %c0_i32 = arith.constant 0 : i32
    %c0_i32_0 = arith.constant 0 : i32
    return %c0_i32, %arg0 : i32, i32
  }
}

</mosaic_0001>

<bundles_post_ra>
// kernel: tpu_custom_call.1
= control target key start
LH: loop header
LB: loop body
LE: loop exit
PB: predicated region body
PF: predicated region fallthrough
CT: control target
= control target key end

     0   :  { %s5199_s0 = inlined_call_operand.vmem [shape: f32[768,16], index: 0, kind: input, shape index: {}]   ;;  %s5200_s1 = inlined_call_operand.vmem [shape: bf16[16,256], index: 1, kind: input, shape index: {}]   ;;  %s5201_s2 = inlined_call_operand.vmem [shape: f32[1,256], index: 2, kind: input, shape index: {}]   ;;  %s5202_s3 = inlined_call_operand.vmem [shape: bf16[256,256], index: 3, kind: input, shape index: {}]   ;;  %s5203_s4 = inlined_call_operand.vmem [shape: f32[1,256], index: 4, kind: input, shape index: {}]   ;;  %s5204_s5 = inlined_call_operand.vmem [shape: bf16[256,256], index: 5, kind: input, shape index: {}]   ;;  %s5205_s6 = inlined_call_operand.vmem [shape: f32[1,256], index: 6, kind: input, shape index: {}]   ;;  %s5206_s7 = inlined_call_operand.vmem [shape: bf16[256,128], index: 7, kind: input, shape index: {}]   ;;  %s5207_s8 = inlined_call_operand.vmem [shape: f32[1,128], index: 8, kind: input, shape index: {}]   ;;  %s5208_s9 = inlined_call_operand.vmem [shape: bf16[1,128], index: 9, kind: input, shape index: {}]   ;;  %s5209_s10 = inlined_call_operand.vmem [shape: f32[2], index: 10, kind: input, shape index: {}]   ;;  %s5210_s11 = inlined_call_operand.hbm [shape: f32[1,1024], index: 11, kind: output, shape index: {}]  }
   0x1   :  { %5211 = sst [smem:[#allocation8_spill]] %s5199_s0 }
   0x2   :  { %16 = vsyncpa [#allocation4], 0 }
   0x3   :  { %17 = vsyncpa [#allocation3], 0 }
   0x4   :  { %19 = vsyncpa [#allocation3 + $0x1], 0  ;;  %s4040_s17 = smov 0   ;;  %s4042_s18 = smov 0  }
   0x5   :  { %s4044_s19 = smov 0   ;;  %s4046_s20 = smov 0  }
   0x6 LB: > { %s4061_s21 = sadd.s32 4294967295, %s3974_s20   ;;  %s3550_s22 = sadd.s32 4294967294, %s3974_s20   ;;  %s3974_s20 = sphi %s4046_s20, %s5219_s20   ;;  %s3970_s19 = sphi %s4044_s19, %s5218_s19   ;;  %s3966_s18 = sphi %s4042_s18, %s5217_s18   ;;  %s3962_s17 = sphi %s4040_s17, %s5216_s17  }
   0x7   : > { %s4065_s23 = sadd.s32 1, %s3974_s20   ;;  %s268_s24 = sadd.s32 1, %s3970_s19 }
   0x8   : > { %s265_s25 = ssub.s32 %s3974_s20, %s4065_s23  ;;  %p278_p0 = scmp.ne.s32.totalorder %s3970_s19, %s3966_s18 }
   0x9   : > { %p266_p1 = scmp.eq.s32.totalorder %s265_s25, 0  ;;  %p279_p2 = scmp.eq.s32.totalorder %s4061_s21, 1 }
   0xa   : > { %p284_p3 = scmp.ne.s32.totalorder %s3966_s18, %s3962_s17  ;;  %p285_p4 = scmp.eq.s32.totalorder %s3550_s22, 1 }
   0xb   : > { %s4076_s26 = scalar_select %p266_p1, %s3970_s19, %s268_s24  }
   0xc   : > { %p4078_p5 = por %p279_p2, %p278_p0  ;;  %p4082_p6 = por %p285_p4, %p284_p3 }
   0xd   : > { %p3551_p7 = scmp.ge.s32.totalorder %s3974_s20, 1  ;;  %p292_p8 = scmp.lt.s32.totalorder %s3974_s20, 3 }
   0xe   : > { %p3731_p9 = scmp.eq.s32.totalorder %s4061_s21, 0  ;;  %s332_s13 = sshll.u32 %s5209_s10, 4  ;;  %s333_s13 = int_to_ptr.vmem [resolvable:$true] %s332_s13 }
   0xf   : > { %p4089_p10 = pnand %p3551_p7, %p292_p8  ;;  %s3893_s14 = scalar_lea.vmem %s333_s13, 16 }
  0x10   : > { %p3894_p13 = scmp.ne.s32.totalorder %s333_s13, %s3893_s14  ;;  %p3901_p3 = scmp.lt.s32.totalorder %s333_s13, %s333_s13 }
  0x11   : > { %p3723_p11 = pneg %p4089_p10  ;;  %p3902_p4 = scmp.lt.s32.totalorder %s3893_s14, %s3893_s14 }
  0x13   : > { %p3724_p12 = pnand %p3731_p9, %p3723_p11  ;;  %p3903_p7 = por %p3902_p4, %p3901_p3 }
  0x15   : > { %p3895_p0 = pneg %p3724_p12 }
  0x17   : > { %p3896_p1 = pnand %p3895_p0, %p3894_p13 }
  0x19   : > { %p3897_p2 = pneg %p3896_p1 }
  0x1b   : > { %p3904_p8 = pnand %p3903_p7, %p3897_p2 }
  0x1d   : > { %3907 = shalt.err (!%p3904_p8)
}
  0x1e   : > { %s3976_s15 = smov [#allocation2]   ;;  %362 = sbr.rel (%p4089_p10) target bundleno = 1446 (0x5a6), region = 64 }
  0x1f   : > { %3726 = dma.vmem_to_smem (!%p3724_p12), %s333_s13, 16, %s3976_s15, [#allocation4]  }
  0x25   : > { %3953 = dma.done.wait (%p3731_p9), [#allocation4], 16  }
  0x26   : > { %3955 = vsyncadd (%p3731_p9), [#allocation4], 4294967280 }
  0x27   : > { %368 = sfence }
  0x28   : > { %v3769_v0 = vld [vmem:[%s5200_s1 + $0x4] ss:$8 sps:$4 sm:$0xff]   ;;  %s4110_s24 = sshll.u32 %s4061_s21, 6  ;;  %v3771_v1 = vld [vmem:[%s5200_s1] ss:$8 sps:$4 sm:$0xff]   ;;  %v3977_v2 = vmov 0  }
  0x29   : > { %672 = vmatprep.mubr.bf16.mxu0 %v3977_v2  ;;  %p412_p10 = scmp.lt.s32.totalorder %s4110_s24, 95  ;;  %640 = vmatprep.subr.bf16.mxu0 %v3769_v0  ;;  %s5215_s0 = sld [smem:[#allocation8_spill]]  ;;  %vm543_vm0 = vcmask 130048   ;;  %v3772_v15 = vld [vmem:[%s5202_s3 + $0x4] ss:$8 sps:$4 sm:$0xff]  }
  0x2a   : > { %641 = vmatpush1.bf16.msra.mxu0 %v3771_v1  ;;  %v3774_v18 = vld [vmem:[%s5202_s3] ss:$8 sps:$4 sm:$0xff]   ;;  %1389 = vmatprep.subr.bf16.mxu1 %v3772_v15  ;;  %v3775_v20 = vld [vmem:[%s5202_s3 + $0x14] ss:$8 sps:$4 sm:$0xff]   ;;  %v3777_v21 = vld [vmem:[%s5202_s3 + $0x10] ss:$8 sps:$4 sm:$0xff]  }
  0x2b   : > { %s413_s29 = scalar_select %p412_p10, %s4110_s24, 95  ;;  %1390 = vmatpush1.bf16.msra.mxu1 %v3774_v18  ;;  %v3778_v22 = vld [vmem:[%s5202_s3 + $0x24] ss:$8 sps:$4 sm:$0xff]   ;;  %v3780_v25 = vld [vmem:[%s5202_s3 + $0x20] ss:$8 sps:$4 sm:$0xff]  }
  0x2c   : > { %1391 = vmatprep.subr.bf16.mxu1 %v3775_v20  ;;  %v3781_v27 = vld [vmem:[%s5202_s3 + $0x34] ss:$8 sps:$4 sm:$0xff]   ;;  %v3783_v28 = vld [vmem:[%s5202_s3 + $0x30] ss:$8 sps:$4 sm:$0xff]   ;;  %v3784_v29 = vld [vmem:[%s5202_s3 + $0x44] ss:$8 sps:$4 sm:$0xff]  }
  0x2d   : > { %s3558_s12 = sshll.u32 %s413_s29, 3  ;;  %v3786_v32 = vld [vmem:[%s5202_s3 + $0x40] ss:$8 sps:$4 sm:$0xff]   ;;  %v3787_v34 = vld [vmem:[%s5202_s3 + $0x54] ss:$8 sps:$4 sm:$0xff]   ;;  %s3333_s14 = sld [smem:[#allocation2]] }
  0x2e   : > { %v3789_v35 = vld [vmem:[%s5202_s3 + $0x50] ss:$8 sps:$4 sm:$0xff]   ;;  %v3790_v36 = vld [vmem:[%s5202_s3 + $0x64] ss:$8 sps:$4 sm:$0xff]   ;;  %v3792_v39 = vld [vmem:[%s5202_s3 + $0x60] ss:$8 sps:$4 sm:$0xff]  }
  0x2f   : > { %s4121_s15 = scalar_lea.vmem %s5215_s0, %s3558_s12  ;;  %1392 = vmatpush1.bf16.msra.mxu1 %v3777_v21  ;;  %v3793_v41 = vld [vmem:[%s5202_s3 + $0x74] ss:$8 sps:$4 sm:$0xff]   ;;  %v3795_v42 = vld [vmem:[%s5202_s3 + $0x70] ss:$8 sps:$4 sm:$0xff]   ;;  %v3796_v43 = vld [vmem:[%s5202_s3 + $0x84] ss:$8 sps:$4 sm:$0xff]   ;;  %s5157_s12 = scalar_lea.hbm %s5210_s11, %s4110_s24 }
  0x30   : > { %v423_v3 = vld [vmem:[%s4121_s15] sm:$0xff]  ;;  %v424_v4 = vld [vmem:[%s4121_s15 + $0x8] sm:$0xff]  ;;  %v425_v6 = vld [vmem:[%s4121_s15 + $0x10] sm:$0xff]  ;;  %1393 = vmatprep.subr.bf16.mxu1 %v3778_v22  ;;  %s3674_s21 = sld [smem:[#allocation2 + $0x1]]  ;;  %s404_s16 = sand.u32 1, %s3966_s18  }
  0x31   : > { %v487_v5 = vpack.c.bf16 %v424_v4, %v423_v3  ;;  %v426_v7 = vld [vmem:[%s4121_s15 + $0x18] sm:$0xff]  ;;  %v427_v9 = vld [vmem:[%s4121_s15 + $0x20] sm:$0xff]  ;;  %v428_v10 = vld [vmem:[%s4121_s15 + $0x28] sm:$0xff]  ;;  %s3556_s22 = sshll.u32 %s404_s16, 2  ;;  %s3465_s13 = scalar_lea.sflag [#allocation3], %s404_s16 }
  0x32   : > { %v488_v8 = vpack.c.bf16 %v426_v7, %v425_v6  ;;  %v489_v11 = vpack.c.bf16 %v428_v10, %v427_v9  ;;  %v429_v12 = vld [vmem:[%s4121_s15 + $0x30] sm:$0xff]  ;;  %v430_v13 = vld [vmem:[%s4121_s15 + $0x38] sm:$0xff]  ;;  %v431_v16 = vld [vmem:[%s4121_s15 + $0x40] sm:$0xff] }
  0x33   : > { %3561 = vmatmul.mubr.msk.bf16.vlgmr.msra.gmra.mrb[0].mxu0 %vm543_vm0, %v487_v5  ;;  %v490_v14 = vpack.c.bf16 %v430_v13, %v429_v12  ;;  %v432_v17 = vld [vmem:[%s4121_s15 + $0x48] sm:$0xff]  ;;  %v433_v23 = vld [vmem:[%s4121_s15 + $0x50] sm:$0xff]  ;;  %v434_v24 = vld [vmem:[%s4121_s15 + $0x58] sm:$0xff]  ;;  %1394 = vmatpush1.bf16.msra.mxu1 %v3780_v25 }
  0x34   : > { %682 = vmatprep.mubr.bf16.mxu0 %v3977_v2  ;;  %v491_v19 = vpack.c.bf16 %v432_v17, %v431_v16  ;;  %v492_v26 = vpack.c.bf16 %v434_v24, %v433_v23  ;;  %v435_v30 = vld [vmem:[%s4121_s15 + $0x60] sm:$0xff]  ;;  %v436_v31 = vld [vmem:[%s4121_s15 + $0x68] sm:$0xff]  ;;  %1395 = vmatprep.subr.bf16.mxu1 %v3781_v27  ;;  %v437_v37 = vld [vmem:[%s4121_s15 + $0x70] sm:$0xff] }
  0x35   : > { %v493_v33 = vpack.c.bf16 %v436_v31, %v435_v30  ;;  %v438_v38 = vld [vmem:[%s4121_s15 + $0x78] sm:$0xff]  ;;  %v439_v44 = vld [vmem:[%s4121_s15 + $0x80] sm:$0xff]  ;;  %v440_v45 = vld [vmem:[%s4121_s15 + $0x88] sm:$0xff] }
  0x36   : > { %v494_v40 = vpack.c.bf16 %v438_v38, %v437_v37  ;;  %v3798_v46 = vld [vmem:[%s5202_s3 + $0x80] ss:$8 sps:$4 sm:$0xff]   ;;  %v495_v47 = vpack.c.bf16 %v440_v45, %v439_v44  ;;  %v3799_v48 = vld [vmem:[%s5202_s3 + $0x94] ss:$8 sps:$4 sm:$0xff]   ;;  %v3801_v49 = vld [vmem:[%s5202_s3 + $0x90] ss:$8 sps:$4 sm:$0xff]  }
  0x37   : > { %1396 = vmatpush1.bf16.msra.mxu1 %v3783_v28  ;;  %v3802_v50 = vld [vmem:[%s5202_s3 + $0xa4] ss:$8 sps:$4 sm:$0xff]   ;;  %v441_v51 = vld [vmem:[%s4121_s15 + $0x90] sm:$0xff]  ;;  %v442_v52 = vld [vmem:[%s4121_s15 + $0x98] sm:$0xff] }
  0x38   : > { %1397 = vmatprep.subr.bf16.mxu1 %v3784_v29  ;;  %v3804_v53 = vld [vmem:[%s5202_s3 + $0xa0] ss:$8 sps:$4 sm:$0xff]   ;;  %v496_v54 = vpack.c.bf16 %v442_v52, %v441_v51  ;;  %v3805_v55 = vld [vmem:[%s5202_s3 + $0xb4] ss:$8 sps:$4 sm:$0xff]   ;;  %v3807_v56 = vld [vmem:[%s5202_s3 + $0xb0] ss:$8 sps:$4 sm:$0xff]  }
  0x39   : > { %v3808_v57 = vld [vmem:[%s5202_s3 + $0xc4] ss:$8 sps:$4 sm:$0xff]   ;;  %v3810_v60 = vld [vmem:[%s5202_s3 + $0xc0] ss:$8 sps:$4 sm:$0xff]   ;;  %v3811_v62 = vld [vmem:[%s5202_s3 + $0xd4] ss:$8 sps:$4 sm:$0xff]  }
  0x3a   : > { %v443_v58 = vld [vmem:[%s4121_s15 + $0xa0] sm:$0xff]  ;;  %v444_v59 = vld [vmem:[%s4121_s15 + $0xa8] sm:$0xff]  ;;  %v445_v63 = vld [vmem:[%s4121_s15 + $0xb0] sm:$0xff] }
  0x3b   : > { %3562 = vmatmul.mubr.msk.bf16.gmra.mrb[4].mxu0 %vm543_vm0, %v488_v8  ;;  %1398 = vmatpush1.bf16.msra.mxu1 %v3786_v32  ;;  %v497_v61 = vpack.c.bf16 %v444_v59, %v443_v58  ;;  %v446_v0 = vld [vmem:[%s4121_s15 + $0xb8] sm:$0xff]  ;;  %v3814_v4 = vld [vmem:[%s5202_s3 + $0xe4] ss:$8 sps:$4 sm:$0xff]   ;;  %v3816_v5 = vld [vmem:[%s5202_s3 + $0xe0] ss:$8 sps:$4 sm:$0xff]  }
  0x3c   : > { %692 = vmatprep.mubr.bf16.mxu0 %v3977_v2  ;;  %1399 = vmatprep.subr.bf16.mxu1 %v3787_v34  ;;  %v3813_v1 = vld [vmem:[%s5202_s3 + $0xd0] ss:$8 sps:$4 sm:$0xff]   ;;  %v498_v3 = vpack.c.bf16 %v446_v0, %v445_v63  ;;  %v3817_v6 = vld [vmem:[%s5202_s3 + $0xf4] ss:$8 sps:$4 sm:$0xff]   ;;  %v447_v7 = vld [vmem:[%s4121_s15 + $0xc0] sm:$0xff] }
  0x3d   : > { %v448_v8 = vld [vmem:[%s4121_s15 + $0xc8] sm:$0xff]  ;;  %v3819_v9 = vld [vmem:[%s5202_s3 + $0xf0] ss:$8 sps:$4 sm:$0xff]   ;;  %v455_v20 = vld [vmem:[%s4121_s15 + $0x100] sm:$0xff] }
  0x3e   : > { %v499_v10 = vpack.c.bf16 %v448_v8, %v447_v7  ;;  %v450_v12 = vld [vmem:[%s4121_s15 + $0xd8] sm:$0xff]  ;;  %v452_v15 = vld [vmem:[%s4121_s15 + $0xe8] sm:$0xff]  ;;  %v453_v17 = vld [vmem:[%s4121_s15 + $0xf0] sm:$0xff] }
  0x3f   : > { %1400 = vmatpush1.bf16.msra.mxu1 %v3789_v35  ;;  %v454_v18 = vld [vmem:[%s4121_s15 + $0xf8] sm:$0xff]  ;;  %v456_v21 = vld [vmem:[%s4121_s15 + $0x108] sm:$0xff]  ;;  %v457_v23 = vld [vmem:[%s4121_s15 + $0x110] sm:$0xff] }
  0x40   : > { %1401 = vmatprep.subr.bf16.mxu1 %v3790_v36  ;;  %v503_v22 = vpack.c.bf16 %v456_v21, %v455_v20  ;;  %v458_v24 = vld [vmem:[%s4121_s15 + $0x118] sm:$0xff]  ;;  %v460_v27 = vld [vmem:[%s4121_s15 + $0x128] sm:$0xff]  ;;  %v461_v29 = vld [vmem:[%s4121_s15 + $0x130] sm:$0xff] }
  0x41   : > { %v504_v25 = vpack.c.bf16 %v458_v24, %v457_v23  ;;  %v462_v30 = vld [vmem:[%s4121_s15 + $0x138] sm:$0xff]  ;;  %v463_v32 = vld [vmem:[%s4121_s15 + $0x140] sm:$0xff]  ;;  %v465_v35 = vld [vmem:[%s4121_s15 + $0x150] sm:$0xff] }
  0x42   : > { %v506_v31 = vpack.c.bf16 %v462_v30, %v461_v29  ;;  %v466_v36 = vld [vmem:[%s4121_s15 + $0x158] sm:$0xff]  ;;  %v467_v38 = vld [vmem:[%s4121_s15 + $0x160] sm:$0xff]  ;;  %v472_v45 = vld [vmem:[%s4121_s15 + $0x188] sm:$0xff] }
  0x43   : > { %3563 = vmatmul.mubr.msk.bf16.gmra.mrb[8].mxu0 %vm543_vm0, %v489_v11  ;;  %1402 = vmatpush1.bf16.msra.mxu1 %v3792_v39  ;;  %v449_v11 = vld [vmem:[%s4121_s15 + $0xd0] sm:$0xff]  ;;  %v508_v37 = vpack.c.bf16 %v466_v36, %v465_v35  ;;  %v468_v39 = vld [vmem:[%s4121_s15 + $0x168] sm:$0xff]  ;;  %v471_v44 = vld [vmem:[%s4121_s15 + $0x180] sm:$0xff] }
  0x44   : > { %702 = vmatprep.mubr.bf16.mxu0 %v3977_v2  ;;  %1403 = vmatprep.subr.bf16.mxu1 %v3793_v41  ;;  %v500_v13 = vpack.c.bf16 %v450_v12, %v449_v11  ;;  %v469_v41 = vld [vmem:[%s4121_s15 + $0x170] sm:$0xff]  ;;  %v475_v52 = vld [vmem:[%s4121_s15 + $0x1a0] sm:$0xff]  ;;  %v482_v30 = vld [vmem:[%s4121_s15 + $0x1d8] sm:$0xff] }
  0x45   : > { %v477_v59 = vld [vmem:[%s4121_s15 + $0x1b0] sm:$0xff]  ;;  %v479_v12 = vld [vmem:[%s4121_s15 + $0x1c0] sm:$0xff] }
  0x46   : > { %v481_v29 = vld [vmem:[%s4121_s15 + $0x1d0] sm:$0xff] }
  0x47   : > { %1404 = vmatpush1.bf16.msra.mxu1 %v3795_v42  ;;  %v470_v42 = vld [vmem:[%s4121_s15 + $0x178] sm:$0xff]  ;;  %v516_v36 = vpack.c.bf16 %v482_v30, %v481_v29 }
  0x48   : > { %1405 = vmatprep.subr.bf16.mxu1 %v3796_v43  ;;  %v510_v43 = vpack.c.bf16 %v470_v42, %v469_v41 }
  0x4b   : > { %3564 = vmatmul.mubr.msk.bf16.gmra.mrb[12].mxu0 %vm543_vm0, %v490_v14  ;;  %1406 = vmatpush1.bf16.msra.mxu1 %v3798_v46  ;;  %v451_v14 = vld [vmem:[%s4121_s15 + $0xe0] sm:$0xff]  ;;  %v511_v46 = vpack.c.bf16 %v472_v45, %v471_v44 }
  0x4c   : > { %712 = vmatprep.mubr.bf16.mxu0 %v3977_v2  ;;  %1407 = vmatprep.subr.bf16.mxu1 %v3799_v48  ;;  %v501_v16 = vpack.c.bf16 %v452_v15, %v451_v14  ;;  %v474_v48 = vld [vmem:[%s4121_s15 + $0x198] sm:$0xff] }
  0x4f   : > { %1408 = vmatpush1.bf16.msra.mxu1 %v3801_v49 }
  0x50   : > { %1409 = vmatprep.subr.bf16.mxu1 %v3802_v50  ;;  %v523_v50 = vlaneseq }
  0x52   : > { %v4324_v51 = vshrl.u32 %v523_v50, 7 }
  0x53   : > { %3565 = vmatmul.mubr.msk.bf16.gmra.mrb[16].mxu0 %vm543_vm0, %v491_v19  ;;  %1410 = vmatpush1.bf16.msra.mxu1 %v3804_v53  ;;  %v502_v19 = vpack.c.bf16 %v454_v18, %v453_v17  ;;  %v476_v53 = vld [vmem:[%s4121_s15 + $0x1a8] sm:$0xff] }
  0x54   : > { %722 = vmatprep.mubr.bf16.mxu0 %v3977_v2  ;;  %1411 = vmatprep.subr.bf16.mxu1 %v3805_v55  ;;  %v4330_v55 = vsub.s32 0, %v4324_v51 }
  0x57   : > { %1412 = vmatpush1.bf16.msra.mxu1 %v3807_v56  ;;  %v521_v56 = vld [vmem:[%s5201_s2] sm:$0x3] }
  0x58   : > { %1413 = vmatprep.subr.bf16.mxu1 %v3808_v57  ;;  %v4336_v57 = vsub.s32 1, %v4324_v51  ;;  %v4340_v58 = vrot.slane %v521_v56, %v4330_v55 }
  0x5b   : > { %3566 = vmatmul.mubr.msk.bf16.gmra.mrb[20].mxu0 %vm543_vm0, %v492_v26  ;;  %1414 = vmatpush1.bf16.msra.mxu1 %v3810_v60  ;;  %v459_v26 = vld [vmem:[%s4121_s15 + $0x120] sm:$0xff]  ;;  %v478_v60 = vld [vmem:[%s4121_s15 + $0x1b8] sm:$0xff] }
  0x5c   : > { %732 = vmatprep.mubr.bf16.mxu0 %v3977_v2  ;;  %1415 = vmatprep.subr.bf16.mxu1 %v3811_v62  ;;  %v505_v28 = vpack.c.bf16 %v460_v27, %v459_v26 }
  0x5f   : > { %1416 = vmatpush1.bf16.msra.mxu1 %v3813_v1  ;;  %v514_v1 = vpack.c.bf16 %v478_v60, %v477_v59 }
  0x60   : > { %1417 = vmatprep.subr.bf16.mxu1 %v3814_v4 }
  0x63   : > { %3567 = vmatmul.mubr.msk.bf16.gmra.mrb[24].mxu0 %vm543_vm0, %v493_v33  ;;  %1418 = vmatpush1.bf16.msra.mxu1 %v3816_v5  ;;  %v464_v33 = vld [vmem:[%s4121_s15 + $0x148] sm:$0xff] }
  0x64   : > { %742 = vmatprep.mubr.bf16.mxu0 %v3977_v2  ;;  %1419 = vmatprep.subr.bf16.mxu1 %v3817_v6  ;;  %v507_v34 = vpack.c.bf16 %v464_v33, %v463_v32 }
  0x67   : > { %1420 = vmatpush1.bf16.msra.mxu1 %v3819_v9 }
  0x68   : > { %2818 = vmatprep.subr.bf16.mxu1 %v3977_v2 }
  0x6b   : > { %3568 = vmatmul.mubr.msk.bf16.gmra.mrb[28].mxu0 %vm543_vm0, %v494_v40  ;;  %v509_v40 = vpack.c.bf16 %v468_v39, %v467_v38 }
  0x6c   : > { %752 = vmatprep.mubr.bf16.mxu0 %v3977_v2 }
  0x73   : > { %3569 = vmatmul.mubr.msk.bf16.gmra.mrb[32].mxu0 %vm543_vm0, %v495_v47  ;;  %v473_v47 = vld [vmem:[%s4121_s15 + $0x190] sm:$0xff] }
  0x74   : > { %762 = vmatprep.mubr.bf16.mxu0 %v3977_v2  ;;  %v512_v49 = vpack.c.bf16 %v474_v48, %v473_v47  ;;  %v484_v47 = vld [vmem:[%s4121_s15 + $0x1e8] sm:$0xff] }
  0x7b   : > { %3570 = vmatmul.mubr.msk.bf16.gmra.mrb[36].mxu0 %vm543_vm0, %v496_v54  ;;  %v513_v54 = vpack.c.bf16 %v476_v53, %v475_v52 }
  0x7c   : > { %772 = vmatprep.mubr.bf16.mxu0 %v3977_v2 }
  0x83   : > { %3571 = vmatmul.mubr.msk.bf16.gmra.mrb[40].mxu0 %vm543_vm0, %v497_v61  ;;  %v4346_v61 = vrot.slane %v521_v56, %v4336_v57 }
  0x84   : > { %782 = vmatprep.mubr.bf16.mxu0 %v3977_v2 }
  0x8b   : > { %3572 = vmatmul.mubr.msk.bf16.gmra.mrb[44].mxu0 %vm543_vm0, %v498_v3 }
  0x8c   : > { %792 = vmatprep.mubr.bf16.mxu0 %v3977_v2 }
  0x93   : > { %3573 = vmatmul.mubr.msk.bf16.gmra.mrb[48].mxu0 %vm543_vm0, %v499_v10 }
  0x94   : > { %802 = vmatprep.mubr.bf16.mxu0 %v3977_v2 }
  0x9b   : > { %3574 = vmatmul.mubr.msk.bf16.gmra.mrb[52].mxu0 %vm543_vm0, %v500_v13  ;;  %v480_v13 = vld [vmem:[%s4121_s15 + $0x1c8] sm:$0xff] }
  0x9c   : > { %812 = vmatprep.mubr.bf16.mxu0 %v3977_v2 }
  0xa3   : > { %3575 = vmatmul.mubr.msk.bf16.gmra.mrb[56].mxu0 %vm543_vm0, %v501_v16 }
  0xa4   : > { %822 = vmatprep.mubr.bf16.mxu0 %v3977_v2 }
  0xab   : > { %3576 = vmatmul.mubr.msk.bf16.gmra.mrb[60].mxu0 %vm543_vm0, %v502_v19  ;;  %v515_v19 = vpack.c.bf16 %v480_v13, %v479_v12 }
  0xac   : > { %832 = vmatprep.mubr.bf16.mxu0 %v3977_v2 }
  0xb3   : > { %3577 = vmatmul.mubr.msk.bf16.gmra.mrb[64].mxu0 %vm543_vm0, %v503_v22 }
  0xb4   : > { %842 = vmatprep.mubr.bf16.mxu0 %v3977_v2 }
  0xbb   : > { %3578 = vmatmul.mubr.msk.bf16.gmra.mrb[68].mxu0 %vm543_vm0, %v504_v25 }
  0xbc   : > { %852 = vmatprep.mubr.bf16.mxu0 %v3977_v2 }
  0xc3   : > { %3579 = vmatmul.mubr.msk.bf16.gmra.mrb[72].mxu0 %vm543_vm0, %v505_v28 }
  0xc4   : > { %862 = vmatprep.mubr.bf16.mxu0 %v3977_v2 }
  0xcb   : > { %3580 = vmatmul.mubr.msk.bf16.gmra.mrb[76].mxu0 %vm543_vm0, %v506_v31 }
  0xcc   : > { %872 = vmatprep.mubr.bf16.mxu0 %v3977_v2 }
  0xd3   : > { %3581 = vmatmul.mubr.msk.bf16.gmra.mrb[80].mxu0 %vm543_vm0, %v507_v34 }
  0xd4   : > { %882 = vmatprep.mubr.bf16.mxu0 %v3977_v2 }
  0xdb   : > { %3582 = vmatmul.mubr.msk.bf16.gmra.mrb[84].mxu0 %vm543_vm0, %v508_v37 }
  0xdc   : > { %892 = vmatprep.mubr.bf16.mxu0 %v3977_v2 }
  0xe3   : > { %3583 = vmatmul.mubr.msk.bf16.gmra.mrb[88].mxu0 %vm543_vm0, %v509_v40 }
  0xe4   : > { %902 = vmatprep.mubr.bf16.mxu0 %v3977_v2 }
  0xeb   : > { %3584 = vmatmul.mubr.msk.bf16.gmra.mrb[92].mxu0 %vm543_vm0, %v510_v43 }
  0xec   : > { %912 = vmatprep.mubr.bf16.mxu0 %v3977_v2 }
  0xf3   : > { %3585 = vmatmul.mubr.msk.bf16.gmra.mrb[96].mxu0 %vm543_vm0, %v511_v46  ;;  %v483_v46 = vld [vmem:[%s4121_s15 + $0x1e0] sm:$0xff] }
  0xf4   : > { %922 = vmatprep.mubr.bf16.mxu0 %v3977_v2  ;;  %v517_v56 = vpack.c.bf16 %v484_v47, %v483_v46 }
  0xfb   : > { %3586 = vmatmul.mubr.msk.bf16.gmra.mrb[100].mxu0 %vm543_vm0, %v512_v49 }
  0xfc   : > { %932 = vmatprep.mubr.bf16.mxu0 %v3977_v2 }
 0x103   : > { %3587 = vmatmul.mubr.msk.bf16.gmra.mrb[104].mxu0 %vm543_vm0, %v513_v54 }
 0x104   : > { %942 = vmatprep.mubr.bf16.mxu0 %v3977_v2 }
 0x106   : > { %v674_v62 = vpop.f32.mrb[0].mxu0 }
 0x107   : > { %v675_v63 = vadd.f32 %v674_v62, %v4340_v58  ;;  %v676_v0 = vpop.f32.mrb[1].mxu0 }
 0x108   : > { %v678_v3 = vpop.f32.mrb[2].mxu0  ;;  %v677_v4 = vadd.f32 %v676_v0, %v4346_v61 }
 0x109   : > { %v679_v5 = vadd.f32 %v678_v3, %v4340_v58  ;;  %v680_v6 = vpop.f32.mrb[3].mxu0  ;;  %v993_v8 = vmax.f32 %v675_v63, 0.0 }
 0x10a   : > { %v681_v7 = vadd.f32 %v680_v6, %v4346_v61  ;;  %v994_v10 = vmax.f32 %v677_v4, 0.0  ;;  %v485_v6 = vld [vmem:[%s4121_s15 + $0x1f0] sm:$0xff] }
 0x10b   : > { %v995_v9 = vmax.f32 %v679_v5, 0.0  ;;  %3588 = vmatmul.mubr.msk.bf16.gmra.mrb[108].mxu0 %vm543_vm0, %v514_v1 }
 0x10c   : > { %v996_v11 = vmax.f32 %v681_v7, 0.0  ;;  %952 = vmatprep.mubr.bf16.mxu0 %v3977_v2  ;;  %v486_v7 = vld [vmem:[%s4121_s15 + $0x1f8] sm:$0xff]  ;;  %s406_s15 = scalar_lea.vmem [#allocation5], %s3556_s22 }
 0x10d   : > { %v1121_v14 = vpack.c.bf16 %v995_v9, %v993_v8  ;;  %v518_v13 = vpack.c.bf16 %v486_v7, %v485_v6  ;;  %v3832_v6 = vld [vmem:[%s5204_s5 + $0x40] ss:$8 sps:$4 sm:$0xff]   ;;  %s3479_s25 = sshll.u32 %s406_s15, 4  ;;  %s5159_s25 = int_to_ptr.vmem [resolvable:$true] %s3479_s25 }
 0x10e   : > { %v684_v15 = vpop.f32.mrb[4].mxu0  ;;  %v1122_v16 = vpack.c.bf16 %v996_v11, %v994_v10 }
 0x10f   : > { %v685_v17 = vadd.f32 %v684_v15, %v4340_v58  ;;  %v686_v18 = vpop.f32.mrb[5].mxu0 }
 0x110   : > { %v687_v20 = vadd.f32 %v686_v18, %v4346_v61  ;;  %v688_v21 = vpop.f32.mrb[6].mxu0  ;;  %1421 = vmatprep.mubr.bf16.mxu1 %v1122_v16 }
 0x111   : > { %v689_v22 = vadd.f32 %v688_v21, %v4340_v58  ;;  %v690_v23 = vpop.f32.mrb[7].mxu0  ;;  %1422 = vmatmul.mubr.bf16.vlgmr.msra.gmra.mrb[0].mxu1 %v1121_v14  ;;  %v997_v25 = vmax.f32 %v685_v17, 0.0 }
 0x112   : > { %v691_v24 = vadd.f32 %v690_v23, %v4346_v61  ;;  %v998_v27 = vmax.f32 %v687_v20, 0.0 }
 0x113   : > { %v999_v26 = vmax.f32 %v689_v22, 0.0  ;;  %3589 = vmatmul.mubr.msk.bf16.gmra.mrb[112].mxu0 %vm543_vm0, %v515_v19 }
 0x114   : > { %v1000_v28 = vmax.f32 %v691_v24, 0.0  ;;  %962 = vmatprep.mubr.bf16.mxu0 %v3977_v2  ;;  %v3822_v24 = vld [vmem:[%s5204_s5 + $0x4] ss:$8 sps:$4 sm:$0xff]  }
 0x115   : > { %v1123_v31 = vpack.c.bf16 %v999_v26, %v997_v25  ;;  %2138 = vmatprep.subr.bf16.mxu0 %v3822_v24  ;;  %v3838_v24 = vld [vmem:[%s5204_s5 + $0x60] ss:$8 sps:$4 sm:$0xff]  }
 0x116   : > { %v1124_v32 = vpack.c.bf16 %v1000_v28, %v998_v27  ;;  %v694_v33 = vpop.f32.mrb[8].mxu0  ;;  %v3820_v27 = vld [vmem:[%s5204_s5] ss:$8 sps:$4 sm:$0xff]  }
 0x117   : > { %v695_v34 = vadd.f32 %v694_v33, %v4340_v58  ;;  %v696_v35 = vpop.f32.mrb[9].mxu0  ;;  %2139 = vmatpush1.bf16.msra.mxu0 %v3820_v27 }
 0x118   : > { %v697_v37 = vadd.f32 %v696_v35, %v4346_v61  ;;  %v698_v38 = vpop.f32.mrb[10].mxu0  ;;  %1431 = vmatprep.mubr.bf16.mxu1 %v1124_v32 }
 0x119   : > { %v699_v39 = vadd.f32 %v698_v38, %v4340_v58  ;;  %v700_v40 = vpop.f32.mrb[11].mxu0  ;;  %1432 = vmatmul.mubr.bf16.gmra.mrb[4].mxu1 %v1123_v31  ;;  %v1001_v42 = vmax.f32 %v695_v34, 0.0  ;;  %v3825_v34 = vld [vmem:[%s5204_s5 + $0x14] ss:$8 sps:$4 sm:$0xff]  }
 0x11a   : > { %v701_v41 = vadd.f32 %v700_v40, %v4346_v61  ;;  %v1002_v44 = vmax.f32 %v697_v37, 0.0  ;;  %2140 = vmatprep.subr.bf16.mxu0 %v3825_v34 }
 0x11b   : > { %v1003_v43 = vmax.f32 %v699_v39, 0.0  ;;  %3590 = vmatmul.mubr.msk.bf16.gmra.mrb[116].mxu0 %vm543_vm0, %v516_v36  ;;  %v3823_v36 = vld [vmem:[%s5204_s5 + $0x10] ss:$8 sps:$4 sm:$0xff]  }
 0x11c   : > { %v1004_v45 = vmax.f32 %v701_v41, 0.0  ;;  %972 = vmatprep.mubr.bf16.mxu0 %v3977_v2  ;;  %2141 = vmatpush1.bf16.msra.mxu0 %v3823_v36 }
 0x11d   : > { %v1125_v48 = vpack.c.bf16 %v1003_v43, %v1001_v42  ;;  %v3828_v42 = vld [vmem:[%s5204_s5 + $0x24] ss:$8 sps:$4 sm:$0xff]  }
 0x11e   : > { %v1126_v49 = vpack.c.bf16 %v1004_v45, %v1002_v44  ;;  %v704_v52 = vpop.f32.mrb[12].mxu0  ;;  %v3826_v45 = vld [vmem:[%s5204_s5 + $0x20] ss:$8 sps:$4 sm:$0xff]   ;;  %2142 = vmatprep.subr.bf16.mxu0 %v3828_v42 }
 0x11f   : > { %v705_v53 = vadd.f32 %v704_v52, %v4340_v58  ;;  %v706_v54 = vpop.f32.mrb[13].mxu0  ;;  %v3844_v42 = vld [vmem:[%s5204_s5 + $0x80] ss:$8 sps:$4 sm:$0xff]  }
 0x120   : > { %v707_v59 = vadd.f32 %v706_v54, %v4346_v61  ;;  %v708_v60 = vpop.f32.mrb[14].mxu0  ;;  %1441 = vmatprep.mubr.bf16.mxu1 %v1126_v49  ;;  %2143 = vmatpush1.bf16.msra.mxu0 %v3826_v45  ;;  %v3831_v54 = vld [vmem:[%s5204_s5 + $0x34] ss:$8 sps:$4 sm:$0xff]  }
 0x121   : > { %v709_v62 = vadd.f32 %v708_v60, %v4340_v58  ;;  %v710_v63 = vpop.f32.mrb[15].mxu0  ;;  %1442 = vmatmul.mubr.bf16.gmra.mrb[8].mxu1 %v1125_v48  ;;  %v1005_v1 = vmax.f32 %v705_v53, 0.0  ;;  %2144 = vmatprep.subr.bf16.mxu0 %v3831_v54 }
 0x122   : > { %v711_v0 = vadd.f32 %v710_v63, %v4346_v61  ;;  %v1006_v4 = vmax.f32 %v707_v59, 0.0  ;;  %v3829_v59 = vld [vmem:[%s5204_s5 + $0x30] ss:$8 sps:$4 sm:$0xff]  }
 0x123   : > { %v1007_v3 = vmax.f32 %v709_v62, 0.0  ;;  %3591 = vmatmul.mubr.msk.bf16.gmra.mrb[120].mxu0 %vm543_vm0, %v517_v56 }
 0x124   : > { %v1008_v5 = vmax.f32 %v711_v0, 0.0  ;;  %982 = vmatprep.mubr.bf16.mxu0 %v3977_v2  ;;  %2145 = vmatpush1.bf16.msra.mxu0 %v3829_v59 }
 0x125   : > { %v1127_v8 = vpack.c.bf16 %v1007_v3, %v1005_v1  ;;  %v3834_v3 = vld [vmem:[%s5204_s5 + $0x44] ss:$8 sps:$4 sm:$0xff]  }
 0x126   : > { %v1128_v9 = vpack.c.bf16 %v1008_v5, %v1006_v4  ;;  %v714_v10 = vpop.f32.mrb[16].mxu0  ;;  %2146 = vmatprep.subr.bf16.mxu0 %v3834_v3  ;;  %v3850_v3 = vld [vmem:[%s5204_s5 + $0xa0] ss:$8 sps:$4 sm:$0xff]  }
 0x127   : > { %v715_v11 = vadd.f32 %v714_v10, %v4340_v58  ;;  %v716_v12 = vpop.f32.mrb[17].mxu0 }
 0x128   : > { %v717_v14 = vadd.f32 %v716_v12, %v4346_v61  ;;  %v718_v15 = vpop.f32.mrb[18].mxu0  ;;  %1451 = vmatprep.mubr.bf16.mxu1 %v1128_v9  ;;  %2147 = vmatpush1.bf16.msra.mxu0 %v3832_v6 }
 0x129   : > { %v719_v16 = vadd.f32 %v718_v15, %v4340_v58  ;;  %v720_v17 = vpop.f32.mrb[19].mxu0  ;;  %1452 = vmatmul.mubr.bf16.gmra.mrb[12].mxu1 %v1127_v8  ;;  %v1009_v19 = vmax.f32 %v715_v11, 0.0  ;;  %v3835_v15 = vld [vmem:[%s5204_s5 + $0x50] ss:$8 sps:$4 sm:$0xff]  }
 0x12a   : > { %v721_v18 = vadd.f32 %v720_v17, %v4346_v61  ;;  %v1010_v21 = vmax.f32 %v717_v14, 0.0 }
 0x12b   : > { %v1011_v20 = vmax.f32 %v719_v16, 0.0  ;;  %3592 = vmatmul.mubr.msk.bf16.gmra.mrb[124].mxu0 %vm543_vm0, %v518_v13  ;;  %v3837_v13 = vld [vmem:[%s5204_s5 + $0x54] ss:$8 sps:$4 sm:$0xff]  }
 0x12c   : > { %v1012_v22 = vmax.f32 %v721_v18, 0.0  ;;  %2148 = vmatprep.subr.bf16.mxu0 %v3837_v13 }
 0x12d   : > { %v1129_v23 = vpack.c.bf16 %v1011_v20, %v1009_v19  ;;  %2149 = vmatpush1.bf16.msra.mxu0 %v3835_v15 }
 0x12e   : > { %v1130_v25 = vpack.c.bf16 %v1012_v22, %v1010_v21  ;;  %v724_v26 = vpop.f32.mrb[20].mxu0  ;;  %v3840_v21 = vld [vmem:[%s5204_s5 + $0x64] ss:$8 sps:$4 sm:$0xff]  }
 0x12f   : > { %v725_v28 = vadd.f32 %v724_v26, %v4340_v58  ;;  %v726_v29 = vpop.f32.mrb[21].mxu0  ;;  %2150 = vmatprep.subr.bf16.mxu0 %v3840_v21  ;;  %v3856_v21 = vld [vmem:[%s5204_s5 + $0xc0] ss:$8 sps:$4 sm:$0xff]  }
 0x130   : > { %v727_v30 = vadd.f32 %v726_v29, %v4346_v61  ;;  %v728_v31 = vpop.f32.mrb[22].mxu0  ;;  %1461 = vmatprep.mubr.bf16.mxu1 %v1130_v25 }
 0x131   : > { %v729_v32 = vadd.f32 %v728_v31, %v4340_v58  ;;  %v730_v33 = vpop.f32.mrb[23].mxu0  ;;  %1462 = vmatmul.mubr.bf16.gmra.mrb[16].mxu1 %v1129_v23  ;;  %v1013_v37 = vmax.f32 %v725_v28, 0.0  ;;  %2151 = vmatpush1.bf16.msra.mxu0 %v3838_v24  ;;  %v3843_v31 = vld [vmem:[%s5204_s5 + $0x74] ss:$8 sps:$4 sm:$0xff]  }
 0x132   : > { %v731_v35 = vadd.f32 %v730_v33, %v4346_v61  ;;  %v1014_v39 = vmax.f32 %v727_v30, 0.0  ;;  %v3841_v33 = vld [vmem:[%s5204_s5 + $0x70] ss:$8 sps:$4 sm:$0xff]   ;;  %2152 = vmatprep.subr.bf16.mxu0 %v3843_v31 }
 0x133   : > { %v1015_v38 = vmax.f32 %v729_v32, 0.0 }
 0x134   : > { %v1016_v40 = vmax.f32 %v731_v35, 0.0 }
 0x135   : > { %v1131_v41 = vpack.c.bf16 %v1015_v38, %v1013_v37  ;;  %2153 = vmatpush1.bf16.msra.mxu0 %v3841_v33 }
 0x136   : > { %v1132_v43 = vpack.c.bf16 %v1016_v40, %v1014_v39  ;;  %v734_v44 = vpop.f32.mrb[24].mxu0  ;;  %v3846_v39 = vld [vmem:[%s5204_s5 + $0x84] ss:$8 sps:$4 sm:$0xff]  }
 0x137   : > { %v735_v46 = vadd.f32 %v734_v44, %v4340_v58  ;;  %v736_v47 = vpop.f32.mrb[25].mxu0  ;;  %2154 = vmatprep.subr.bf16.mxu0 %v3846_v39  ;;  %v3862_v39 = vld [vmem:[%s5204_s5 + $0xe0] ss:$8 sps:$4 sm:$0xff]  }
 0x138   : > { %v737_v48 = vadd.f32 %v736_v47, %v4346_v61  ;;  %v738_v49 = vpop.f32.mrb[26].mxu0  ;;  %1471 = vmatprep.mubr.bf16.mxu1 %v1132_v43 }
 0x139   : > { %v739_v52 = vadd.f32 %v738_v49, %v4340_v58  ;;  %v740_v53 = vpop.f32.mrb[27].mxu0  ;;  %1472 = vmatmul.mubr.bf16.gmra.mrb[20].mxu1 %v1131_v41  ;;  %v1017_v60 = vmax.f32 %v735_v46, 0.0  ;;  %2155 = vmatpush1.bf16.msra.mxu0 %v3844_v42  ;;  %v3849_v49 = vld [vmem:[%s5204_s5 + $0x94] ss:$8 sps:$4 sm:$0xff]  }
 0x13a   : > { %v741_v56 = vadd.f32 %v740_v53, %v4346_v61  ;;  %v1018_v63 = vmax.f32 %v737_v48, 0.0  ;;  %v3847_v53 = vld [vmem:[%s5204_s5 + $0x90] ss:$8 sps:$4 sm:$0xff]   ;;  %2156 = vmatprep.subr.bf16.mxu0 %v3849_v49 }
 0x13b   : > { %v1019_v62 = vmax.f32 %v739_v52, 0.0 }
 0x13c   : > { %v1020_v0 = vmax.f32 %v741_v56, 0.0 }
 0x13d   : > { %v1133_v1 = vpack.c.bf16 %v1019_v62, %v1017_v60  ;;  %2157 = vmatpush1.bf16.msra.mxu0 %v3847_v53 }
 0x13e   : > { %v1134_v4 = vpack.c.bf16 %v1020_v0, %v1018_v63  ;;  %v744_v5 = vpop.f32.mrb[28].mxu0  ;;  %v3852_v63 = vld [vmem:[%s5204_s5 + $0xa4] ss:$8 sps:$4 sm:$0xff]  }
 0x13f   : > { %v745_v7 = vadd.f32 %v744_v5, %v4340_v58  ;;  %v746_v8 = vpop.f32.mrb[29].mxu0  ;;  %2158 = vmatprep.subr.bf16.mxu0 %v3852_v63 }
 0x140   : > { %v747_v9 = vadd.f32 %v746_v8, %v4346_v61  ;;  %v748_v10 = vpop.f32.mrb[30].mxu0  ;;  %1481 = vmatprep.mubr.bf16.mxu1 %v1134_v4 }
 0x141   : > { %v749_v11 = vadd.f32 %v748_v10, %v4340_v58  ;;  %v750_v12 = vpop.f32.mrb[31].mxu0  ;;  %1482 = vmatmul.mubr.bf16.gmra.mrb[24].mxu1 %v1133_v1  ;;  %v1021_v16 = vmax.f32 %v745_v7, 0.0  ;;  %2159 = vmatpush1.bf16.msra.mxu0 %v3850_v3  ;;  %v3855_v10 = vld [vmem:[%s5204_s5 + $0xb4] ss:$8 sps:$4 sm:$0xff]  }
 0x142   : > { %v751_v14 = vadd.f32 %v750_v12, %v4346_v61  ;;  %v1022_v18 = vmax.f32 %v747_v9, 0.0  ;;  %v3853_v12 = vld [vmem:[%s5204_s5 + $0xb0] ss:$8 sps:$4 sm:$0xff]   ;;  %2160 = vmatprep.subr.bf16.mxu0 %v3855_v10 }
 0x143   : > { %v1023_v17 = vmax.f32 %v749_v11, 0.0 }
 0x144   : > { %v1024_v19 = vmax.f32 %v751_v14, 0.0 }
 0x145   : > { %v1135_v20 = vpack.c.bf16 %v1023_v17, %v1021_v16  ;;  %2161 = vmatpush1.bf16.msra.mxu0 %v3853_v12 }
 0x146   : > { %v1136_v22 = vpack.c.bf16 %v1024_v19, %v1022_v18  ;;  %v754_v23 = vpop.f32.mrb[32].mxu0  ;;  %v3858_v18 = vld [vmem:[%s5204_s5 + $0xc4] ss:$8 sps:$4 sm:$0xff]  }
 0x147   : > { %v755_v25 = vadd.f32 %v754_v23, %v4340_v58  ;;  %v756_v26 = vpop.f32.mrb[33].mxu0  ;;  %2162 = vmatprep.subr.bf16.mxu0 %v3858_v18 }
 0x148   : > { %v757_v27 = vadd.f32 %v756_v26, %v4346_v61  ;;  %v758_v28 = vpop.f32.mrb[34].mxu0  ;;  %1491 = vmatprep.mubr.bf16.mxu1 %v1136_v22 }
 0x149   : > { %v759_v29 = vadd.f32 %v758_v28, %v4340_v58  ;;  %v760_v30 = vpop.f32.mrb[35].mxu0  ;;  %1492 = vmatmul.mubr.bf16.gmra.mrb[28].mxu1 %v1135_v20  ;;  %v1025_v34 = vmax.f32 %v755_v25, 0.0  ;;  %2163 = vmatpush1.bf16.msra.mxu0 %v3856_v21  ;;  %v3861_v28 = vld [vmem:[%s5204_s5 + $0xd4] ss:$8 sps:$4 sm:$0xff]  }
 0x14a   : > { %v761_v32 = vadd.f32 %v760_v30, %v4346_v61  ;;  %v1026_v36 = vmax.f32 %v757_v27, 0.0  ;;  %v3859_v30 = vld [vmem:[%s5204_s5 + $0xd0] ss:$8 sps:$4 sm:$0xff]   ;;  %2164 = vmatprep.subr.bf16.mxu0 %v3861_v28 }
 0x14b   : > { %v1027_v35 = vmax.f32 %v759_v29, 0.0 }
 0x14c   : > { %v1028_v37 = vmax.f32 %v761_v32, 0.0 }
 0x14d   : > { %v1137_v38 = vpack.c.bf16 %v1027_v35, %v1025_v34  ;;  %2165 = vmatpush1.bf16.msra.mxu0 %v3859_v30 }
 0x14e   : > { %v1138_v40 = vpack.c.bf16 %v1028_v37, %v1026_v36  ;;  %v764_v41 = vpop.f32.mrb[36].mxu0  ;;  %v3864_v36 = vld [vmem:[%s5204_s5 + $0xe4] ss:$8 sps:$4 sm:$0xff]  }
 0x14f   : > { %v765_v43 = vadd.f32 %v764_v41, %v4340_v58  ;;  %v766_v44 = vpop.f32.mrb[37].mxu0  ;;  %2166 = vmatprep.subr.bf16.mxu0 %v3864_v36 }
 0x150   : > { %v767_v45 = vadd.f32 %v766_v44, %v4346_v61  ;;  %v768_v46 = vpop.f32.mrb[38].mxu0  ;;  %1501 = vmatprep.mubr.bf16.mxu1 %v1138_v40 }
 0x151   : > { %v769_v47 = vadd.f32 %v768_v46, %v4340_v58  ;;  %v770_v48 = vpop.f32.mrb[39].mxu0  ;;  %1502 = vmatmul.mubr.bf16.gmra.mrb[32].mxu1 %v1137_v38  ;;  %v1029_v54 = vmax.f32 %v765_v43, 0.0  ;;  %2167 = vmatpush1.bf16.msra.mxu0 %v3862_v39  ;;  %v3867_v46 = vld [vmem:[%s5204_s5 + $0xf4] ss:$8 sps:$4 sm:$0xff]  }
 0x152   : > { %v771_v52 = vadd.f32 %v770_v48, %v4346_v61  ;;  %v1030_v59 = vmax.f32 %v767_v45, 0.0  ;;  %v3865_v48 = vld [vmem:[%s5204_s5 + $0xf0] ss:$8 sps:$4 sm:$0xff]   ;;  %2168 = vmatprep.subr.bf16.mxu0 %v3867_v46 }
 0x153   : > { %v1031_v56 = vmax.f32 %v769_v47, 0.0 }
 0x154   : > { %v1032_v60 = vmax.f32 %v771_v52, 0.0 }
 0x155   : > { %v1139_v62 = vpack.c.bf16 %v1031_v56, %v1029_v54  ;;  %2169 = vmatpush1.bf16.msra.mxu0 %v3865_v48 }
 0x156   : > { %v1140_v0 = vpack.c.bf16 %v1032_v60, %v1030_v59  ;;  %v774_v1 = vpop.f32.mrb[40].mxu0 }
 0x157   : > { %v775_v4 = vadd.f32 %v774_v1, %v4340_v58  ;;  %v776_v5 = vpop.f32.mrb[41].mxu0 }
 0x158   : > { %v777_v6 = vadd.f32 %v776_v5, %v4346_v61  ;;  %v778_v7 = vpop.f32.mrb[42].mxu0  ;;  %1511 = vmatprep.mubr.bf16.mxu1 %v1140_v0 }
 0x159   : > { %v779_v8 = vadd.f32 %v778_v7, %v4340_v58  ;;  %v780_v9 = vpop.f32.mrb[43].mxu0  ;;  %1512 = vmatmul.mubr.bf16.gmra.mrb[36].mxu1 %v1139_v62  ;;  %v1033_v13 = vmax.f32 %v775_v4, 0.0 }
 0x15a   : > { %v781_v11 = vadd.f32 %v780_v9, %v4346_v61  ;;  %v1034_v15 = vmax.f32 %v777_v6, 0.0 }
 0x15b   : > { %v1035_v14 = vmax.f32 %v779_v8, 0.0 }
 0x15c   : > { %v1036_v16 = vmax.f32 %v781_v11, 0.0 }
 0x15d   : > { %v1141_v17 = vpack.c.bf16 %v1035_v14, %v1033_v13 }
 0x15e   : > { %v1142_v19 = vpack.c.bf16 %v1036_v16, %v1034_v15  ;;  %v784_v20 = vpop.f32.mrb[44].mxu0 }
 0x15f   : > { %v785_v22 = vadd.f32 %v784_v20, %v4340_v58  ;;  %v786_v23 = vpop.f32.mrb[45].mxu0 }
 0x160   : > { %v787_v24 = vadd.f32 %v786_v23, %v4346_v61  ;;  %v788_v25 = vpop.f32.mrb[46].mxu0  ;;  %1521 = vmatprep.mubr.bf16.mxu1 %v1142_v19 }
 0x161   : > { %v789_v26 = vadd.f32 %v788_v25, %v4340_v58  ;;  %v790_v27 = vpop.f32.mrb[47].mxu0  ;;  %1522 = vmatmul.mubr.bf16.gmra.mrb[40].mxu1 %v1141_v17  ;;  %v1037_v31 = vmax.f32 %v785_v22, 0.0 }
 0x162   : > { %v791_v29 = vadd.f32 %v790_v27, %v4346_v61  ;;  %v1038_v33 = vmax.f32 %v787_v24, 0.0 }
 0x163   : > { %v1039_v32 = vmax.f32 %v789_v26, 0.0 }
 0x164   : > { %v1040_v34 = vmax.f32 %v791_v29, 0.0 }
 0x165   : > { %v1143_v35 = vpack.c.bf16 %v1039_v32, %v1037_v31 }
 0x166   : > { %v1144_v37 = vpack.c.bf16 %v1040_v34, %v1038_v33  ;;  %v794_v38 = vpop.f32.mrb[48].mxu0 }
 0x167   : > { %v795_v40 = vadd.f32 %v794_v38, %v4340_v58  ;;  %v796_v41 = vpop.f32.mrb[49].mxu0 }
 0x168   : > { %v797_v42 = vadd.f32 %v796_v41, %v4346_v61  ;;  %v798_v43 = vpop.f32.mrb[50].mxu0  ;;  %1531 = vmatprep.mubr.bf16.mxu1 %v1144_v37 }
 0x169   : > { %v799_v44 = vadd.f32 %v798_v43, %v4340_v58  ;;  %v800_v45 = vpop.f32.mrb[51].mxu0  ;;  %1532 = vmatmul.mubr.bf16.gmra.mrb[44].mxu1 %v1143_v35  ;;  %v1041_v49 = vmax.f32 %v795_v40, 0.0 }
 0x16a   : > { %v801_v47 = vadd.f32 %v800_v45, %v4346_v61  ;;  %v1042_v53 = vmax.f32 %v797_v42, 0.0 }
 0x16b   : > { %v1043_v52 = vmax.f32 %v799_v44, 0.0 }
 0x16c   : > { %v1044_v54 = vmax.f32 %v801_v47, 0.0 }
 0x16d   : > { %v1145_v56 = vpack.c.bf16 %v1043_v52, %v1041_v49 }
 0x16e   : > { %v1146_v59 = vpack.c.bf16 %v1044_v54, %v1042_v53  ;;  %v804_v60 = vpop.f32.mrb[52].mxu0 }
 0x16f   : > { %v805_v62 = vadd.f32 %v804_v60, %v4340_v58  ;;  %v806_v63 = vpop.f32.mrb[53].mxu0 }
 0x170   : > { %v807_v0 = vadd.f32 %v806_v63, %v4346_v61  ;;  %v808_v1 = vpop.f32.mrb[54].mxu0  ;;  %1541 = vmatprep.mubr.bf16.mxu1 %v1146_v59 }
 0x171   : > { %v809_v3 = vadd.f32 %v808_v1, %v4340_v58  ;;  %v810_v4 = vpop.f32.mrb[55].mxu0  ;;  %1542 = vmatmul.mubr.bf16.gmra.mrb[48].mxu1 %v1145_v56  ;;  %v1045_v6 = vmax.f32 %v805_v62, 0.0 }
 0x172   : > { %v811_v5 = vadd.f32 %v810_v4, %v4346_v61  ;;  %v1046_v8 = vmax.f32 %v807_v0, 0.0 }
 0x173   : > { %v1047_v7 = vmax.f32 %v809_v3, 0.0 }
 0x174   : > { %v1048_v9 = vmax.f32 %v811_v5, 0.0 }
 0x175   : > { %v1147_v10 = vpack.c.bf16 %v1047_v7, %v1045_v6 }
 0x176   : > { %v1148_v11 = vpack.c.bf16 %v1048_v9, %v1046_v8  ;;  %v814_v12 = vpop.f32.mrb[56].mxu0 }
 0x177   : > { %v815_v13 = vadd.f32 %v814_v12, %v4340_v58  ;;  %v816_v14 = vpop.f32.mrb[57].mxu0 }
 0x178   : > { %v817_v15 = vadd.f32 %v816_v14, %v4346_v61  ;;  %v818_v16 = vpop.f32.mrb[58].mxu0  ;;  %1551 = vmatprep.mubr.bf16.mxu1 %v1148_v11 }
 0x179   : > { %v819_v17 = vadd.f32 %v818_v16, %v4340_v58  ;;  %v820_v18 = vpop.f32.mrb[59].mxu0  ;;  %1552 = vmatmul.mubr.bf16.gmra.mrb[52].mxu1 %v1147_v10  ;;  %v1049_v20 = vmax.f32 %v815_v13, 0.0 }
 0x17a   : > { %v821_v19 = vadd.f32 %v820_v18, %v4346_v61  ;;  %v1050_v22 = vmax.f32 %v817_v15, 0.0 }
 0x17b   : > { %v1051_v21 = vmax.f32 %v819_v17, 0.0 }
 0x17c   : > { %v1052_v23 = vmax.f32 %v821_v19, 0.0 }
 0x17d   : > { %v1149_v24 = vpack.c.bf16 %v1051_v21, %v1049_v20 }
 0x17e   : > { %v1150_v25 = vpack.c.bf16 %v1052_v23, %v1050_v22  ;;  %v824_v26 = vpop.f32.mrb[60].mxu0 }
 0x17f   : > { %v825_v27 = vadd.f32 %v824_v26, %v4340_v58  ;;  %v826_v28 = vpop.f32.mrb[61].mxu0 }
 0x180   : > { %v827_v29 = vadd.f32 %v826_v28, %v4346_v61  ;;  %v828_v30 = vpop.f32.mrb[62].mxu0  ;;  %1561 = vmatprep.mubr.bf16.mxu1 %v1150_v25 }
 0x181   : > { %v829_v31 = vadd.f32 %v828_v30, %v4340_v58  ;;  %v830_v32 = vpop.f32.mrb[63].mxu0  ;;  %1562 = vmatmul.mubr.bf16.gmra.mrb[56].mxu1 %v1149_v24  ;;  %v1053_v34 = vmax.f32 %v825_v27, 0.0 }
 0x182   : > { %v831_v33 = vadd.f32 %v830_v32, %v4346_v61  ;;  %v1054_v36 = vmax.f32 %v827_v29, 0.0 }
 0x183   : > { %v1055_v35 = vmax.f32 %v829_v31, 0.0 }
 0x184   : > { %v1056_v37 = vmax.f32 %v831_v33, 0.0 }
 0x185   : > { %v1151_v38 = vpack.c.bf16 %v1055_v35, %v1053_v34 }
 0x186   : > { %v1152_v39 = vpack.c.bf16 %v1056_v37, %v1054_v36  ;;  %v834_v40 = vpop.f32.mrb[64].mxu0 }
 0x187   : > { %v835_v41 = vadd.f32 %v834_v40, %v4340_v58  ;;  %v836_v42 = vpop.f32.mrb[65].mxu0 }
 0x188   : > { %v837_v43 = vadd.f32 %v836_v42, %v4346_v61  ;;  %v838_v44 = vpop.f32.mrb[66].mxu0  ;;  %1571 = vmatprep.mubr.bf16.mxu1 %v1152_v39 }
 0x189   : > { %v839_v45 = vadd.f32 %v838_v44, %v4340_v58  ;;  %v840_v46 = vpop.f32.mrb[67].mxu0  ;;  %1572 = vmatmul.mubr.bf16.gmra.mrb[60].mxu1 %v1151_v38  ;;  %v1057_v48 = vmax.f32 %v835_v41, 0.0 }
 0x18a   : > { %v841_v47 = vadd.f32 %v840_v46, %v4346_v61  ;;  %v1058_v52 = vmax.f32 %v837_v43, 0.0 }
 0x18b   : > { %v1059_v49 = vmax.f32 %v839_v45, 0.0 }
 0x18c   : > { %v1060_v53 = vmax.f32 %v841_v47, 0.0 }
 0x18d   : > { %v1153_v54 = vpack.c.bf16 %v1059_v49, %v1057_v48 }
 0x18e   : > { %v1154_v56 = vpack.c.bf16 %v1060_v53, %v1058_v52  ;;  %v844_v59 = vpop.f32.mrb[68].mxu0 }
 0x18f   : > { %v845_v60 = vadd.f32 %v844_v59, %v4340_v58  ;;  %v846_v62 = vpop.f32.mrb[69].mxu0 }
 0x190   : > { %v847_v63 = vadd.f32 %v846_v62, %v4346_v61  ;;  %v848_v0 = vpop.f32.mrb[70].mxu0  ;;  %1581 = vmatprep.mubr.bf16.mxu1 %v1154_v56 }
 0x191   : > { %v849_v1 = vadd.f32 %v848_v0, %v4340_v58  ;;  %v850_v3 = vpop.f32.mrb[71].mxu0  ;;  %1582 = vmatmul.mubr.bf16.gmra.mrb[64].mxu1 %v1153_v54  ;;  %v1061_v5 = vmax.f32 %v845_v60, 0.0 }
 0x192   : > { %v851_v4 = vadd.f32 %v850_v3, %v4346_v61  ;;  %v1062_v7 = vmax.f32 %v847_v63, 0.0 }
 0x193   : > { %v1063_v6 = vmax.f32 %v849_v1, 0.0 }
 0x194   : > { %v1064_v8 = vmax.f32 %v851_v4, 0.0 }
 0x195   : > { %v1155_v9 = vpack.c.bf16 %v1063_v6, %v1061_v5 }
 0x196   : > { %v1156_v10 = vpack.c.bf16 %v1064_v8, %v1062_v7  ;;  %v854_v11 = vpop.f32.mrb[72].mxu0 }
 0x197   : > { %v855_v12 = vadd.f32 %v854_v11, %v4340_v58  ;;  %v856_v13 = vpop.f32.mrb[73].mxu0 }
 0x198   : > { %v857_v14 = vadd.f32 %v856_v13, %v4346_v61  ;;  %v858_v15 = vpop.f32.mrb[74].mxu0  ;;  %1591 = vmatprep.mubr.bf16.mxu1 %v1156_v10 }
 0x199   : > { %v859_v16 = vadd.f32 %v858_v15, %v4340_v58  ;;  %v860_v17 = vpop.f32.mrb[75].mxu0  ;;  %1592 = vmatmul.mubr.bf16.gmra.mrb[68].mxu1 %v1155_v9  ;;  %v1065_v19 = vmax.f32 %v855_v12, 0.0 }
 0x19a   : > { %v861_v18 = vadd.f32 %v860_v17, %v4346_v61  ;;  %v1066_v21 = vmax.f32 %v857_v14, 0.0 }
 0x19b   : > { %v1067_v20 = vmax.f32 %v859_v16, 0.0 }
 0x19c   : > { %v1068_v22 = vmax.f32 %v861_v18, 0.0 }
 0x19d   : > { %v1157_v23 = vpack.c.bf16 %v1067_v20, %v1065_v19 }
 0x19e   : > { %v1158_v24 = vpack.c.bf16 %v1068_v22, %v1066_v21  ;;  %v864_v25 = vpop.f32.mrb[76].mxu0 }
 0x19f   : > { %v865_v26 = vadd.f32 %v864_v25, %v4340_v58  ;;  %v866_v27 = vpop.f32.mrb[77].mxu0 }
 0x1a0   : > { %v867_v28 = vadd.f32 %v866_v27, %v4346_v61  ;;  %v868_v29 = vpop.f32.mrb[78].mxu0  ;;  %1601 = vmatprep.mubr.bf16.mxu1 %v1158_v24 }
 0x1a1   : > { %v869_v30 = vadd.f32 %v868_v29, %v4340_v58  ;;  %v870_v31 = vpop.f32.mrb[79].mxu0  ;;  %1602 = vmatmul.mubr.bf16.gmra.mrb[72].mxu1 %v1157_v23  ;;  %v1069_v33 = vmax.f32 %v865_v26, 0.0 }
 0x1a2   : > { %v871_v32 = vadd.f32 %v870_v31, %v4346_v61  ;;  %v1070_v35 = vmax.f32 %v867_v28, 0.0 }
 0x1a3   : > { %v1071_v34 = vmax.f32 %v869_v30, 0.0 }
 0x1a4   : > { %v1072_v36 = vmax.f32 %v871_v32, 0.0 }
 0x1a5   : > { %v1159_v37 = vpack.c.bf16 %v1071_v34, %v1069_v33 }
 0x1a6   : > { %v1160_v38 = vpack.c.bf16 %v1072_v36, %v1070_v35  ;;  %v874_v39 = vpop.f32.mrb[80].mxu0 }
 0x1a7   : > { %v875_v40 = vadd.f32 %v874_v39, %v4340_v58  ;;  %v876_v41 = vpop.f32.mrb[81].mxu0 }
 0x1a8   : > { %v877_v42 = vadd.f32 %v876_v41, %v4346_v61  ;;  %v878_v43 = vpop.f32.mrb[82].mxu0  ;;  %1611 = vmatprep.mubr.bf16.mxu1 %v1160_v38 }
 0x1a9   : > { %v879_v44 = vadd.f32 %v878_v43, %v4340_v58  ;;  %v880_v45 = vpop.f32.mrb[83].mxu0  ;;  %1612 = vmatmul.mubr.bf16.gmra.mrb[76].mxu1 %v1159_v37  ;;  %v1073_v47 = vmax.f32 %v875_v40, 0.0 }
 0x1aa   : > { %v881_v46 = vadd.f32 %v880_v45, %v4346_v61  ;;  %v1074_v49 = vmax.f32 %v877_v42, 0.0 }
 0x1ab   : > { %v1075_v48 = vmax.f32 %v879_v44, 0.0 }
 0x1ac   : > { %v1076_v52 = vmax.f32 %v881_v46, 0.0 }
 0x1ad   : > { %v1161_v53 = vpack.c.bf16 %v1075_v48, %v1073_v47 }
 0x1ae   : > { %v1162_v54 = vpack.c.bf16 %v1076_v52, %v1074_v49  ;;  %v884_v56 = vpop.f32.mrb[84].mxu0 }
 0x1af   : > { %v885_v59 = vadd.f32 %v884_v56, %v4340_v58  ;;  %v886_v60 = vpop.f32.mrb[85].mxu0 }
 0x1b0   : > { %v887_v62 = vadd.f32 %v886_v60, %v4346_v61  ;;  %v888_v63 = vpop.f32.mrb[86].mxu0  ;;  %1621 = vmatprep.mubr.bf16.mxu1 %v1162_v54 }
 0x1b1   : > { %v889_v0 = vadd.f32 %v888_v63, %v4340_v58  ;;  %v890_v1 = vpop.f32.mrb[87].mxu0  ;;  %1622 = vmatmul.mubr.bf16.gmra.mrb[80].mxu1 %v1161_v53  ;;  %v1077_v4 = vmax.f32 %v885_v59, 0.0 }
 0x1b2   : > { %v891_v3 = vadd.f32 %v890_v1, %v4346_v61  ;;  %v1078_v6 = vmax.f32 %v887_v62, 0.0 }
 0x1b3   : > { %v1079_v5 = vmax.f32 %v889_v0, 0.0 }
 0x1b4   : > { %v1080_v7 = vmax.f32 %v891_v3, 0.0 }
 0x1b5   : > { %v1163_v8 = vpack.c.bf16 %v1079_v5, %v1077_v4 }
 0x1b6   : > { %v1164_v9 = vpack.c.bf16 %v1080_v7, %v1078_v6  ;;  %v894_v10 = vpop.f32.mrb[88].mxu0 }
 0x1b7   : > { %v895_v11 = vadd.f32 %v894_v10, %v4340_v58  ;;  %v896_v12 = vpop.f32.mrb[89].mxu0 }
 0x1b8   : > { %v897_v13 = vadd.f32 %v896_v12, %v4346_v61  ;;  %v898_v14 = vpop.f32.mrb[90].mxu0  ;;  %1631 = vmatprep.mubr.bf16.mxu1 %v1164_v9 }
 0x1b9   : > { %v899_v15 = vadd.f32 %v898_v14, %v4340_v58  ;;  %v900_v16 = vpop.f32.mrb[91].mxu0  ;;  %1632 = vmatmul.mubr.bf16.gmra.mrb[84].mxu1 %v1163_v8  ;;  %v1081_v18 = vmax.f32 %v895_v11, 0.0 }
 0x1ba   : > { %v901_v17 = vadd.f32 %v900_v16, %v4346_v61  ;;  %v1082_v20 = vmax.f32 %v897_v13, 0.0 }
 0x1bb   : > { %v1083_v19 = vmax.f32 %v899_v15, 0.0 }
 0x1bc   : > { %v1084_v21 = vmax.f32 %v901_v17, 0.0 }
 0x1bd   : > { %v1165_v22 = vpack.c.bf16 %v1083_v19, %v1081_v18 }
 0x1be   : > { %v1166_v23 = vpack.c.bf16 %v1084_v21, %v1082_v20  ;;  %v904_v24 = vpop.f32.mrb[92].mxu0 }
 0x1bf   : > { %v905_v25 = vadd.f32 %v904_v24, %v4340_v58  ;;  %v906_v26 = vpop.f32.mrb[93].mxu0  ;;  %v1217_v24 = vld [vmem:[%s5203_s4] sm:$0x3] }
 0x1c0   : > { %v907_v27 = vadd.f32 %v906_v26, %v4346_v61  ;;  %v908_v28 = vpop.f32.mrb[94].mxu0  ;;  %1641 = vmatprep.mubr.bf16.mxu1 %v1166_v23 }
 0x1c1   : > { %v909_v29 = vadd.f32 %v908_v28, %v4340_v58  ;;  %v910_v30 = vpop.f32.mrb[95].mxu0  ;;  %1642 = vmatmul.mubr.bf16.gmra.mrb[88].mxu1 %v1165_v22  ;;  %v1085_v32 = vmax.f32 %v905_v25, 0.0 }
 0x1c2   : > { %v911_v31 = vadd.f32 %v910_v30, %v4346_v61  ;;  %v1086_v34 = vmax.f32 %v907_v27, 0.0 }
 0x1c3   : > { %v1087_v33 = vmax.f32 %v909_v29, 0.0 }
 0x1c4   : > { %v1088_v35 = vmax.f32 %v911_v31, 0.0  ;;  %v4576_v31 = vrot.slane %v1217_v24, %v4330_v55 }
 0x1c5   : > { %v1167_v36 = vpack.c.bf16 %v1087_v33, %v1085_v32  ;;  %v4580_v33 = vrot.slane %v1217_v24, %v4336_v57 }
 0x1c6   : > { %v1168_v37 = vpack.c.bf16 %v1088_v35, %v1086_v34  ;;  %v914_v38 = vpop.f32.mrb[96].mxu0 }
 0x1c7   : > { %v915_v39 = vadd.f32 %v914_v38, %v4340_v58  ;;  %v916_v40 = vpop.f32.mrb[97].mxu0 }
 0x1c8   : > { %v917_v41 = vadd.f32 %v916_v40, %v4346_v61  ;;  %v918_v42 = vpop.f32.mrb[98].mxu0  ;;  %1651 = vmatprep.mubr.bf16.mxu1 %v1168_v37 }
 0x1c9   : > { %v919_v43 = vadd.f32 %v918_v42, %v4340_v58  ;;  %v920_v44 = vpop.f32.mrb[99].mxu0  ;;  %1652 = vmatmul.mubr.bf16.gmra.mrb[92].mxu1 %v1167_v36  ;;  %v1089_v46 = vmax.f32 %v915_v39, 0.0 }
 0x1ca   : > { %v921_v45 = vadd.f32 %v920_v44, %v4346_v61  ;;  %v1090_v48 = vmax.f32 %v917_v41, 0.0 }
 0x1cb   : > { %v1091_v47 = vmax.f32 %v919_v43, 0.0 }
 0x1cc   : > { %v1092_v49 = vmax.f32 %v921_v45, 0.0 }
 0x1cd   : > { %v1169_v52 = vpack.c.bf16 %v1091_v47, %v1089_v46 }
 0x1ce   : > { %v1170_v53 = vpack.c.bf16 %v1092_v49, %v1090_v48  ;;  %v924_v54 = vpop.f32.mrb[100].mxu0 }
 0x1cf   : > { %v925_v56 = vadd.f32 %v924_v54, %v4340_v58  ;;  %v926_v59 = vpop.f32.mrb[101].mxu0 }
 0x1d0   : > { %v927_v60 = vadd.f32 %v926_v59, %v4346_v61  ;;  %v928_v62 = vpop.f32.mrb[102].mxu0  ;;  %1661 = vmatprep.mubr.bf16.mxu1 %v1170_v53 }
 0x1d1   : > { %v929_v63 = vadd.f32 %v928_v62, %v4340_v58  ;;  %v930_v0 = vpop.f32.mrb[103].mxu0  ;;  %1662 = vmatmul.mubr.bf16.gmra.mrb[96].mxu1 %v1169_v52  ;;  %v1093_v3 = vmax.f32 %v925_v56, 0.0 }
 0x1d2   : > { %v931_v1 = vadd.f32 %v930_v0, %v4346_v61  ;;  %v1094_v5 = vmax.f32 %v927_v60, 0.0 }
 0x1d3   : > { %v1095_v4 = vmax.f32 %v929_v63, 0.0 }
 0x1d4   : > { %v1096_v6 = vmax.f32 %v931_v1, 0.0 }
 0x1d5   : > { %v1171_v7 = vpack.c.bf16 %v1095_v4, %v1093_v3 }
 0x1d6   : > { %v1172_v8 = vpack.c.bf16 %v1096_v6, %v1094_v5  ;;  %v934_v9 = vpop.f32.mrb[104].mxu0 }
 0x1d7   : > { %v935_v10 = vadd.f32 %v934_v9, %v4340_v58  ;;  %v936_v11 = vpop.f32.mrb[105].mxu0 }
 0x1d8   : > { %v937_v12 = vadd.f32 %v936_v11, %v4346_v61  ;;  %v938_v13 = vpop.f32.mrb[106].mxu0  ;;  %1671 = vmatprep.mubr.bf16.mxu1 %v1172_v8 }
 0x1d9   : > { %v939_v14 = vadd.f32 %v938_v13, %v4340_v58  ;;  %v940_v15 = vpop.f32.mrb[107].mxu0  ;;  %1672 = vmatmul.mubr.bf16.gmra.mrb[100].mxu1 %v1171_v7  ;;  %v1097_v17 = vmax.f32 %v935_v10, 0.0 }
 0x1da   : > { %v941_v16 = vadd.f32 %v940_v15, %v4346_v61  ;;  %v1098_v19 = vmax.f32 %v937_v12, 0.0 }
 0x1db   : > { %v1099_v18 = vmax.f32 %v939_v14, 0.0 }
 0x1dc   : > { %v1100_v20 = vmax.f32 %v941_v16, 0.0 }
 0x1dd   : > { %v1173_v21 = vpack.c.bf16 %v1099_v18, %v1097_v17 }
 0x1de   : > { %v1174_v22 = vpack.c.bf16 %v1100_v20, %v1098_v19  ;;  %v944_v23 = vpop.f32.mrb[108].mxu0 }
 0x1df   : > { %v945_v25 = vadd.f32 %v944_v23, %v4340_v58  ;;  %v946_v26 = vpop.f32.mrb[109].mxu0 }
 0x1e0   : > { %v947_v27 = vadd.f32 %v946_v26, %v4346_v61  ;;  %v948_v28 = vpop.f32.mrb[110].mxu0  ;;  %1681 = vmatprep.mubr.bf16.mxu1 %v1174_v22 }
 0x1e1   : > { %v949_v29 = vadd.f32 %v948_v28, %v4340_v58  ;;  %v950_v30 = vpop.f32.mrb[111].mxu0  ;;  %1682 = vmatmul.mubr.bf16.gmra.mrb[104].mxu1 %v1173_v21  ;;  %v1101_v34 = vmax.f32 %v945_v25, 0.0 }
 0x1e2   : > { %v951_v32 = vadd.f32 %v950_v30, %v4346_v61  ;;  %v1102_v36 = vmax.f32 %v947_v27, 0.0 }
 0x1e3   : > { %v1103_v35 = vmax.f32 %v949_v29, 0.0 }
 0x1e4   : > { %v1104_v37 = vmax.f32 %v951_v32, 0.0  ;;  %v1423_v38 = vpop.f32.mrb[0].mxu1 }
 0x1e5   : > { %v1175_v39 = vpack.c.bf16 %v1103_v35, %v1101_v34  ;;  %v1424_v40 = vadd.f32 %v1423_v38, %v4576_v31  ;;  %v1425_v41 = vpop.f32.mrb[1].mxu1 }
 0x1e6   : > { %v1176_v42 = vpack.c.bf16 %v1104_v37, %v1102_v36  ;;  %v1426_v43 = vadd.f32 %v1425_v41, %v4580_v33  ;;  %v954_v44 = vpop.f32.mrb[112].mxu0  ;;  %v1427_v45 = vpop.f32.mrb[2].mxu1 }
 0x1e7   : > { %v955_v46 = vadd.f32 %v954_v44, %v4340_v58  ;;  %v1428_v47 = vadd.f32 %v1427_v45, %v4576_v31  ;;  %v956_v48 = vpop.f32.mrb[113].mxu0  ;;  %v1429_v49 = vpop.f32.mrb[3].mxu1  ;;  %v1742_v56 = vmax.f32 %v1424_v40, 0.0 }
 0x1e8   : > { %v957_v52 = vadd.f32 %v956_v48, %v4346_v61  ;;  %v1430_v53 = vadd.f32 %v1429_v49, %v4580_v33  ;;  %v958_v54 = vpop.f32.mrb[114].mxu0  ;;  %1691 = vmatprep.mubr.bf16.mxu1 %v1176_v42  ;;  %v1743_v63 = vmax.f32 %v1426_v43, 0.0 }
 0x1e9   : > { %v1744_v59 = vmax.f32 %v1428_v47, 0.0  ;;  %v959_v60 = vadd.f32 %v958_v54, %v4340_v58  ;;  %v960_v62 = vpop.f32.mrb[115].mxu0  ;;  %1692 = vmatmul.mubr.bf16.gmra.mrb[108].mxu1 %v1175_v39  ;;  %v1105_v3 = vmax.f32 %v955_v46, 0.0 }
 0x1ea   : > { %v1745_v0 = vmax.f32 %v1430_v53, 0.0  ;;  %v961_v1 = vadd.f32 %v960_v62, %v4346_v61  ;;  %v1106_v6 = vmax.f32 %v957_v52, 0.0 }
 0x1eb   : > { %v1870_v4 = vpack.c.bf16 %v1744_v59, %v1742_v56  ;;  %v1107_v5 = vmax.f32 %v959_v60, 0.0 }
 0x1ec   : > { %v1108_v7 = vmax.f32 %v961_v1, 0.0  ;;  %v1433_v8 = vpop.f32.mrb[4].mxu1  ;;  %v1871_v9 = vpack.c.bf16 %v1745_v0, %v1743_v63 }
 0x1ed   : > { %v1177_v10 = vpack.c.bf16 %v1107_v5, %v1105_v3  ;;  %v1434_v11 = vadd.f32 %v1433_v8, %v4576_v31  ;;  %v1435_v12 = vpop.f32.mrb[5].mxu1 }
 0x1ee   : > { %v1178_v13 = vpack.c.bf16 %v1108_v7, %v1106_v6  ;;  %v1436_v14 = vadd.f32 %v1435_v12, %v4580_v33  ;;  %v964_v15 = vpop.f32.mrb[116].mxu0  ;;  %v1437_v16 = vpop.f32.mrb[6].mxu1  ;;  %2170 = vmatprep.mubr.bf16.mxu0 %v1871_v9 }
 0x1ef   : > { %v965_v17 = vadd.f32 %v964_v15, %v4340_v58  ;;  %v1438_v18 = vadd.f32 %v1437_v16, %v4576_v31  ;;  %v966_v19 = vpop.f32.mrb[117].mxu0  ;;  %v1439_v20 = vpop.f32.mrb[7].mxu1  ;;  %2171 = vmatmul.mubr.bf16.vlgmr.msra.gmra.mrb[128].mxu0 %v1870_v4  ;;  %v1746_v24 = vmax.f32 %v1434_v11, 0.0 }
 0x1f0   : > { %v967_v21 = vadd.f32 %v966_v19, %v4346_v61  ;;  %v1440_v22 = vadd.f32 %v1439_v20, %v4580_v33  ;;  %v968_v23 = vpop.f32.mrb[118].mxu0  ;;  %1701 = vmatprep.mubr.bf16.mxu1 %v1178_v13  ;;  %v1747_v28 = vmax.f32 %v1436_v14, 0.0 }
 0x1f1   : > { %v1748_v25 = vmax.f32 %v1438_v18, 0.0  ;;  %v969_v26 = vadd.f32 %v968_v23, %v4340_v58  ;;  %v970_v27 = vpop.f32.mrb[119].mxu0  ;;  %1702 = vmatmul.mubr.bf16.gmra.mrb[112].mxu1 %v1177_v10  ;;  %v1109_v32 = vmax.f32 %v965_v17, 0.0 }
 0x1f2   : > { %v1749_v29 = vmax.f32 %v1440_v22, 0.0  ;;  %v971_v30 = vadd.f32 %v970_v27, %v4346_v61  ;;  %v1110_v36 = vmax.f32 %v967_v21, 0.0 }
 0x1f3   : > { %v1872_v34 = vpack.c.bf16 %v1748_v25, %v1746_v24  ;;  %v1111_v35 = vmax.f32 %v969_v26, 0.0 }
 0x1f4   : > { %v1873_v37 = vpack.c.bf16 %v1749_v29, %v1747_v28  ;;  %v1112_v38 = vmax.f32 %v971_v30, 0.0  ;;  %v1443_v39 = vpop.f32.mrb[8].mxu1 }
 0x1f5   : > { %v1179_v40 = vpack.c.bf16 %v1111_v35, %v1109_v32  ;;  %v1444_v41 = vadd.f32 %v1443_v39, %v4576_v31  ;;  %v1445_v42 = vpop.f32.mrb[9].mxu1 }
 0x1f6   : > { %v1180_v43 = vpack.c.bf16 %v1112_v38, %v1110_v36  ;;  %v1446_v44 = vadd.f32 %v1445_v42, %v4580_v33  ;;  %v974_v45 = vpop.f32.mrb[120].mxu0  ;;  %v1447_v46 = vpop.f32.mrb[10].mxu1  ;;  %2180 = vmatprep.mubr.bf16.mxu0 %v1873_v37 }
 0x1f7   : > { %v975_v47 = vadd.f32 %v974_v45, %v4340_v58  ;;  %v1448_v48 = vadd.f32 %v1447_v46, %v4576_v31  ;;  %v976_v49 = vpop.f32.mrb[121].mxu0  ;;  %v1449_v52 = vpop.f32.mrb[11].mxu1  ;;  %2181 = vmatmul.mubr.bf16.gmra.mrb[132].mxu0 %v1872_v34  ;;  %v1750_v59 = vmax.f32 %v1444_v41, 0.0 }
 0x1f8   : > { %v977_v53 = vadd.f32 %v976_v49, %v4346_v61  ;;  %v1450_v54 = vadd.f32 %v1449_v52, %v4580_v33  ;;  %v978_v56 = vpop.f32.mrb[122].mxu0  ;;  %1711 = vmatprep.mubr.bf16.mxu1 %v1180_v43  ;;  %v1751_v0 = vmax.f32 %v1446_v44, 0.0 }
 0x1f9   : > { %v1752_v60 = vmax.f32 %v1448_v48, 0.0  ;;  %v979_v62 = vadd.f32 %v978_v56, %v4340_v58  ;;  %v980_v63 = vpop.f32.mrb[123].mxu0  ;;  %1712 = vmatmul.mubr.bf16.gmra.mrb[116].mxu1 %v1179_v40  ;;  %v1113_v4 = vmax.f32 %v975_v47, 0.0 }
 0x1fa   : > { %v1753_v1 = vmax.f32 %v1450_v54, 0.0  ;;  %v981_v3 = vadd.f32 %v980_v63, %v4346_v61  ;;  %v1114_v7 = vmax.f32 %v977_v53, 0.0 }
 0x1fb   : > { %v1874_v5 = vpack.c.bf16 %v1752_v60, %v1750_v59  ;;  %v1115_v6 = vmax.f32 %v979_v62, 0.0  ;;  %v3868_v60 = vld [vmem:[%s5206_s7] sm:$0xff]  }
 0x1fc   : > { %v1875_v8 = vpack.c.bf16 %v1753_v1, %v1751_v0  ;;  %v1116_v9 = vmax.f32 %v981_v3, 0.0  ;;  %v1453_v10 = vpop.f32.mrb[12].mxu1  ;;  %2819 = vmatpush1.bf16.msra.mxu1 %v3868_v60 }
 0x1fd   : > { %v1181_v11 = vpack.c.bf16 %v1115_v6, %v1113_v4  ;;  %v1454_v12 = vadd.f32 %v1453_v10, %v4576_v31  ;;  %v1455_v13 = vpop.f32.mrb[13].mxu1  ;;  %2820 = vmatprep.subr.bf16.mxu1 %v3977_v2  ;;  %v3869_v6 = vld [vmem:[%s5206_s7 + $0x8] sm:$0xff]  }
 0x1fe   : > { %v1182_v14 = vpack.c.bf16 %v1116_v9, %v1114_v7  ;;  %v1456_v15 = vadd.f32 %v1455_v13, %v4580_v33  ;;  %v984_v16 = vpop.f32.mrb[124].mxu0  ;;  %v1457_v17 = vpop.f32.mrb[14].mxu1  ;;  %2190 = vmatprep.mubr.bf16.mxu0 %v1875_v8 }
 0x1ff   : > { %v985_v18 = vadd.f32 %v984_v16, %v4340_v58  ;;  %v1458_v19 = vadd.f32 %v1457_v17, %v4576_v31  ;;  %v986_v20 = vpop.f32.mrb[125].mxu0  ;;  %v1459_v21 = vpop.f32.mrb[15].mxu1  ;;  %2191 = vmatmul.mubr.bf16.gmra.mrb[136].mxu0 %v1874_v5  ;;  %v1754_v25 = vmax.f32 %v1454_v12, 0.0 }
 0x200   : > { %v987_v22 = vadd.f32 %v986_v20, %v4346_v61  ;;  %v1460_v23 = vadd.f32 %v1459_v21, %v4580_v33  ;;  %v988_v24 = vpop.f32.mrb[126].mxu0  ;;  %1721 = vmatprep.mubr.bf16.mxu1 %v1182_v14  ;;  %v1755_v29 = vmax.f32 %v1456_v15, 0.0  ;;  %2821 = vmatpush1.bf16.msra.mxu1 %v3869_v6  ;;  %v3870_v14 = vld [vmem:[%s5206_s7 + $0x10] sm:$0xff]  }
 0x201   : > { %v1756_v26 = vmax.f32 %v1458_v19, 0.0  ;;  %v989_v27 = vadd.f32 %v988_v24, %v4340_v58  ;;  %v990_v28 = vpop.f32.mrb[127].mxu0  ;;  %1722 = vmatmul.mubr.bf16.gmra.mrb[120].mxu1 %v1181_v11  ;;  %v1117_v34 = vmax.f32 %v985_v18, 0.0  ;;  %2822 = vmatprep.subr.bf16.mxu1 %v3977_v2 }
 0x202   : > { %v1757_v30 = vmax.f32 %v1460_v23, 0.0  ;;  %v991_v32 = vadd.f32 %v990_v28, %v4346_v61  ;;  %v1118_v37 = vmax.f32 %v987_v22, 0.0  ;;  %v3871_v22 = vld [vmem:[%s5206_s7 + $0x18] sm:$0xff]  }
 0x203   : > { %v1876_v35 = vpack.c.bf16 %v1756_v26, %v1754_v25  ;;  %v1119_v36 = vmax.f32 %v989_v27, 0.0 }
 0x204   : > { %v1877_v38 = vpack.c.bf16 %v1757_v30, %v1755_v29  ;;  %v1120_v39 = vmax.f32 %v991_v32, 0.0  ;;  %v1463_v40 = vpop.f32.mrb[16].mxu1  ;;  %2823 = vmatpush1.bf16.msra.mxu1 %v3870_v14  ;;  %v3872_v30 = vld [vmem:[%s5206_s7 + $0x20] sm:$0xff]  }
 0x205   : > { %v1183_v41 = vpack.c.bf16 %v1119_v36, %v1117_v34  ;;  %v1464_v42 = vadd.f32 %v1463_v40, %v4576_v31  ;;  %v1465_v43 = vpop.f32.mrb[17].mxu1  ;;  %2824 = vmatprep.subr.bf16.mxu1 %v3977_v2  ;;  %v3873_v40 = vld [vmem:[%s5206_s7 + $0x28] sm:$0xff]  }
 0x206   : > { %v1184_v44 = vpack.c.bf16 %v1120_v39, %v1118_v37  ;;  %v1466_v58 = vadd.f32 %v1465_v43, %v4580_v33  ;;  %v1467_v45 = vpop.f32.mrb[18].mxu1  ;;  %2200 = vmatprep.mubr.bf16.mxu0 %v1877_v38 }
 0x207   : > { %v1468_v46 = vadd.f32 %v1467_v45, %v4576_v31  ;;  %v1469_v47 = vpop.f32.mrb[19].mxu1  ;;  %2201 = vmatmul.mubr.bf16.gmra.mrb[140].mxu0 %v1876_v35  ;;  %v1758_v48 = vmax.f32 %v1464_v42, 0.0 }
 0x208   : > { %v1470_v61 = vadd.f32 %v1469_v47, %v4580_v33  ;;  %1731 = vmatprep.mubr.bf16.mxu1 %v1184_v44  ;;  %v1759_v52 = vmax.f32 %v1466_v58, 0.0  ;;  %2825 = vmatpush1.bf16.msra.mxu1 %v3871_v22  ;;  %v3874_v47 = vld [vmem:[%s5206_s7 + $0x30] sm:$0xff]  }
 0x209   : > { %v1760_v49 = vmax.f32 %v1468_v46, 0.0  ;;  %1732 = vmatmul.mubr.bf16.gmra.mrb[124].mxu1 %v1183_v41  ;;  %2826 = vmatprep.subr.bf16.mxu1 %v3977_v2 }
 0x20a   : > { %v1761_v53 = vmax.f32 %v1470_v61, 0.0 }
 0x20b   : > { %v1878_v54 = vpack.c.bf16 %v1760_v49, %v1758_v48 }
 0x20c   : > { %v1879_v56 = vpack.c.bf16 %v1761_v53, %v1759_v52  ;;  %v1473_v59 = vpop.f32.mrb[20].mxu1  ;;  %2827 = vmatpush1.bf16.msra.mxu1 %v3872_v30 }
 0x20d   : > { %v1474_v62 = vadd.f32 %v1473_v59, %v4576_v31  ;;  %v1475_v63 = vpop.f32.mrb[21].mxu1  ;;  %2828 = vmatprep.subr.bf16.mxu1 %v3977_v2  ;;  %v3875_v59 = vld [vmem:[%s5206_s7 + $0x38] sm:$0xff]  }
 0x20e   : > { %v1476_v0 = vadd.f32 %v1475_v63, %v4580_v33  ;;  %v1477_v1 = vpop.f32.mrb[22].mxu1  ;;  %2210 = vmatprep.mubr.bf16.mxu0 %v1879_v56 }
 0x20f   : > { %v1478_v3 = vadd.f32 %v1477_v1, %v4576_v31  ;;  %v1479_v4 = vpop.f32.mrb[23].mxu1  ;;  %2211 = vmatmul.mubr.bf16.gmra.mrb[144].mxu0 %v1878_v54  ;;  %v1762_v7 = vmax.f32 %v1474_v62, 0.0 }
 0x210   : > { %v1480_v5 = vadd.f32 %v1479_v4, %v4580_v33  ;;  %v1763_v9 = vmax.f32 %v1476_v0, 0.0  ;;  %2829 = vmatpush1.bf16.msra.mxu1 %v3873_v40 }
 0x211   : > { %v1764_v8 = vmax.f32 %v1478_v3, 0.0  ;;  %2830 = vmatprep.subr.bf16.mxu1 %v3977_v2 }
 0x212   : > { %v1765_v10 = vmax.f32 %v1480_v5, 0.0  ;;  %v3876_v5 = vld [vmem:[%s5206_s7 + $0x40] sm:$0xff]  }
 0x213   : > { %v1880_v11 = vpack.c.bf16 %v1764_v8, %v1762_v7 }
 0x214   : > { %v1881_v12 = vpack.c.bf16 %v1765_v10, %v1763_v9  ;;  %v1483_v13 = vpop.f32.mrb[24].mxu1  ;;  %2831 = vmatpush1.bf16.msra.mxu1 %v3874_v47 }
 0x215   : > { %v1484_v15 = vadd.f32 %v1483_v13, %v4576_v31  ;;  %v1485_v16 = vpop.f32.mrb[25].mxu1  ;;  %2832 = vmatprep.subr.bf16.mxu1 %v3977_v2  ;;  %v3877_v13 = vld [vmem:[%s5206_s7 + $0x48] sm:$0xff]  }
 0x216   : > { %v1486_v17 = vadd.f32 %v1485_v16, %v4580_v33  ;;  %v1487_v18 = vpop.f32.mrb[26].mxu1  ;;  %2220 = vmatprep.mubr.bf16.mxu0 %v1881_v12 }
 0x217   : > { %v1488_v19 = vadd.f32 %v1487_v18, %v4576_v31  ;;  %v1489_v20 = vpop.f32.mrb[27].mxu1  ;;  %2221 = vmatmul.mubr.bf16.gmra.mrb[148].mxu0 %v1880_v11  ;;  %v1766_v23 = vmax.f32 %v1484_v15, 0.0 }
 0x218   : > { %v1490_v21 = vadd.f32 %v1489_v20, %v4580_v33  ;;  %v1767_v25 = vmax.f32 %v1486_v17, 0.0  ;;  %2833 = vmatpush1.bf16.msra.mxu1 %v3875_v59 }
 0x219   : > { %v1768_v24 = vmax.f32 %v1488_v19, 0.0  ;;  %2834 = vmatprep.subr.bf16.mxu1 %v3977_v2 }
 0x21a   : > { %v1769_v26 = vmax.f32 %v1490_v21, 0.0  ;;  %v3878_v21 = vld [vmem:[%s5206_s7 + $0x50] sm:$0xff]  }
 0x21b   : > { %v1882_v27 = vpack.c.bf16 %v1768_v24, %v1766_v23 }
 0x21c   : > { %v1883_v28 = vpack.c.bf16 %v1769_v26, %v1767_v25  ;;  %v1493_v29 = vpop.f32.mrb[28].mxu1  ;;  %2835 = vmatpush1.bf16.msra.mxu1 %v3876_v5 }
 0x21d   : > { %v1494_v32 = vadd.f32 %v1493_v29, %v4576_v31  ;;  %v1495_v34 = vpop.f32.mrb[29].mxu1  ;;  %2836 = vmatprep.subr.bf16.mxu1 %v3977_v2  ;;  %v3879_v29 = vld [vmem:[%s5206_s7 + $0x58] sm:$0xff]  }
 0x21e   : > { %v1496_v35 = vadd.f32 %v1495_v34, %v4580_v33  ;;  %v1497_v36 = vpop.f32.mrb[30].mxu1  ;;  %2230 = vmatprep.mubr.bf16.mxu0 %v1883_v28 }
 0x21f   : > { %v1498_v37 = vadd.f32 %v1497_v36, %v4576_v31  ;;  %v1499_v38 = vpop.f32.mrb[31].mxu1  ;;  %2231 = vmatmul.mubr.bf16.gmra.mrb[152].mxu0 %v1882_v27  ;;  %v1770_v41 = vmax.f32 %v1494_v32, 0.0 }
 0x220   : > { %v1500_v39 = vadd.f32 %v1499_v38, %v4580_v33  ;;  %v1771_v43 = vmax.f32 %v1496_v35, 0.0  ;;  %2837 = vmatpush1.bf16.msra.mxu1 %v3877_v13 }
 0x221   : > { %v1772_v42 = vmax.f32 %v1498_v37, 0.0  ;;  %2838 = vmatprep.subr.bf16.mxu1 %v3977_v2 }
 0x222   : > { %v1773_v44 = vmax.f32 %v1500_v39, 0.0  ;;  %v3880_v39 = vld [vmem:[%s5206_s7 + $0x60] sm:$0xff]  }
 0x223   : > { %v1884_v58 = vpack.c.bf16 %v1772_v42, %v1770_v41 }
 0x224   : > { %v1885_v45 = vpack.c.bf16 %v1773_v44, %v1771_v43  ;;  %v1503_v46 = vpop.f32.mrb[32].mxu1  ;;  %2839 = vmatpush1.bf16.msra.mxu1 %v3878_v21 }
 0x225   : > { %v1504_v61 = vadd.f32 %v1503_v46, %v4576_v31  ;;  %v1505_v48 = vpop.f32.mrb[33].mxu1  ;;  %2840 = vmatprep.subr.bf16.mxu1 %v3977_v2  ;;  %v3881_v46 = vld [vmem:[%s5206_s7 + $0x68] sm:$0xff]  }
 0x226   : > { %v1506_v49 = vadd.f32 %v1505_v48, %v4580_v33  ;;  %v1507_v52 = vpop.f32.mrb[34].mxu1  ;;  %2240 = vmatprep.mubr.bf16.mxu0 %v1885_v45 }
 0x227   : > { %v1508_v53 = vadd.f32 %v1507_v52, %v4576_v31  ;;  %v1509_v54 = vpop.f32.mrb[35].mxu1  ;;  %2241 = vmatmul.mubr.bf16.gmra.mrb[156].mxu0 %v1884_v58  ;;  %v1774_v60 = vmax.f32 %v1504_v61, 0.0 }
 0x228   : > { %v1510_v56 = vadd.f32 %v1509_v54, %v4580_v33  ;;  %v1775_v63 = vmax.f32 %v1506_v49, 0.0  ;;  %2841 = vmatpush1.bf16.msra.mxu1 %v3879_v29 }
 0x229   : > { %v1776_v62 = vmax.f32 %v1508_v53, 0.0  ;;  %2842 = vmatprep.subr.bf16.mxu1 %v3977_v2 }
 0x22a   : > { %v1777_v0 = vmax.f32 %v1510_v56, 0.0  ;;  %v3882_v56 = vld [vmem:[%s5206_s7 + $0x70] sm:$0xff]  }
 0x22b   : > { %v1886_v1 = vpack.c.bf16 %v1776_v62, %v1774_v60 }
 0x22c   : > { %v1887_v3 = vpack.c.bf16 %v1777_v0, %v1775_v63  ;;  %v1513_v4 = vpop.f32.mrb[36].mxu1  ;;  %2843 = vmatpush1.bf16.msra.mxu1 %v3880_v39 }
 0x22d   : > { %v1514_v6 = vadd.f32 %v1513_v4, %v4576_v31  ;;  %v1515_v7 = vpop.f32.mrb[37].mxu1  ;;  %2844 = vmatprep.subr.bf16.mxu1 %v3977_v2  ;;  %v3883_v4 = vld [vmem:[%s5206_s7 + $0x78] sm:$0xff]  }
 0x22e   : > { %v1516_v8 = vadd.f32 %v1515_v7, %v4580_v33  ;;  %v1517_v9 = vpop.f32.mrb[38].mxu1  ;;  %2250 = vmatprep.mubr.bf16.mxu0 %v1887_v3 }
 0x22f   : > { %v1518_v10 = vadd.f32 %v1517_v9, %v4576_v31  ;;  %v1519_v11 = vpop.f32.mrb[39].mxu1  ;;  %2251 = vmatmul.mubr.bf16.gmra.mrb[160].mxu0 %v1886_v1  ;;  %v1778_v14 = vmax.f32 %v1514_v6, 0.0 }
 0x230   : > { %v1520_v12 = vadd.f32 %v1519_v11, %v4580_v33  ;;  %v1779_v16 = vmax.f32 %v1516_v8, 0.0  ;;  %2845 = vmatpush1.bf16.msra.mxu1 %v3881_v46 }
 0x231   : > { %v1780_v15 = vmax.f32 %v1518_v10, 0.0  ;;  %2846 = vmatprep.subr.bf16.mxu1 %v3977_v2 }
 0x232   : > { %v1781_v17 = vmax.f32 %v1520_v12, 0.0 }
 0x233   : > { %v1888_v18 = vpack.c.bf16 %v1780_v15, %v1778_v14 }
 0x234   : > { %v1889_v19 = vpack.c.bf16 %v1781_v17, %v1779_v16  ;;  %v1523_v20 = vpop.f32.mrb[40].mxu1  ;;  %2847 = vmatpush1.bf16.msra.mxu1 %v3882_v56 }
 0x235   : > { %v1524_v22 = vadd.f32 %v1523_v20, %v4576_v31  ;;  %v1525_v23 = vpop.f32.mrb[41].mxu1  ;;  %2848 = vmatprep.subr.bf16.mxu1 %v3977_v2 }
 0x236   : > { %v1526_v24 = vadd.f32 %v1525_v23, %v4580_v33  ;;  %v1527_v25 = vpop.f32.mrb[42].mxu1  ;;  %2260 = vmatprep.mubr.bf16.mxu0 %v1889_v19 }
 0x237   : > { %v1528_v26 = vadd.f32 %v1527_v25, %v4576_v31  ;;  %v1529_v27 = vpop.f32.mrb[43].mxu1  ;;  %2261 = vmatmul.mubr.bf16.gmra.mrb[164].mxu0 %v1888_v18  ;;  %v1782_v30 = vmax.f32 %v1524_v22, 0.0 }
 0x238   : > { %v1530_v28 = vadd.f32 %v1529_v27, %v4580_v33  ;;  %v1783_v34 = vmax.f32 %v1526_v24, 0.0  ;;  %2849 = vmatpush1.bf16.msra.mxu1 %v3883_v4 }
 0x239   : > { %v1784_v32 = vmax.f32 %v1528_v26, 0.0 }
 0x23a   : > { %v1785_v35 = vmax.f32 %v1530_v28, 0.0 }
 0x23b   : > { %v1890_v36 = vpack.c.bf16 %v1784_v32, %v1782_v30 }
 0x23c   : > { %v1891_v37 = vpack.c.bf16 %v1785_v35, %v1783_v34  ;;  %v1533_v38 = vpop.f32.mrb[44].mxu1 }
 0x23d   : > { %v1534_v40 = vadd.f32 %v1533_v38, %v4576_v31  ;;  %v1535_v41 = vpop.f32.mrb[45].mxu1 }
 0x23e   : > { %v1536_v42 = vadd.f32 %v1535_v41, %v4580_v33  ;;  %v1537_v43 = vpop.f32.mrb[46].mxu1  ;;  %2270 = vmatprep.mubr.bf16.mxu0 %v1891_v37 }
 0x23f   : > { %v1538_v44 = vadd.f32 %v1537_v43, %v4576_v31  ;;  %v1539_v58 = vpop.f32.mrb[47].mxu1  ;;  %2271 = vmatmul.mubr.bf16.gmra.mrb[168].mxu0 %v1890_v36  ;;  %v1786_v47 = vmax.f32 %v1534_v40, 0.0 }
 0x240   : > { %v1540_v45 = vadd.f32 %v1539_v58, %v4580_v33  ;;  %v1787_v48 = vmax.f32 %v1536_v42, 0.0 }
 0x241   : > { %v1788_v61 = vmax.f32 %v1538_v44, 0.0 }
 0x242   : > { %v1789_v49 = vmax.f32 %v1540_v45, 0.0 }
 0x243   : > { %v1892_v52 = vpack.c.bf16 %v1788_v61, %v1786_v47 }
 0x244   : > { %v1893_v53 = vpack.c.bf16 %v1789_v49, %v1787_v48  ;;  %v1543_v54 = vpop.f32.mrb[48].mxu1 }
 0x245   : > { %v1544_v59 = vadd.f32 %v1543_v54, %v4576_v31  ;;  %v1545_v60 = vpop.f32.mrb[49].mxu1 }
 0x246   : > { %v1546_v62 = vadd.f32 %v1545_v60, %v4580_v33  ;;  %v1547_v63 = vpop.f32.mrb[50].mxu1  ;;  %2280 = vmatprep.mubr.bf16.mxu0 %v1893_v53 }
 0x247   : > { %v1548_v0 = vadd.f32 %v1547_v63, %v4576_v31  ;;  %v1549_v1 = vpop.f32.mrb[51].mxu1  ;;  %2281 = vmatmul.mubr.bf16.gmra.mrb[172].mxu0 %v1892_v52  ;;  %v1790_v5 = vmax.f32 %v1544_v59, 0.0 }
 0x248   : > { %v1550_v3 = vadd.f32 %v1549_v1, %v4580_v33  ;;  %v1791_v7 = vmax.f32 %v1546_v62, 0.0 }
 0x249   : > { %v1792_v6 = vmax.f32 %v1548_v0, 0.0 }
 0x24a   : > { %v1793_v8 = vmax.f32 %v1550_v3, 0.0 }
 0x24b   : > { %v1894_v9 = vpack.c.bf16 %v1792_v6, %v1790_v5 }
 0x24c   : > { %v1895_v10 = vpack.c.bf16 %v1793_v8, %v1791_v7  ;;  %v1553_v11 = vpop.f32.mrb[52].mxu1 }
 0x24d   : > { %v1554_v12 = vadd.f32 %v1553_v11, %v4576_v31  ;;  %v1555_v13 = vpop.f32.mrb[53].mxu1 }
 0x24e   : > { %v1556_v14 = vadd.f32 %v1555_v13, %v4580_v33  ;;  %v1557_v2 = vpop.f32.mrb[54].mxu1  ;;  %2290 = vmatprep.mubr.bf16.mxu0 %v1895_v10 }
 0x24f   : > { %v1558_v15 = vadd.f32 %v1557_v2, %v4576_v31  ;;  %v1559_v16 = vpop.f32.mrb[55].mxu1  ;;  %2291 = vmatmul.mubr.bf16.gmra.mrb[176].mxu0 %v1894_v9  ;;  %v1794_v18 = vmax.f32 %v1554_v12, 0.0 }
 0x250   : > { %v1560_v17 = vadd.f32 %v1559_v16, %v4580_v33  ;;  %v1795_v20 = vmax.f32 %v1556_v14, 0.0 }
 0x251   : > { %v1796_v19 = vmax.f32 %v1558_v15, 0.0 }
 0x252   : > { %v1797_v21 = vmax.f32 %v1560_v17, 0.0 }
 0x253   : > { %v1896_v22 = vpack.c.bf16 %v1796_v19, %v1794_v18 }
 0x254   : > { %v1897_v23 = vpack.c.bf16 %v1797_v21, %v1795_v20  ;;  %v1563_v24 = vpop.f32.mrb[56].mxu1 }
 0x255   : > { %v1564_v25 = vadd.f32 %v1563_v24, %v4576_v31  ;;  %v1565_v26 = vpop.f32.mrb[57].mxu1 }
 0x256   : > { %v1566_v27 = vadd.f32 %v1565_v26, %v4580_v33  ;;  %v1567_v28 = vpop.f32.mrb[58].mxu1  ;;  %2300 = vmatprep.mubr.bf16.mxu0 %v1897_v23 }
 0x257   : > { %v1568_v29 = vadd.f32 %v1567_v28, %v4576_v31  ;;  %v1569_v30 = vpop.f32.mrb[59].mxu1  ;;  %2301 = vmatmul.mubr.bf16.gmra.mrb[180].mxu0 %v1896_v22  ;;  %v1798_v34 = vmax.f32 %v1564_v25, 0.0 }
 0x258   : > { %v1570_v32 = vadd.f32 %v1569_v30, %v4580_v33  ;;  %v1799_v36 = vmax.f32 %v1566_v27, 0.0 }
 0x259   : > { %v1800_v35 = vmax.f32 %v1568_v29, 0.0 }
 0x25a   : > { %v1801_v37 = vmax.f32 %v1570_v32, 0.0 }
 0x25b   : > { %v1898_v38 = vpack.c.bf16 %v1800_v35, %v1798_v34 }
 0x25c   : > { %v1899_v39 = vpack.c.bf16 %v1801_v37, %v1799_v36  ;;  %v1573_v40 = vpop.f32.mrb[60].mxu1 }
 0x25d   : > { %v1574_v41 = vadd.f32 %v1573_v40, %v4576_v31  ;;  %v1575_v42 = vpop.f32.mrb[61].mxu1 }
 0x25e   : > { %v1576_v43 = vadd.f32 %v1575_v42, %v4580_v33  ;;  %v1577_v44 = vpop.f32.mrb[62].mxu1  ;;  %2310 = vmatprep.mubr.bf16.mxu0 %v1899_v39 }
 0x25f   : > { %v1578_v58 = vadd.f32 %v1577_v44, %v4576_v31  ;;  %v1579_v45 = vpop.f32.mrb[63].mxu1  ;;  %2311 = vmatmul.mubr.bf16.gmra.mrb[184].mxu0 %v1898_v38  ;;  %v1802_v47 = vmax.f32 %v1574_v41, 0.0 }
 0x260   : > { %v1580_v46 = vadd.f32 %v1579_v45, %v4580_v33  ;;  %v1803_v48 = vmax.f32 %v1576_v43, 0.0 }
 0x261   : > { %v1804_v61 = vmax.f32 %v1578_v58, 0.0 }
 0x262   : > { %v1805_v49 = vmax.f32 %v1580_v46, 0.0 }
 0x263   : > { %v1900_v52 = vpack.c.bf16 %v1804_v61, %v1802_v47 }
 0x264   : > { %v1901_v53 = vpack.c.bf16 %v1805_v49, %v1803_v48  ;;  %v1583_v54 = vpop.f32.mrb[64].mxu1 }
 0x265   : > { %v1584_v56 = vadd.f32 %v1583_v54, %v4576_v31  ;;  %v1585_v59 = vpop.f32.mrb[65].mxu1 }
 0x266   : > { %v1586_v60 = vadd.f32 %v1585_v59, %v4580_v33  ;;  %v1587_v62 = vpop.f32.mrb[66].mxu1  ;;  %2320 = vmatprep.mubr.bf16.mxu0 %v1901_v53 }
 0x267   : > { %v1588_v63 = vadd.f32 %v1587_v62, %v4576_v31  ;;  %v1589_v0 = vpop.f32.mrb[67].mxu1  ;;  %2321 = vmatmul.mubr.bf16.gmra.mrb[188].mxu0 %v1900_v52  ;;  %v1806_v3 = vmax.f32 %v1584_v56, 0.0 }
 0x268   : > { %v1590_v1 = vadd.f32 %v1589_v0, %v4580_v33  ;;  %v1807_v5 = vmax.f32 %v1586_v60, 0.0 }
 0x269   : > { %v1808_v4 = vmax.f32 %v1588_v63, 0.0 }
 0x26a   : > { %v1809_v6 = vmax.f32 %v1590_v1, 0.0 }
 0x26b   : > { %v1902_v7 = vpack.c.bf16 %v1808_v4, %v1806_v3 }
 0x26c   : > { %v1903_v8 = vpack.c.bf16 %v1809_v6, %v1807_v5  ;;  %v1593_v9 = vpop.f32.mrb[68].mxu1 }
 0x26d   : > { %v1594_v10 = vadd.f32 %v1593_v9, %v4576_v31  ;;  %v1595_v11 = vpop.f32.mrb[69].mxu1 }
 0x26e   : > { %v1596_v12 = vadd.f32 %v1595_v11, %v4580_v33  ;;  %v1597_v13 = vpop.f32.mrb[70].mxu1  ;;  %2330 = vmatprep.mubr.bf16.mxu0 %v1903_v8 }
 0x26f   : > { %v1598_v14 = vadd.f32 %v1597_v13, %v4576_v31  ;;  %v1599_v2 = vpop.f32.mrb[71].mxu1  ;;  %2331 = vmatmul.mubr.bf16.gmra.mrb[192].mxu0 %v1902_v7  ;;  %v1810_v16 = vmax.f32 %v1594_v10, 0.0 }
 0x270   : > { %v1600_v15 = vadd.f32 %v1599_v2, %v4580_v33  ;;  %v1811_v18 = vmax.f32 %v1596_v12, 0.0 }
 0x271   : > { %v1812_v17 = vmax.f32 %v1598_v14, 0.0 }
 0x272   : > { %v1813_v19 = vmax.f32 %v1600_v15, 0.0 }
 0x273   : > { %v1904_v20 = vpack.c.bf16 %v1812_v17, %v1810_v16 }
 0x274   : > { %v1905_v21 = vpack.c.bf16 %v1813_v19, %v1811_v18  ;;  %v1603_v22 = vpop.f32.mrb[72].mxu1 }
 0x275   : > { %v1604_v23 = vadd.f32 %v1603_v22, %v4576_v31  ;;  %v1605_v24 = vpop.f32.mrb[73].mxu1 }
 0x276   : > { %v1606_v25 = vadd.f32 %v1605_v24, %v4580_v33  ;;  %v1607_v26 = vpop.f32.mrb[74].mxu1  ;;  %2340 = vmatprep.mubr.bf16.mxu0 %v1905_v21 }
 0x277   : > { %v1608_v27 = vadd.f32 %v1607_v26, %v4576_v31  ;;  %v1609_v28 = vpop.f32.mrb[75].mxu1  ;;  %2341 = vmatmul.mubr.bf16.gmra.mrb[196].mxu0 %v1904_v20  ;;  %v1814_v30 = vmax.f32 %v1604_v23, 0.0 }
 0x278   : > { %v1610_v29 = vadd.f32 %v1609_v28, %v4580_v33  ;;  %v1815_v34 = vmax.f32 %v1606_v25, 0.0 }
 0x279   : > { %v1816_v32 = vmax.f32 %v1608_v27, 0.0 }
 0x27a   : > { %v1817_v35 = vmax.f32 %v1610_v29, 0.0 }
 0x27b   : > { %v1906_v36 = vpack.c.bf16 %v1816_v32, %v1814_v30 }
 0x27c   : > { %v1907_v37 = vpack.c.bf16 %v1817_v35, %v1815_v34  ;;  %v1613_v38 = vpop.f32.mrb[76].mxu1 }
 0x27d   : > { %v1614_v39 = vadd.f32 %v1613_v38, %v4576_v31  ;;  %v1615_v40 = vpop.f32.mrb[77].mxu1 }
 0x27e   : > { %v1616_v41 = vadd.f32 %v1615_v40, %v4580_v33  ;;  %v1617_v42 = vpop.f32.mrb[78].mxu1  ;;  %2350 = vmatprep.mubr.bf16.mxu0 %v1907_v37 }
 0x27f   : > { %v1618_v43 = vadd.f32 %v1617_v42, %v4576_v31  ;;  %v1619_v44 = vpop.f32.mrb[79].mxu1  ;;  %2351 = vmatmul.mubr.bf16.gmra.mrb[200].mxu0 %v1906_v36  ;;  %v1818_v45 = vmax.f32 %v1614_v39, 0.0 }
 0x280   : > { %v1620_v58 = vadd.f32 %v1619_v44, %v4580_v33  ;;  %v1819_v47 = vmax.f32 %v1616_v41, 0.0 }
 0x281   : > { %v1820_v46 = vmax.f32 %v1618_v43, 0.0 }
 0x282   : > { %v1821_v61 = vmax.f32 %v1620_v58, 0.0 }
 0x283   : > { %v1908_v48 = vpack.c.bf16 %v1820_v46, %v1818_v45 }
 0x284   : > { %v1909_v49 = vpack.c.bf16 %v1821_v61, %v1819_v47  ;;  %v1623_v52 = vpop.f32.mrb[80].mxu1 }
 0x285   : > { %v1624_v53 = vadd.f32 %v1623_v52, %v4576_v31  ;;  %v1625_v54 = vpop.f32.mrb[81].mxu1 }
 0x286   : > { %v1626_v56 = vadd.f32 %v1625_v54, %v4580_v33  ;;  %v1627_v59 = vpop.f32.mrb[82].mxu1  ;;  %2360 = vmatprep.mubr.bf16.mxu0 %v1909_v49 }
 0x287   : > { %v1628_v60 = vadd.f32 %v1627_v59, %v4576_v31  ;;  %v1629_v62 = vpop.f32.mrb[83].mxu1  ;;  %2361 = vmatmul.mubr.bf16.gmra.mrb[204].mxu0 %v1908_v48  ;;  %v1822_v0 = vmax.f32 %v1624_v53, 0.0 }
 0x288   : > { %v1630_v63 = vadd.f32 %v1629_v62, %v4580_v33  ;;  %v1823_v3 = vmax.f32 %v1626_v56, 0.0 }
 0x289   : > { %v1824_v1 = vmax.f32 %v1628_v60, 0.0 }
 0x28a   : > { %v1825_v4 = vmax.f32 %v1630_v63, 0.0 }
 0x28b   : > { %v1910_v5 = vpack.c.bf16 %v1824_v1, %v1822_v0 }
 0x28c   : > { %v1911_v6 = vpack.c.bf16 %v1825_v4, %v1823_v3  ;;  %v1633_v7 = vpop.f32.mrb[84].mxu1 }
 0x28d   : > { %v1634_v8 = vadd.f32 %v1633_v7, %v4576_v31  ;;  %v1635_v9 = vpop.f32.mrb[85].mxu1 }
 0x28e   : > { %v1636_v10 = vadd.f32 %v1635_v9, %v4580_v33  ;;  %v1637_v11 = vpop.f32.mrb[86].mxu1  ;;  %2370 = vmatprep.mubr.bf16.mxu0 %v1911_v6 }
 0x28f   : > { %v1638_v12 = vadd.f32 %v1637_v11, %v4576_v31  ;;  %v1639_v13 = vpop.f32.mrb[87].mxu1  ;;  %2371 = vmatmul.mubr.bf16.gmra.mrb[208].mxu0 %v1910_v5  ;;  %v1826_v2 = vmax.f32 %v1634_v8, 0.0 }
 0x290   : > { %v1640_v14 = vadd.f32 %v1639_v13, %v4580_v33  ;;  %v1827_v16 = vmax.f32 %v1636_v10, 0.0 }
 0x291   : > { %v1828_v15 = vmax.f32 %v1638_v12, 0.0 }
 0x292   : > { %v1829_v17 = vmax.f32 %v1640_v14, 0.0 }
 0x293   : > { %v1912_v18 = vpack.c.bf16 %v1828_v15, %v1826_v2 }
 0x294   : > { %v1913_v19 = vpack.c.bf16 %v1829_v17, %v1827_v16  ;;  %v1643_v20 = vpop.f32.mrb[88].mxu1 }
 0x295   : > { %v1644_v21 = vadd.f32 %v1643_v20, %v4576_v31  ;;  %v1645_v22 = vpop.f32.mrb[89].mxu1 }
 0x296   : > { %v1646_v23 = vadd.f32 %v1645_v22, %v4580_v33  ;;  %v1647_v24 = vpop.f32.mrb[90].mxu1  ;;  %2380 = vmatprep.mubr.bf16.mxu0 %v1913_v19 }
 0x297   : > { %v1648_v25 = vadd.f32 %v1647_v24, %v4576_v31  ;;  %v1649_v26 = vpop.f32.mrb[91].mxu1  ;;  %2381 = vmatmul.mubr.bf16.gmra.mrb[212].mxu0 %v1912_v18  ;;  %v1830_v28 = vmax.f32 %v1644_v21, 0.0 }
 0x298   : > { %v1650_v27 = vadd.f32 %v1649_v26, %v4580_v33  ;;  %v1831_v30 = vmax.f32 %v1646_v23, 0.0 }
 0x299   : > { %v1832_v29 = vmax.f32 %v1648_v25, 0.0 }
 0x29a   : > { %v1833_v32 = vmax.f32 %v1650_v27, 0.0 }
 0x29b   : > { %v1914_v34 = vpack.c.bf16 %v1832_v29, %v1830_v28 }
 0x29c   : > { %v1915_v35 = vpack.c.bf16 %v1833_v32, %v1831_v30  ;;  %v1653_v36 = vpop.f32.mrb[92].mxu1 }
 0x29d   : > { %v1654_v37 = vadd.f32 %v1653_v36, %v4576_v31  ;;  %v1655_v38 = vpop.f32.mrb[93].mxu1 }
 0x29e   : > { %v1656_v39 = vadd.f32 %v1655_v38, %v4580_v33  ;;  %v1657_v40 = vpop.f32.mrb[94].mxu1  ;;  %2390 = vmatprep.mubr.bf16.mxu0 %v1915_v35  ;;  %v1966_v35 = vld [vmem:[%s5205_s6] sm:$0x3] }
 0x29f   : > { %v1658_v41 = vadd.f32 %v1657_v40, %v4576_v31  ;;  %v1659_v42 = vpop.f32.mrb[95].mxu1  ;;  %2391 = vmatmul.mubr.bf16.gmra.mrb[216].mxu0 %v1914_v34  ;;  %v1834_v44 = vmax.f32 %v1654_v37, 0.0 }
 0x2a0   : > { %v1660_v43 = vadd.f32 %v1659_v42, %v4580_v33  ;;  %v1835_v45 = vmax.f32 %v1656_v39, 0.0  ;;  %v4776_v42 = vrot.slane %v1966_v35, %v4330_v55 }
 0x2a1   : > { %v1836_v58 = vmax.f32 %v1658_v41, 0.0 }
 0x2a2   : > { %v1837_v46 = vmax.f32 %v1660_v43, 0.0 }
 0x2a3   : > { %v1916_v47 = vpack.c.bf16 %v1836_v58, %v1834_v44  ;;  %v4780_v44 = vrot.slane %v1966_v35, %v4336_v57 }
 0x2a4   : > { %v1917_v61 = vpack.c.bf16 %v1837_v46, %v1835_v45  ;;  %v1663_v48 = vpop.f32.mrb[96].mxu1 }
 0x2a5   : > { %v1664_v49 = vadd.f32 %v1663_v48, %v4576_v31  ;;  %v1665_v52 = vpop.f32.mrb[97].mxu1 }
 0x2a6   : > { %v1666_v53 = vadd.f32 %v1665_v52, %v4580_v33  ;;  %v1667_v54 = vpop.f32.mrb[98].mxu1  ;;  %2400 = vmatprep.mubr.bf16.mxu0 %v1917_v61 }
 0x2a7   : > { %v1668_v56 = vadd.f32 %v1667_v54, %v4576_v31  ;;  %v1669_v59 = vpop.f32.mrb[99].mxu1  ;;  %2401 = vmatmul.mubr.bf16.gmra.mrb[220].mxu0 %v1916_v47  ;;  %v1838_v62 = vmax.f32 %v1664_v49, 0.0 }
 0x2a8   : > { %v1670_v60 = vadd.f32 %v1669_v59, %v4580_v33  ;;  %v1839_v0 = vmax.f32 %v1666_v53, 0.0 }
 0x2a9   : > { %v1840_v63 = vmax.f32 %v1668_v56, 0.0 }
 0x2aa   : > { %v1841_v1 = vmax.f32 %v1670_v60, 0.0 }
 0x2ab   : > { %v1918_v3 = vpack.c.bf16 %v1840_v63, %v1838_v62 }
 0x2ac   : > { %v1919_v4 = vpack.c.bf16 %v1841_v1, %v1839_v0  ;;  %v1673_v5 = vpop.f32.mrb[100].mxu1 }
 0x2ad   : > { %v1674_v6 = vadd.f32 %v1673_v5, %v4576_v31  ;;  %v1675_v7 = vpop.f32.mrb[101].mxu1 }
 0x2ae   : > { %v1676_v8 = vadd.f32 %v1675_v7, %v4580_v33  ;;  %v1677_v9 = vpop.f32.mrb[102].mxu1  ;;  %2410 = vmatprep.mubr.bf16.mxu0 %v1919_v4 }
 0x2af   : > { %v1678_v10 = vadd.f32 %v1677_v9, %v4576_v31  ;;  %v1679_v11 = vpop.f32.mrb[103].mxu1  ;;  %2411 = vmatmul.mubr.bf16.gmra.mrb[224].mxu0 %v1918_v3  ;;  %v1842_v13 = vmax.f32 %v1674_v6, 0.0 }
 0x2b0   : > { %v1680_v12 = vadd.f32 %v1679_v11, %v4580_v33  ;;  %v1843_v2 = vmax.f32 %v1676_v8, 0.0 }
 0x2b1   : > { %v1844_v14 = vmax.f32 %v1678_v10, 0.0 }
 0x2b2   : > { %v1845_v15 = vmax.f32 %v1680_v12, 0.0 }
 0x2b3   : > { %v1920_v16 = vpack.c.bf16 %v1844_v14, %v1842_v13 }
 0x2b4   : > { %v1921_v17 = vpack.c.bf16 %v1845_v15, %v1843_v2  ;;  %v1683_v18 = vpop.f32.mrb[104].mxu1 }
 0x2b5   : > { %v1684_v19 = vadd.f32 %v1683_v18, %v4576_v31  ;;  %v1685_v20 = vpop.f32.mrb[105].mxu1 }
 0x2b6   : > { %v1686_v21 = vadd.f32 %v1685_v20, %v4580_v33  ;;  %v1687_v22 = vpop.f32.mrb[106].mxu1  ;;  %2420 = vmatprep.mubr.bf16.mxu0 %v1921_v17 }
 0x2b7   : > { %v1688_v23 = vadd.f32 %v1687_v22, %v4576_v31  ;;  %v1689_v24 = vpop.f32.mrb[107].mxu1  ;;  %2421 = vmatmul.mubr.bf16.gmra.mrb[228].mxu0 %v1920_v16  ;;  %v1846_v26 = vmax.f32 %v1684_v19, 0.0 }
 0x2b8   : > { %v1690_v25 = vadd.f32 %v1689_v24, %v4580_v33  ;;  %v1847_v28 = vmax.f32 %v1686_v21, 0.0 }
 0x2b9   : > { %v1848_v27 = vmax.f32 %v1688_v23, 0.0 }
 0x2ba   : > { %v1849_v29 = vmax.f32 %v1690_v25, 0.0 }
 0x2bb   : > { %v1922_v30 = vpack.c.bf16 %v1848_v27, %v1846_v26 }
 0x2bc   : > { %v1923_v32 = vpack.c.bf16 %v1849_v29, %v1847_v28  ;;  %v1693_v34 = vpop.f32.mrb[108].mxu1 }
 0x2bd   : > { %v1694_v36 = vadd.f32 %v1693_v34, %v4576_v31  ;;  %v1695_v37 = vpop.f32.mrb[109].mxu1 }
 0x2be   : > { %v1696_v38 = vadd.f32 %v1695_v37, %v4580_v33  ;;  %v1697_v39 = vpop.f32.mrb[110].mxu1  ;;  %2430 = vmatprep.mubr.bf16.mxu0 %v1923_v32 }
 0x2bf   : > { %v1698_v40 = vadd.f32 %v1697_v39, %v4576_v31  ;;  %v1699_v41 = vpop.f32.mrb[111].mxu1  ;;  %2431 = vmatmul.mubr.bf16.gmra.mrb[232].mxu0 %v1922_v30  ;;  %v1850_v58 = vmax.f32 %v1694_v36, 0.0 }
 0x2c0   : > { %v1700_v43 = vadd.f32 %v1699_v41, %v4580_v33  ;;  %v1851_v46 = vmax.f32 %v1696_v38, 0.0 }
 0x2c1   : > { %v1852_v45 = vmax.f32 %v1698_v40, 0.0 }
 0x2c2   : > { %v1853_v47 = vmax.f32 %v1700_v43, 0.0  ;;  %v2172_v61 = vpop.f32.mrb[128].mxu0 }
 0x2c3   : > { %v1924_v48 = vpack.c.bf16 %v1852_v45, %v1850_v58  ;;  %v2173_v49 = vadd.f32 %v2172_v61, %v4776_v42  ;;  %v2174_v52 = vpop.f32.mrb[129].mxu0 }
 0x2c4   : > { %v1925_v53 = vpack.c.bf16 %v1853_v47, %v1851_v46  ;;  %v2175_v54 = vadd.f32 %v2174_v52, %v4780_v44  ;;  %v1703_v56 = vpop.f32.mrb[112].mxu1  ;;  %v2176_v55 = vpop.f32.mrb[130].mxu0 }
 0x2c5   : > { %v1704_v59 = vadd.f32 %v1703_v56, %v4576_v31  ;;  %v2177_v60 = vadd.f32 %v2176_v55, %v4776_v42  ;;  %v1705_v57 = vpop.f32.mrb[113].mxu1  ;;  %v2178_v62 = vpop.f32.mrb[131].mxu0  ;;  %v2491_v3 = vmax.f32 %v2173_v49, 0.0 }
 0x2c6   : > { %v1706_v63 = vadd.f32 %v1705_v57, %v4580_v33  ;;  %v2179_v0 = vadd.f32 %v2178_v62, %v4780_v44  ;;  %v1707_v1 = vpop.f32.mrb[114].mxu1  ;;  %2440 = vmatprep.mubr.bf16.mxu0 %v1925_v53  ;;  %v2492_v7 = vmax.f32 %v2175_v54, 0.0 }
 0x2c7   : > { %v2493_v4 = vmax.f32 %v2177_v60, 0.0  ;;  %v1708_v5 = vadd.f32 %v1707_v1, %v4576_v31  ;;  %v1709_v6 = vpop.f32.mrb[115].mxu1  ;;  %2441 = vmatmul.mubr.bf16.gmra.mrb[236].mxu0 %v1924_v48  ;;  %v1854_v10 = vmax.f32 %v1704_v59, 0.0 }
 0x2c8   : > { %v2494_v8 = vmax.f32 %v2179_v0, 0.0  ;;  %v1710_v9 = vadd.f32 %v1709_v6, %v4580_v33  ;;  %v1855_v13 = vmax.f32 %v1706_v63, 0.0 }
 0x2c9   : > { %v2619_v11 = vpack.c.bf16 %v2493_v4, %v2491_v3  ;;  %v1856_v12 = vmax.f32 %v1708_v5, 0.0 }
 0x2ca   : > { %v2620_v14 = vpack.c.bf16 %v2494_v8, %v2492_v7  ;;  %v1857_v2 = vmax.f32 %v1710_v9, 0.0  ;;  %v2182_v15 = vpop.f32.mrb[132].mxu0 }
 0x2cb   : > { %v1926_v16 = vpack.c.bf16 %v1856_v12, %v1854_v10  ;;  %v2183_v17 = vadd.f32 %v2182_v15, %v4776_v42  ;;  %v2184_v18 = vpop.f32.mrb[133].mxu0 }
 0x2cc   : > { %v1927_v19 = vpack.c.bf16 %v1857_v2, %v1855_v13  ;;  %v2185_v20 = vadd.f32 %v2184_v18, %v4780_v44  ;;  %v1713_v21 = vpop.f32.mrb[116].mxu1  ;;  %v2186_v22 = vpop.f32.mrb[134].mxu0  ;;  %2850 = vmatprep.mubr.bf16.mxu1 %v2620_v14 }
 0x2cd   : > { %v1714_v23 = vadd.f32 %v1713_v21, %v4576_v31  ;;  %v2187_v24 = vadd.f32 %v2186_v22, %v4776_v42  ;;  %v1715_v25 = vpop.f32.mrb[117].mxu1  ;;  %v2188_v26 = vpop.f32.mrb[135].mxu0  ;;  %2851 = vmatmul.mubr.bf16.vlgmr.msra.gmra.mrb[128].mxu1 %v2619_v11  ;;  %v2495_v30 = vmax.f32 %v2183_v17, 0.0 }
 0x2ce   : > { %v1716_v27 = vadd.f32 %v1715_v25, %v4580_v33  ;;  %v2189_v28 = vadd.f32 %v2188_v26, %v4780_v44  ;;  %v1717_v29 = vpop.f32.mrb[118].mxu1  ;;  %2450 = vmatprep.mubr.bf16.mxu0 %v1927_v19  ;;  %v2496_v36 = vmax.f32 %v2185_v20, 0.0 }
 0x2cf   : > { %v2497_v32 = vmax.f32 %v2187_v24, 0.0  ;;  %v1718_v34 = vadd.f32 %v1717_v29, %v4576_v31  ;;  %v1719_v35 = vpop.f32.mrb[119].mxu1  ;;  %2451 = vmatmul.mubr.bf16.gmra.mrb[240].mxu0 %v1926_v16  ;;  %v1858_v39 = vmax.f32 %v1714_v23, 0.0 }
 0x2d0   : > { %v2498_v37 = vmax.f32 %v2189_v28, 0.0  ;;  %v1720_v38 = vadd.f32 %v1719_v35, %v4580_v33  ;;  %v1859_v43 = vmax.f32 %v1716_v27, 0.0 }
 0x2d1   : > { %v2621_v40 = vpack.c.bf16 %v2497_v32, %v2495_v30  ;;  %v1860_v41 = vmax.f32 %v1718_v34, 0.0 }
 0x2d2   : > { %v2622_v58 = vpack.c.bf16 %v2498_v37, %v2496_v36  ;;  %v1861_v45 = vmax.f32 %v1720_v38, 0.0  ;;  %v2192_v46 = vpop.f32.mrb[136].mxu0 }
 0x2d3   : > { %v1928_v47 = vpack.c.bf16 %v1860_v41, %v1858_v39  ;;  %v2193_v61 = vadd.f32 %v2192_v46, %v4776_v42  ;;  %v2194_v48 = vpop.f32.mrb[137].mxu0 }
 0x2d4   : > { %v1929_v49 = vpack.c.bf16 %v1861_v45, %v1859_v43  ;;  %v2195_v52 = vadd.f32 %v2194_v48, %v4780_v44  ;;  %v1723_v53 = vpop.f32.mrb[120].mxu1  ;;  %v2196_v54 = vpop.f32.mrb[138].mxu0  ;;  %2858 = vmatprep.mubr.bf16.mxu1 %v2622_v58 }
 0x2d5   : > { %v1724_v56 = vadd.f32 %v1723_v53, %v4576_v31  ;;  %v2197_v55 = vadd.f32 %v2196_v54, %v4776_v42  ;;  %v1725_v59 = vpop.f32.mrb[121].mxu1  ;;  %v2198_v60 = vpop.f32.mrb[139].mxu0  ;;  %2859 = vmatmul.mubr.bf16.gmra.mrb[132].mxu1 %v2621_v40  ;;  %v2499_v0 = vmax.f32 %v2193_v61, 0.0 }
 0x2d6   : > { %v1726_v57 = vadd.f32 %v1725_v59, %v4580_v33  ;;  %v2199_v62 = vadd.f32 %v2198_v60, %v4780_v44  ;;  %v1727_v63 = vpop.f32.mrb[122].mxu1  ;;  %2460 = vmatprep.mubr.bf16.mxu0 %v1929_v49  ;;  %v2500_v5 = vmax.f32 %v2195_v52, 0.0 }
 0x2d7   : > { %v2501_v1 = vmax.f32 %v2197_v55, 0.0  ;;  %v1728_v3 = vadd.f32 %v1727_v63, %v4576_v31  ;;  %v1729_v4 = vpop.f32.mrb[123].mxu1  ;;  %2461 = vmatmul.mubr.bf16.gmra.mrb[244].mxu0 %v1928_v47  ;;  %v1862_v8 = vmax.f32 %v1724_v56, 0.0 }
 0x2d8   : > { %v2502_v6 = vmax.f32 %v2199_v62, 0.0  ;;  %v1730_v7 = vadd.f32 %v1729_v4, %v4580_v33  ;;  %v1863_v11 = vmax.f32 %v1726_v57, 0.0 }
 0x2d9   : > { %v2623_v9 = vpack.c.bf16 %v2501_v1, %v2499_v0  ;;  %v1864_v10 = vmax.f32 %v1728_v3, 0.0 }
 0x2da   : > { %v2624_v12 = vpack.c.bf16 %v2502_v6, %v2500_v5  ;;  %v1865_v13 = vmax.f32 %v1730_v7, 0.0  ;;  %v2202_v14 = vpop.f32.mrb[140].mxu0 }
 0x2db   : > { %v1930_v2 = vpack.c.bf16 %v1864_v10, %v1862_v8  ;;  %v2203_v15 = vadd.f32 %v2202_v14, %v4776_v42  ;;  %v2204_v16 = vpop.f32.mrb[141].mxu0 }
 0x2dc   : > { %v1931_v17 = vpack.c.bf16 %v1865_v13, %v1863_v11  ;;  %v2205_v18 = vadd.f32 %v2204_v16, %v4780_v44  ;;  %v1733_v19 = vpop.f32.mrb[124].mxu1  ;;  %v2206_v20 = vpop.f32.mrb[142].mxu0  ;;  %2866 = vmatprep.mubr.bf16.mxu1 %v2624_v12 }
 0x2dd   : > { %v1734_v21 = vadd.f32 %v1733_v19, %v4576_v31  ;;  %v2207_v22 = vadd.f32 %v2206_v20, %v4776_v42  ;;  %v1735_v23 = vpop.f32.mrb[125].mxu1  ;;  %v2208_v24 = vpop.f32.mrb[143].mxu0  ;;  %2867 = vmatmul.mubr.bf16.gmra.mrb[136].mxu1 %v2623_v9  ;;  %v2503_v28 = vmax.f32 %v2203_v15, 0.0 }
 0x2de   : > { %v1736_v25 = vadd.f32 %v1735_v23, %v4580_v33  ;;  %v2209_v26 = vadd.f32 %v2208_v24, %v4780_v44  ;;  %v1737_v27 = vpop.f32.mrb[126].mxu1  ;;  %2470 = vmatprep.mubr.bf16.mxu0 %v1931_v17  ;;  %v2504_v34 = vmax.f32 %v2205_v18, 0.0 }
 0x2df   : > { %v2505_v29 = vmax.f32 %v2207_v22, 0.0  ;;  %v1738_v30 = vadd.f32 %v1737_v27, %v4576_v31  ;;  %v1739_v32 = vpop.f32.mrb[127].mxu1  ;;  %2471 = vmatmul.mubr.bf16.gmra.mrb[248].mxu0 %v1930_v2  ;;  %v1866_v37 = vmax.f32 %v1734_v21, 0.0 }
 0x2e0   : > { %v2506_v35 = vmax.f32 %v2209_v26, 0.0  ;;  %v1740_v36 = vadd.f32 %v1739_v32, %v4580_v33  ;;  %v1867_v40 = vmax.f32 %v1736_v25, 0.0 }
 0x2e1   : > { %v2625_v38 = vpack.c.bf16 %v2505_v29, %v2503_v28  ;;  %v1868_v39 = vmax.f32 %v1738_v30, 0.0 }
 0x2e2   : > { %v2626_v41 = vpack.c.bf16 %v2506_v35, %v2504_v34  ;;  %v1869_v43 = vmax.f32 %v1740_v36, 0.0  ;;  %v2212_v58 = vpop.f32.mrb[144].mxu0 }
 0x2e3   : > { %v1932_v45 = vpack.c.bf16 %v1868_v39, %v1866_v37  ;;  %v2213_v46 = vadd.f32 %v2212_v58, %v4776_v42  ;;  %v2214_v47 = vpop.f32.mrb[145].mxu0 }
 0x2e4   : > { %v1933_v61 = vpack.c.bf16 %v1869_v43, %v1867_v40  ;;  %v2215_v31 = vadd.f32 %v2214_v47, %v4780_v44  ;;  %v2216_v48 = vpop.f32.mrb[146].mxu0  ;;  %2874 = vmatprep.mubr.bf16.mxu1 %v2626_v41 }
 0x2e5   : > { %v2217_v49 = vadd.f32 %v2216_v48, %v4776_v42  ;;  %v2218_v52 = vpop.f32.mrb[147].mxu0  ;;  %2875 = vmatmul.mubr.bf16.gmra.mrb[140].mxu1 %v2625_v38  ;;  %v2507_v53 = vmax.f32 %v2213_v46, 0.0 }
 0x2e6   : > { %v2219_v33 = vadd.f32 %v2218_v52, %v4780_v44  ;;  %2480 = vmatprep.mubr.bf16.mxu0 %v1933_v61  ;;  %v2508_v56 = vmax.f32 %v2215_v31, 0.0 }
 0x2e7   : > { %v2509_v54 = vmax.f32 %v2217_v49, 0.0  ;;  %2481 = vmatmul.mubr.bf16.gmra.mrb[252].mxu0 %v1932_v45 }
 0x2e8   : > { %v2510_v55 = vmax.f32 %v2219_v33, 0.0 }
 0x2e9   : > { %v2627_v59 = vpack.c.bf16 %v2509_v54, %v2507_v53 }
 0x2ea   : > { %v2628_v60 = vpack.c.bf16 %v2510_v55, %v2508_v56  ;;  %v2222_v57 = vpop.f32.mrb[148].mxu0 }
 0x2eb   : > { %v2223_v62 = vadd.f32 %v2222_v57, %v4776_v42  ;;  %v2224_v63 = vpop.f32.mrb[149].mxu0 }
 0x2ec   : > { %v2225_v0 = vadd.f32 %v2224_v63, %v4780_v44  ;;  %v2226_v1 = vpop.f32.mrb[150].mxu0  ;;  %2882 = vmatprep.mubr.bf16.mxu1 %v2628_v60 }
 0x2ed   : > { %v2227_v3 = vadd.f32 %v2226_v1, %v4776_v42  ;;  %v2228_v4 = vpop.f32.mrb[151].mxu0  ;;  %2883 = vmatmul.mubr.bf16.gmra.mrb[144].mxu1 %v2627_v59  ;;  %v2511_v6 = vmax.f32 %v2223_v62, 0.0 }
 0x2ee   : > { %v2229_v5 = vadd.f32 %v2228_v4, %v4780_v44  ;;  %v2512_v8 = vmax.f32 %v2225_v0, 0.0 }
 0x2ef   : > { %v2513_v7 = vmax.f32 %v2227_v3, 0.0 }
 0x2f0   : > { %v2514_v9 = vmax.f32 %v2229_v5, 0.0 }
 0x2f1   : > { %v2629_v10 = vpack.c.bf16 %v2513_v7, %v2511_v6 }
 0x2f2   : > { %v2630_v11 = vpack.c.bf16 %v2514_v9, %v2512_v8  ;;  %v2232_v12 = vpop.f32.mrb[152].mxu0 }
 0x2f3   : > { %v2233_v13 = vadd.f32 %v2232_v12, %v4776_v42  ;;  %v2234_v14 = vpop.f32.mrb[153].mxu0 }
 0x2f4   : > { %v2235_v2 = vadd.f32 %v2234_v14, %v4780_v44  ;;  %v2236_v15 = vpop.f32.mrb[154].mxu0  ;;  %2890 = vmatprep.mubr.bf16.mxu1 %v2630_v11 }
 0x2f5   : > { %v2237_v16 = vadd.f32 %v2236_v15, %v4776_v42  ;;  %v2238_v17 = vpop.f32.mrb[155].mxu0  ;;  %2891 = vmatmul.mubr.bf16.gmra.mrb[148].mxu1 %v2629_v10  ;;  %v2515_v19 = vmax.f32 %v2233_v13, 0.0 }
 0x2f6   : > { %v2239_v18 = vadd.f32 %v2238_v17, %v4780_v44  ;;  %v2516_v21 = vmax.f32 %v2235_v2, 0.0 }
 0x2f7   : > { %v2517_v20 = vmax.f32 %v2237_v16, 0.0 }
 0x2f8   : > { %v2518_v22 = vmax.f32 %v2239_v18, 0.0 }
 0x2f9   : > { %v2631_v23 = vpack.c.bf16 %v2517_v20, %v2515_v19 }
 0x2fa   : > { %v2632_v24 = vpack.c.bf16 %v2518_v22, %v2516_v21  ;;  %v2242_v25 = vpop.f32.mrb[156].mxu0 }
 0x2fb   : > { %v2243_v26 = vadd.f32 %v2242_v25, %v4776_v42  ;;  %v2244_v27 = vpop.f32.mrb[157].mxu0 }
 0x2fc   : > { %v2245_v28 = vadd.f32 %v2244_v27, %v4780_v44  ;;  %v2246_v29 = vpop.f32.mrb[158].mxu0  ;;  %2898 = vmatprep.mubr.bf16.mxu1 %v2632_v24 }
 0x2fd   : > { %v2247_v30 = vadd.f32 %v2246_v29, %v4776_v42  ;;  %v2248_v32 = vpop.f32.mrb[159].mxu0  ;;  %2899 = vmatmul.mubr.bf16.gmra.mrb[152].mxu1 %v2631_v23  ;;  %v2519_v35 = vmax.f32 %v2243_v26, 0.0 }
 0x2fe   : > { %v2249_v34 = vadd.f32 %v2248_v32, %v4780_v44  ;;  %v2520_v37 = vmax.f32 %v2245_v28, 0.0 }
 0x2ff   : > { %v2521_v36 = vmax.f32 %v2247_v30, 0.0 }
 0x300   : > { %v2522_v38 = vmax.f32 %v2249_v34, 0.0 }
 0x301   : > { %v2633_v39 = vpack.c.bf16 %v2521_v36, %v2519_v35 }
 0x302   : > { %v2634_v40 = vpack.c.bf16 %v2522_v38, %v2520_v37  ;;  %v2252_v41 = vpop.f32.mrb[160].mxu0 }
 0x303   : > { %v2253_v43 = vadd.f32 %v2252_v41, %v4776_v42  ;;  %v2254_v58 = vpop.f32.mrb[161].mxu0 }
 0x304   : > { %v2255_v45 = vadd.f32 %v2254_v58, %v4780_v44  ;;  %v2256_v46 = vpop.f32.mrb[162].mxu0  ;;  %2906 = vmatprep.mubr.bf16.mxu1 %v2634_v40 }
 0x305   : > { %v2257_v47 = vadd.f32 %v2256_v46, %v4776_v42  ;;  %v2258_v61 = vpop.f32.mrb[163].mxu0  ;;  %2907 = vmatmul.mubr.bf16.gmra.mrb[156].mxu1 %v2633_v39  ;;  %v2523_v48 = vmax.f32 %v2253_v43, 0.0 }
 0x306   : > { %v2259_v31 = vadd.f32 %v2258_v61, %v4780_v44  ;;  %v2524_v52 = vmax.f32 %v2255_v45, 0.0 }
 0x307   : > { %v2525_v49 = vmax.f32 %v2257_v47, 0.0 }
 0x308   : > { %v2526_v33 = vmax.f32 %v2259_v31, 0.0 }
 0x309   : > { %v2635_v53 = vpack.c.bf16 %v2525_v49, %v2523_v48 }
 0x30a   : > { %v2636_v54 = vpack.c.bf16 %v2526_v33, %v2524_v52  ;;  %v2262_v56 = vpop.f32.mrb[164].mxu0 }
 0x30b   : > { %v2263_v55 = vadd.f32 %v2262_v56, %v4776_v42  ;;  %v2264_v59 = vpop.f32.mrb[165].mxu0 }
 0x30c   : > { %v2265_v60 = vadd.f32 %v2264_v59, %v4780_v44  ;;  %v2266_v57 = vpop.f32.mrb[166].mxu0  ;;  %2914 = vmatprep.mubr.bf16.mxu1 %v2636_v54 }
 0x30d   : > { %v2267_v62 = vadd.f32 %v2266_v57, %v4776_v42  ;;  %v2268_v63 = vpop.f32.mrb[167].mxu0  ;;  %2915 = vmatmul.mubr.bf16.gmra.mrb[160].mxu1 %v2635_v53  ;;  %v2527_v1 = vmax.f32 %v2263_v55, 0.0 }
 0x30e   : > { %v2269_v0 = vadd.f32 %v2268_v63, %v4780_v44  ;;  %v2528_v4 = vmax.f32 %v2265_v60, 0.0 }
 0x30f   : > { %v2529_v3 = vmax.f32 %v2267_v62, 0.0 }
 0x310   : > { %v2530_v5 = vmax.f32 %v2269_v0, 0.0 }
 0x311   : > { %v2637_v6 = vpack.c.bf16 %v2529_v3, %v2527_v1 }
 0x312   : > { %v2638_v7 = vpack.c.bf16 %v2530_v5, %v2528_v4  ;;  %v2272_v8 = vpop.f32.mrb[168].mxu0 }
 0x313   : > { %v2273_v9 = vadd.f32 %v2272_v8, %v4776_v42  ;;  %v2274_v10 = vpop.f32.mrb[169].mxu0 }
 0x314   : > { %v2275_v11 = vadd.f32 %v2274_v10, %v4780_v44  ;;  %v2276_v12 = vpop.f32.mrb[170].mxu0  ;;  %2922 = vmatprep.mubr.bf16.mxu1 %v2638_v7 }
 0x315   : > { %v2277_v13 = vadd.f32 %v2276_v12, %v4776_v42  ;;  %v2278_v14 = vpop.f32.mrb[171].mxu0  ;;  %2923 = vmatmul.mubr.bf16.gmra.mrb[164].mxu1 %v2637_v6  ;;  %v2531_v15 = vmax.f32 %v2273_v9, 0.0 }
 0x316   : > { %v2279_v2 = vadd.f32 %v2278_v14, %v4780_v44  ;;  %v2532_v17 = vmax.f32 %v2275_v11, 0.0 }
 0x317   : > { %v2533_v16 = vmax.f32 %v2277_v13, 0.0 }
 0x318   : > { %v2534_v18 = vmax.f32 %v2279_v2, 0.0 }
 0x319   : > { %v2639_v19 = vpack.c.bf16 %v2533_v16, %v2531_v15 }
 0x31a   : > { %v2640_v20 = vpack.c.bf16 %v2534_v18, %v2532_v17  ;;  %v2282_v21 = vpop.f32.mrb[172].mxu0 }
 0x31b   : > { %v2283_v22 = vadd.f32 %v2282_v21, %v4776_v42  ;;  %v2284_v23 = vpop.f32.mrb[173].mxu0 }
 0x31c   : > { %v2285_v24 = vadd.f32 %v2284_v23, %v4780_v44  ;;  %v2286_v25 = vpop.f32.mrb[174].mxu0  ;;  %2930 = vmatprep.mubr.bf16.mxu1 %v2640_v20 }
 0x31d   : > { %v2287_v26 = vadd.f32 %v2286_v25, %v4776_v42  ;;  %v2288_v27 = vpop.f32.mrb[175].mxu0  ;;  %2931 = vmatmul.mubr.bf16.gmra.mrb[168].mxu1 %v2639_v19  ;;  %v2535_v29 = vmax.f32 %v2283_v22, 0.0 }
 0x31e   : > { %v2289_v28 = vadd.f32 %v2288_v27, %v4780_v44  ;;  %v2536_v32 = vmax.f32 %v2285_v24, 0.0 }
 0x31f   : > { %v2537_v30 = vmax.f32 %v2287_v26, 0.0 }
 0x320   : > { %v2538_v34 = vmax.f32 %v2289_v28, 0.0 }
 0x321   : > { %v2641_v35 = vpack.c.bf16 %v2537_v30, %v2535_v29 }
 0x322   : > { %v2642_v36 = vpack.c.bf16 %v2538_v34, %v2536_v32  ;;  %v2292_v37 = vpop.f32.mrb[176].mxu0 }
 0x323   : > { %v2293_v38 = vadd.f32 %v2292_v37, %v4776_v42  ;;  %v2294_v39 = vpop.f32.mrb[177].mxu0 }
 0x324   : > { %v2295_v40 = vadd.f32 %v2294_v39, %v4780_v44  ;;  %v2296_v41 = vpop.f32.mrb[178].mxu0  ;;  %2938 = vmatprep.mubr.bf16.mxu1 %v2642_v36 }
 0x325   : > { %v2297_v43 = vadd.f32 %v2296_v41, %v4776_v42  ;;  %v2298_v58 = vpop.f32.mrb[179].mxu0  ;;  %2939 = vmatmul.mubr.bf16.gmra.mrb[172].mxu1 %v2641_v35  ;;  %v2539_v46 = vmax.f32 %v2293_v38, 0.0 }
 0x326   : > { %v2299_v45 = vadd.f32 %v2298_v58, %v4780_v44  ;;  %v2540_v61 = vmax.f32 %v2295_v40, 0.0 }
 0x327   : > { %v2541_v47 = vmax.f32 %v2297_v43, 0.0 }
 0x328   : > { %v2542_v31 = vmax.f32 %v2299_v45, 0.0 }
 0x329   : > { %v2643_v48 = vpack.c.bf16 %v2541_v47, %v2539_v46 }
 0x32a   : > { %v2644_v49 = vpack.c.bf16 %v2542_v31, %v2540_v61  ;;  %v2302_v52 = vpop.f32.mrb[180].mxu0 }
 0x32b   : > { %v2303_v33 = vadd.f32 %v2302_v52, %v4776_v42  ;;  %v2304_v53 = vpop.f32.mrb[181].mxu0 }
 0x32c   : > { %v2305_v54 = vadd.f32 %v2304_v53, %v4780_v44  ;;  %v2306_v56 = vpop.f32.mrb[182].mxu0  ;;  %2946 = vmatprep.mubr.bf16.mxu1 %v2644_v49 }
 0x32d   : > { %v2307_v55 = vadd.f32 %v2306_v56, %v4776_v42  ;;  %v2308_v59 = vpop.f32.mrb[183].mxu0  ;;  %2947 = vmatmul.mubr.bf16.gmra.mrb[176].mxu1 %v2643_v48  ;;  %v2543_v57 = vmax.f32 %v2303_v33, 0.0 }
 0x32e   : > { %v2309_v60 = vadd.f32 %v2308_v59, %v4780_v44  ;;  %v2544_v63 = vmax.f32 %v2305_v54, 0.0 }
 0x32f   : > { %v2545_v62 = vmax.f32 %v2307_v55, 0.0 }
 0x330   : > { %v2546_v0 = vmax.f32 %v2309_v60, 0.0 }
 0x331   : > { %v2645_v1 = vpack.c.bf16 %v2545_v62, %v2543_v57 }
 0x332   : > { %v2646_v3 = vpack.c.bf16 %v2546_v0, %v2544_v63  ;;  %v2312_v4 = vpop.f32.mrb[184].mxu0 }
 0x333   : > { %v2313_v5 = vadd.f32 %v2312_v4, %v4776_v42  ;;  %v2314_v6 = vpop.f32.mrb[185].mxu0 }
 0x334   : > { %v2315_v7 = vadd.f32 %v2314_v6, %v4780_v44  ;;  %v2316_v8 = vpop.f32.mrb[186].mxu0  ;;  %2954 = vmatprep.mubr.bf16.mxu1 %v2646_v3 }
 0x335   : > { %v2317_v9 = vadd.f32 %v2316_v8, %v4776_v42  ;;  %v2318_v10 = vpop.f32.mrb[187].mxu0  ;;  %2955 = vmatmul.mubr.bf16.gmra.mrb[180].mxu1 %v2645_v1  ;;  %v2547_v12 = vmax.f32 %v2313_v5, 0.0 }
 0x336   : > { %v2319_v11 = vadd.f32 %v2318_v10, %v4780_v44  ;;  %v2548_v14 = vmax.f32 %v2315_v7, 0.0 }
 0x337   : > { %v2549_v13 = vmax.f32 %v2317_v9, 0.0 }
 0x338   : > { %v2550_v2 = vmax.f32 %v2319_v11, 0.0 }
 0x339   : > { %v2647_v15 = vpack.c.bf16 %v2549_v13, %v2547_v12 }
 0x33a   : > { %v2648_v16 = vpack.c.bf16 %v2550_v2, %v2548_v14  ;;  %v2322_v17 = vpop.f32.mrb[188].mxu0 }
 0x33b   : > { %v2323_v18 = vadd.f32 %v2322_v17, %v4776_v42  ;;  %v2324_v19 = vpop.f32.mrb[189].mxu0 }
 0x33c   : > { %v2325_v20 = vadd.f32 %v2324_v19, %v4780_v44  ;;  %v2326_v21 = vpop.f32.mrb[190].mxu0  ;;  %2962 = vmatprep.mubr.bf16.mxu1 %v2648_v16 }
 0x33d   : > { %v2327_v22 = vadd.f32 %v2326_v21, %v4776_v42  ;;  %v2328_v23 = vpop.f32.mrb[191].mxu0  ;;  %2963 = vmatmul.mubr.bf16.gmra.mrb[184].mxu1 %v2647_v15  ;;  %v2551_v25 = vmax.f32 %v2323_v18, 0.0 }
 0x33e   : > { %v2329_v24 = vadd.f32 %v2328_v23, %v4780_v44  ;;  %v2552_v27 = vmax.f32 %v2325_v20, 0.0 }
 0x33f   : > { %v2553_v26 = vmax.f32 %v2327_v22, 0.0 }
 0x340   : > { %v2554_v28 = vmax.f32 %v2329_v24, 0.0 }
 0x341   : > { %v2649_v29 = vpack.c.bf16 %v2553_v26, %v2551_v25 }
 0x342   : > { %v2650_v30 = vpack.c.bf16 %v2554_v28, %v2552_v27  ;;  %v2332_v32 = vpop.f32.mrb[192].mxu0 }
 0x343   : > { %v2333_v34 = vadd.f32 %v2332_v32, %v4776_v42  ;;  %v2334_v35 = vpop.f32.mrb[193].mxu0 }
 0x344   : > { %v2335_v36 = vadd.f32 %v2334_v35, %v4780_v44  ;;  %v2336_v37 = vpop.f32.mrb[194].mxu0  ;;  %2970 = vmatprep.mubr.bf16.mxu1 %v2650_v30 }
 0x345   : > { %v2337_v38 = vadd.f32 %v2336_v37, %v4776_v42  ;;  %v2338_v39 = vpop.f32.mrb[195].mxu0  ;;  %2971 = vmatmul.mubr.bf16.gmra.mrb[188].mxu1 %v2649_v29  ;;  %v2555_v41 = vmax.f32 %v2333_v34, 0.0 }
 0x346   : > { %v2339_v40 = vadd.f32 %v2338_v39, %v4780_v44  ;;  %v2556_v58 = vmax.f32 %v2335_v36, 0.0 }
 0x347   : > { %v2557_v43 = vmax.f32 %v2337_v38, 0.0 }
 0x348   : > { %v2558_v45 = vmax.f32 %v2339_v40, 0.0 }
 0x349   : > { %v2651_v46 = vpack.c.bf16 %v2557_v43, %v2555_v41 }
 0x34a   : > { %v2652_v47 = vpack.c.bf16 %v2558_v45, %v2556_v58  ;;  %v2342_v61 = vpop.f32.mrb[196].mxu0 }
 0x34b   : > { %v2343_v31 = vadd.f32 %v2342_v61, %v4776_v42  ;;  %v2344_v48 = vpop.f32.mrb[197].mxu0 }
 0x34c   : > { %v2345_v49 = vadd.f32 %v2344_v48, %v4780_v44  ;;  %v2346_v52 = vpop.f32.mrb[198].mxu0  ;;  %2978 = vmatprep.mubr.bf16.mxu1 %v2652_v47 }
 0x34d   : > { %v2347_v33 = vadd.f32 %v2346_v52, %v4776_v42  ;;  %v2348_v53 = vpop.f32.mrb[199].mxu0  ;;  %2979 = vmatmul.mubr.bf16.gmra.mrb[192].mxu1 %v2651_v46  ;;  %v2559_v56 = vmax.f32 %v2343_v31, 0.0 }
 0x34e   : > { %v2349_v54 = vadd.f32 %v2348_v53, %v4780_v44  ;;  %v2560_v59 = vmax.f32 %v2345_v49, 0.0 }
 0x34f   : > { %v2561_v55 = vmax.f32 %v2347_v33, 0.0 }
 0x350   : > { %v2562_v60 = vmax.f32 %v2349_v54, 0.0 }
 0x351   : > { %v2653_v57 = vpack.c.bf16 %v2561_v55, %v2559_v56 }
 0x352   : > { %v2654_v62 = vpack.c.bf16 %v2562_v60, %v2560_v59  ;;  %v2352_v63 = vpop.f32.mrb[200].mxu0 }
 0x353   : > { %v2353_v0 = vadd.f32 %v2352_v63, %v4776_v42  ;;  %v2354_v1 = vpop.f32.mrb[201].mxu0 }
 0x354   : > { %v2355_v3 = vadd.f32 %v2354_v1, %v4780_v44  ;;  %v2356_v4 = vpop.f32.mrb[202].mxu0  ;;  %2986 = vmatprep.mubr.bf16.mxu1 %v2654_v62 }
 0x355   : > { %v2357_v5 = vadd.f32 %v2356_v4, %v4776_v42  ;;  %v2358_v6 = vpop.f32.mrb[203].mxu0  ;;  %2987 = vmatmul.mubr.bf16.gmra.mrb[196].mxu1 %v2653_v57  ;;  %v2563_v8 = vmax.f32 %v2353_v0, 0.0 }
 0x356   : > { %v2359_v7 = vadd.f32 %v2358_v6, %v4780_v44  ;;  %v2564_v10 = vmax.f32 %v2355_v3, 0.0 }
 0x357   : > { %v2565_v9 = vmax.f32 %v2357_v5, 0.0 }
 0x358   : > { %v2566_v11 = vmax.f32 %v2359_v7, 0.0 }
 0x359   : > { %v2655_v12 = vpack.c.bf16 %v2565_v9, %v2563_v8 }
 0x35a   : > { %v2656_v13 = vpack.c.bf16 %v2566_v11, %v2564_v10  ;;  %v2362_v14 = vpop.f32.mrb[204].mxu0 }
 0x35b   : > { %v2363_v2 = vadd.f32 %v2362_v14, %v4776_v42  ;;  %v2364_v15 = vpop.f32.mrb[205].mxu0 }
 0x35c   : > { %v2365_v16 = vadd.f32 %v2364_v15, %v4780_v44  ;;  %v2366_v17 = vpop.f32.mrb[206].mxu0  ;;  %2994 = vmatprep.mubr.bf16.mxu1 %v2656_v13 }
 0x35d   : > { %v2367_v18 = vadd.f32 %v2366_v17, %v4776_v42  ;;  %v2368_v19 = vpop.f32.mrb[207].mxu0  ;;  %2995 = vmatmul.mubr.bf16.gmra.mrb[200].mxu1 %v2655_v12  ;;  %v2567_v21 = vmax.f32 %v2363_v2, 0.0 }
 0x35e   : > { %v2369_v20 = vadd.f32 %v2368_v19, %v4780_v44  ;;  %v2568_v23 = vmax.f32 %v2365_v16, 0.0 }
 0x35f   : > { %v2569_v22 = vmax.f32 %v2367_v18, 0.0 }
 0x360   : > { %v2570_v24 = vmax.f32 %v2369_v20, 0.0 }
 0x361   : > { %v2657_v25 = vpack.c.bf16 %v2569_v22, %v2567_v21 }
 0x362   : > { %v2658_v26 = vpack.c.bf16 %v2570_v24, %v2568_v23  ;;  %v2372_v27 = vpop.f32.mrb[208].mxu0 }
 0x363   : > { %v2373_v28 = vadd.f32 %v2372_v27, %v4776_v42  ;;  %v2374_v29 = vpop.f32.mrb[209].mxu0 }
 0x364   : > { %v2375_v30 = vadd.f32 %v2374_v29, %v4780_v44  ;;  %v2376_v32 = vpop.f32.mrb[210].mxu0  ;;  %3002 = vmatprep.mubr.bf16.mxu1 %v2658_v26 }
 0x365   : > { %v2377_v34 = vadd.f32 %v2376_v32, %v4776_v42  ;;  %v2378_v35 = vpop.f32.mrb[211].mxu0  ;;  %3003 = vmatmul.mubr.bf16.gmra.mrb[204].mxu1 %v2657_v25  ;;  %v2571_v37 = vmax.f32 %v2373_v28, 0.0 }
 0x366   : > { %v2379_v36 = vadd.f32 %v2378_v35, %v4780_v44  ;;  %v2572_v39 = vmax.f32 %v2375_v30, 0.0 }
 0x367   : > { %v2573_v38 = vmax.f32 %v2377_v34, 0.0 }
 0x368   : > { %v2574_v40 = vmax.f32 %v2379_v36, 0.0 }
 0x369   : > { %v2659_v41 = vpack.c.bf16 %v2573_v38, %v2571_v37 }
 0x36a   : > { %v2660_v43 = vpack.c.bf16 %v2574_v40, %v2572_v39  ;;  %v2382_v58 = vpop.f32.mrb[212].mxu0 }
 0x36b   : > { %v2383_v45 = vadd.f32 %v2382_v58, %v4776_v42  ;;  %v2384_v46 = vpop.f32.mrb[213].mxu0 }
 0x36c   : > { %v2385_v47 = vadd.f32 %v2384_v46, %v4780_v44  ;;  %v2386_v61 = vpop.f32.mrb[214].mxu0  ;;  %3010 = vmatprep.mubr.bf16.mxu1 %v2660_v43 }
 0x36d   : > { %v2387_v31 = vadd.f32 %v2386_v61, %v4776_v42  ;;  %v2388_v48 = vpop.f32.mrb[215].mxu0  ;;  %3011 = vmatmul.mubr.bf16.gmra.mrb[208].mxu1 %v2659_v41  ;;  %v2575_v52 = vmax.f32 %v2383_v45, 0.0 }
 0x36e   : > { %v2389_v49 = vadd.f32 %v2388_v48, %v4780_v44  ;;  %v2576_v53 = vmax.f32 %v2385_v47, 0.0 }
 0x36f   : > { %v2577_v33 = vmax.f32 %v2387_v31, 0.0 }
 0x370   : > { %v2578_v54 = vmax.f32 %v2389_v49, 0.0 }
 0x371   : > { %v2661_v56 = vpack.c.bf16 %v2577_v33, %v2575_v52 }
 0x372   : > { %v2662_v55 = vpack.c.bf16 %v2578_v54, %v2576_v53  ;;  %v2392_v59 = vpop.f32.mrb[216].mxu0 }
 0x373   : > { %v2393_v60 = vadd.f32 %v2392_v59, %v4776_v42  ;;  %v2394_v57 = vpop.f32.mrb[217].mxu0 }
 0x374   : > { %v2395_v62 = vadd.f32 %v2394_v57, %v4780_v44  ;;  %v2396_v63 = vpop.f32.mrb[218].mxu0  ;;  %3018 = vmatprep.mubr.bf16.mxu1 %v2662_v55 }
 0x375   : > { %v2397_v0 = vadd.f32 %v2396_v63, %v4776_v42  ;;  %v2398_v1 = vpop.f32.mrb[219].mxu0  ;;  %3019 = vmatmul.mubr.bf16.gmra.mrb[212].mxu1 %v2661_v56  ;;  %v2579_v4 = vmax.f32 %v2393_v60, 0.0 }
 0x376   : > { %v2399_v3 = vadd.f32 %v2398_v1, %v4780_v44  ;;  %v2580_v6 = vmax.f32 %v2395_v62, 0.0 }
 0x377   : > { %v2581_v5 = vmax.f32 %v2397_v0, 0.0 }
 0x378   : > { %v2582_v7 = vmax.f32 %v2399_v3, 0.0 }
 0x379   : > { %v2663_v8 = vpack.c.bf16 %v2581_v5, %v2579_v4 }
 0x37a   : > { %v2664_v9 = vpack.c.bf16 %v2582_v7, %v2580_v6  ;;  %v2402_v10 = vpop.f32.mrb[220].mxu0 }
 0x37b   : > { %v2403_v11 = vadd.f32 %v2402_v10, %v4776_v42  ;;  %v2404_v12 = vpop.f32.mrb[221].mxu0 }
 0x37c   : > { %v2405_v13 = vadd.f32 %v2404_v12, %v4780_v44  ;;  %v2406_v14 = vpop.f32.mrb[222].mxu0  ;;  %3026 = vmatprep.mubr.bf16.mxu1 %v2664_v9 }
 0x37d   : > { %v2407_v2 = vadd.f32 %v2406_v14, %v4776_v42  ;;  %v2408_v15 = vpop.f32.mrb[223].mxu0  ;;  %3027 = vmatmul.mubr.bf16.gmra.mrb[216].mxu1 %v2663_v8  ;;  %v2583_v17 = vmax.f32 %v2403_v11, 0.0  ;;  %v4913_v14 = vld [vmem:[%s5207_s8] ss:$0 sm:$0xff] }
 0x37e   : > { %v2409_v16 = vadd.f32 %v2408_v15, %v4780_v44  ;;  %v2584_v19 = vmax.f32 %v2405_v13, 0.0 }
 0x37f   : > { %v2585_v18 = vmax.f32 %v2407_v2, 0.0 }
 0x380   : > { %v2586_v20 = vmax.f32 %v2409_v16, 0.0 }
 0x381   : > { %v2665_v21 = vpack.c.bf16 %v2585_v18, %v2583_v17 }
 0x382   : > { %v2666_v22 = vpack.c.bf16 %v2586_v20, %v2584_v19  ;;  %v2412_v23 = vpop.f32.mrb[224].mxu0 }
 0x383   : > { %v2413_v24 = vadd.f32 %v2412_v23, %v4776_v42  ;;  %v2414_v25 = vpop.f32.mrb[225].mxu0 }
 0x384   : > { %v2415_v26 = vadd.f32 %v2414_v25, %v4780_v44  ;;  %v2416_v27 = vpop.f32.mrb[226].mxu0  ;;  %3034 = vmatprep.mubr.bf16.mxu1 %v2666_v22 }
 0x385   : > { %v2417_v28 = vadd.f32 %v2416_v27, %v4776_v42  ;;  %v2418_v29 = vpop.f32.mrb[227].mxu0  ;;  %3035 = vmatmul.mubr.bf16.gmra.mrb[220].mxu1 %v2665_v21  ;;  %v2587_v32 = vmax.f32 %v2413_v24, 0.0 }
 0x386   : > { %v2419_v30 = vadd.f32 %v2418_v29, %v4780_v44  ;;  %v2588_v35 = vmax.f32 %v2415_v26, 0.0 }
 0x387   : > { %v2589_v34 = vmax.f32 %v2417_v28, 0.0 }
 0x388   : > { %v2590_v36 = vmax.f32 %v2419_v30, 0.0 }
 0x389   : > { %v2667_v37 = vpack.c.bf16 %v2589_v34, %v2587_v32 }
 0x38a   : > { %v2668_v38 = vpack.c.bf16 %v2590_v36, %v2588_v35  ;;  %v2422_v39 = vpop.f32.mrb[228].mxu0 }
 0x38b   : > { %v2423_v40 = vadd.f32 %v2422_v39, %v4776_v42  ;;  %v2424_v41 = vpop.f32.mrb[229].mxu0 }
 0x38c   : > { %v2425_v43 = vadd.f32 %v2424_v41, %v4780_v44  ;;  %v2426_v58 = vpop.f32.mrb[230].mxu0  ;;  %3042 = vmatprep.mubr.bf16.mxu1 %v2668_v38 }
 0x38d   : > { %v2427_v45 = vadd.f32 %v2426_v58, %v4776_v42  ;;  %v2428_v46 = vpop.f32.mrb[231].mxu0  ;;  %3043 = vmatmul.mubr.bf16.gmra.mrb[224].mxu1 %v2667_v37  ;;  %v2591_v61 = vmax.f32 %v2423_v40, 0.0 }
 0x38e   : > { %v2429_v47 = vadd.f32 %v2428_v46, %v4780_v44  ;;  %v2592_v48 = vmax.f32 %v2425_v43, 0.0 }
 0x38f   : > { %v2593_v31 = vmax.f32 %v2427_v45, 0.0 }
 0x390   : > { %v2594_v49 = vmax.f32 %v2429_v47, 0.0 }
 0x391   : > { %v2669_v52 = vpack.c.bf16 %v2593_v31, %v2591_v61 }
 0x392   : > { %v2670_v33 = vpack.c.bf16 %v2594_v49, %v2592_v48  ;;  %v2432_v53 = vpop.f32.mrb[232].mxu0 }
 0x393   : > { %v2433_v54 = vadd.f32 %v2432_v53, %v4776_v42  ;;  %v2434_v56 = vpop.f32.mrb[233].mxu0 }
 0x394   : > { %v2435_v55 = vadd.f32 %v2434_v56, %v4780_v44  ;;  %v2436_v59 = vpop.f32.mrb[234].mxu0  ;;  %3050 = vmatprep.mubr.bf16.mxu1 %v2670_v33 }
 0x395   : > { %v2437_v60 = vadd.f32 %v2436_v59, %v4776_v42  ;;  %v2438_v57 = vpop.f32.mrb[235].mxu0  ;;  %3051 = vmatmul.mubr.bf16.gmra.mrb[228].mxu1 %v2669_v52  ;;  %v2595_v63 = vmax.f32 %v2433_v54, 0.0 }
 0x396   : > { %v2439_v62 = vadd.f32 %v2438_v57, %v4780_v44  ;;  %v2596_v1 = vmax.f32 %v2435_v55, 0.0 }
 0x397   : > { %v2597_v0 = vmax.f32 %v2437_v60, 0.0 }
 0x398   : > { %v2598_v3 = vmax.f32 %v2439_v62, 0.0 }
 0x399   : > { %v2671_v4 = vpack.c.bf16 %v2597_v0, %v2595_v63 }
 0x39a   : > { %v2672_v5 = vpack.c.bf16 %v2598_v3, %v2596_v1  ;;  %v2442_v6 = vpop.f32.mrb[236].mxu0 }
 0x39b   : > { %v2443_v7 = vadd.f32 %v2442_v6, %v4776_v42  ;;  %v2444_v8 = vpop.f32.mrb[237].mxu0 }
 0x39c   : > { %v2445_v9 = vadd.f32 %v2444_v8, %v4780_v44  ;;  %v2446_v10 = vpop.f32.mrb[238].mxu0  ;;  %3058 = vmatprep.mubr.bf16.mxu1 %v2672_v5 }
 0x39d   : > { %v2447_v11 = vadd.f32 %v2446_v10, %v4776_v42  ;;  %v2448_v12 = vpop.f32.mrb[239].mxu0  ;;  %3059 = vmatmul.mubr.bf16.gmra.mrb[232].mxu1 %v2671_v4  ;;  %v2599_v2 = vmax.f32 %v2443_v7, 0.0 }
 0x39e   : > { %v2449_v13 = vadd.f32 %v2448_v12, %v4780_v44  ;;  %v2600_v16 = vmax.f32 %v2445_v9, 0.0 }
 0x39f   : > { %v2601_v15 = vmax.f32 %v2447_v11, 0.0 }
 0x3a0   : > { %v2602_v17 = vmax.f32 %v2449_v13, 0.0  ;;  %v2852_v18 = vpop.f32.mrb[128].mxu1 }
 0x3a1   : > { %v2673_v19 = vpack.c.bf16 %v2601_v15, %v2599_v2  ;;  %v2853_v20 = vadd.f32 %v4913_v14, %v2852_v18  ;;  %v2854_v21 = vpop.f32.mrb[129].mxu1 }
 0x3a2   : > { %v2674_v22 = vpack.c.bf16 %v2602_v17, %v2600_v16  ;;  %v2452_v23 = vpop.f32.mrb[240].mxu0  ;;  %v2855_v24 = vpop.f32.mrb[130].mxu1 }
 0x3a3   : > { %v3171_v25 = vmul.f32 0.01, %v2853_v20  ;;  %v2453_v26 = vadd.f32 %v2452_v23, %v4776_v42  ;;  %v2856_v27 = vadd.f32 %v4913_v14, %v2855_v24  ;;  %v2454_v28 = vpop.f32.mrb[241].mxu0  ;;  %v2857_v29 = vpop.f32.mrb[131].mxu1  ;;  %vm3107_vm1 = vcmp.gt.f32.partialorder %v2853_v20, 0.0 }
 0x3a4   : > { %v2455_v30 = vadd.f32 %v2454_v28, %v4780_v44  ;;  %v2456_v32 = vpop.f32.mrb[242].mxu0  ;;  %3066 = vmatprep.mubr.bf16.mxu1 %v2674_v22 }
 0x3a5   : > { %vm3108_vm2 = vcmp.gt.f32.partialorder %v2856_v27, 0.0  ;;  %v3172_v34 = vmul.f32 0.01, %v2856_v27  ;;  %v2458_v35 = vpop.f32.mrb[243].mxu0  ;;  %3067 = vmatmul.mubr.bf16.gmra.mrb[236].mxu1 %v2673_v19  ;;  %v2457_v36 = vadd.f32 %v2456_v32, %v4776_v42  ;;  %v4921_v38 = vsel %vm3107_vm1, %v2853_v20, %v3171_v25 }
 0x3a6   : > { %v2459_v37 = vadd.f32 %v2458_v35, %v4780_v44  ;;  %v2603_v39 = vmax.f32 %v2453_v26, 0.0  ;;  %v2604_v43 = vmax.f32 %v2455_v30, 0.0 }
 0x3a7   : > { %v4923_v40 = vsel %vm3108_vm2, %v2856_v27, %v3172_v34  ;;  %v2605_v58 = vmax.f32 %v2457_v36, 0.0 }
 0x3a8   : > { %v3300_v41 = vpack.c.bf16 %v4923_v40, %v4921_v38  ;;  %v2606_v45 = vmax.f32 %v2459_v37, 0.0  ;;  %v2860_v46 = vpop.f32.mrb[132].mxu1 }
 0x3a9   : > { %v2861_v47 = vadd.f32 %v4913_v14, %v2860_v46  ;;  %v2862_v61 = vpop.f32.mrb[133].mxu1  ;;  %v2675_v31 = vpack.c.bf16 %v2605_v58, %v2603_v39 }
 0x3aa   : > { %v2676_v48 = vpack.c.bf16 %v2606_v45, %v2604_v43  ;;  %v2462_v49 = vpop.f32.mrb[244].mxu0  ;;  %v2863_v52 = vpop.f32.mrb[134].mxu1 }
 0x3ab   : > { %v3173_v33 = vmul.f32 0.01, %v2861_v47  ;;  %v2463_v53 = vadd.f32 %v2462_v49, %v4776_v42  ;;  %v2864_v54 = vadd.f32 %v4913_v14, %v2863_v52  ;;  %v2464_v56 = vpop.f32.mrb[245].mxu0  ;;  %v2865_v55 = vpop.f32.mrb[135].mxu1  ;;  %vm3109_vm3 = vcmp.gt.f32.partialorder %v2861_v47, 0.0 }
 0x3ac   : > { %v2465_v59 = vadd.f32 %v2464_v56, %v4780_v44  ;;  %v2466_v60 = vpop.f32.mrb[246].mxu0  ;;  %3074 = vmatprep.mubr.bf16.mxu1 %v2676_v48 }
 0x3ad   : > { %vm3110_vm4 = vcmp.gt.f32.partialorder %v2864_v54, 0.0  ;;  %v3174_v57 = vmul.f32 0.01, %v2864_v54  ;;  %v2468_v62 = vpop.f32.mrb[247].mxu0  ;;  %3075 = vmatmul.mubr.bf16.gmra.mrb[240].mxu1 %v2675_v31  ;;  %v2467_v63 = vadd.f32 %v2466_v60, %v4776_v42  ;;  %v4933_v1 = vsel %vm3109_vm3, %v2861_v47, %v3173_v33 }
 0x3ae   : > { %v2469_v0 = vadd.f32 %v2468_v62, %v4780_v44  ;;  %v2607_v3 = vmax.f32 %v2463_v53, 0.0  ;;  %v2608_v6 = vmax.f32 %v2465_v59, 0.0 }
 0x3af   : > { %v4935_v4 = vsel %vm3110_vm4, %v2864_v54, %v3174_v57  ;;  %v2609_v7 = vmax.f32 %v2467_v63, 0.0 }
 0x3b0   : > { %v3301_v5 = vpack.c.bf16 %v4935_v4, %v4933_v1  ;;  %v2610_v8 = vmax.f32 %v2469_v0, 0.0  ;;  %v2868_v9 = vpop.f32.mrb[136].mxu1 }
 0x3b1   : > { %v2869_v10 = vadd.f32 %v4913_v14, %v2868_v9  ;;  %v2870_v11 = vpop.f32.mrb[137].mxu1  ;;  %v2677_v12 = vpack.c.bf16 %v2609_v7, %v2607_v3 }
 0x3b2   : > { %v2678_v13 = vpack.c.bf16 %v2610_v8, %v2608_v6  ;;  %v2472_v2 = vpop.f32.mrb[248].mxu0  ;;  %v2871_v15 = vpop.f32.mrb[138].mxu1 }
 0x3b3   : > { %v3175_v16 = vmul.f32 0.01, %v2869_v10  ;;  %v2473_v17 = vadd.f32 %v2472_v2, %v4776_v42  ;;  %v2872_v18 = vadd.f32 %v4913_v14, %v2871_v15  ;;  %v2474_v19 = vpop.f32.mrb[249].mxu0  ;;  %v2873_v20 = vpop.f32.mrb[139].mxu1  ;;  %vm3111_vm5 = vcmp.gt.f32.partialorder %v2869_v10, 0.0 }
 0x3b4   : > { %v2475_v21 = vadd.f32 %v2474_v19, %v4780_v44  ;;  %v2476_v22 = vpop.f32.mrb[250].mxu0  ;;  %3082 = vmatprep.mubr.bf16.mxu1 %v2678_v13 }
 0x3b5   : > { %vm3112_vm6 = vcmp.gt.f32.partialorder %v2872_v18, 0.0  ;;  %v3176_v23 = vmul.f32 0.01, %v2872_v18  ;;  %v2478_v24 = vpop.f32.mrb[251].mxu0  ;;  %3083 = vmatmul.mubr.bf16.gmra.mrb[244].mxu1 %v2677_v12  ;;  %v2477_v25 = vadd.f32 %v2476_v22, %v4776_v42  ;;  %v4945_v27 = vsel %vm3111_vm5, %v2869_v10, %v3175_v16 }
 0x3b6   : > { %v2479_v26 = vadd.f32 %v2478_v24, %v4780_v44  ;;  %v2611_v28 = vmax.f32 %v2473_v17, 0.0  ;;  %v2612_v32 = vmax.f32 %v2475_v21, 0.0 }
 0x3b7   : > { %v4947_v29 = vsel %vm3112_vm6, %v2872_v18, %v3176_v23  ;;  %v2613_v34 = vmax.f32 %v2477_v25, 0.0 }
 0x3b8   : > { %v3302_v30 = vpack.c.bf16 %v4947_v29, %v4945_v27  ;;  %v2614_v35 = vmax.f32 %v2479_v26, 0.0  ;;  %v2876_v36 = vpop.f32.mrb[140].mxu1 }
 0x3b9   : > { %v2877_v37 = vadd.f32 %v4913_v14, %v2876_v36  ;;  %v2878_v39 = vpop.f32.mrb[141].mxu1  ;;  %v2679_v43 = vpack.c.bf16 %v2613_v34, %v2611_v28 }
 0x3ba   : > { %v2680_v58 = vpack.c.bf16 %v2614_v35, %v2612_v32  ;;  %v2482_v45 = vpop.f32.mrb[252].mxu0  ;;  %v2879_v46 = vpop.f32.mrb[142].mxu1 }
 0x3bb   : > { %v3177_v47 = vmul.f32 0.01, %v2877_v37  ;;  %v2483_v61 = vadd.f32 %v2482_v45, %v4776_v42  ;;  %v2880_v31 = vadd.f32 %v4913_v14, %v2879_v46  ;;  %v2484_v48 = vpop.f32.mrb[253].mxu0  ;;  %v2881_v49 = vpop.f32.mrb[143].mxu1  ;;  %vm3113_vm7 = vcmp.gt.f32.partialorder %v2877_v37, 0.0 }
 0x3bc   : > { %v2485_v52 = vadd.f32 %v2484_v48, %v4780_v44  ;;  %v2486_v33 = vpop.f32.mrb[254].mxu0  ;;  %3090 = vmatprep.mubr.bf16.mxu1 %v2680_v58 }
 0x3bd   : > { %vm3114_vm8 = vcmp.gt.f32.partialorder %v2880_v31, 0.0  ;;  %v3178_v53 = vmul.f32 0.01, %v2880_v31  ;;  %v2488_v54 = vpop.f32.mrb[255].mxu0  ;;  %3091 = vmatmul.mubr.bf16.gmra.mrb[248].mxu1 %v2679_v43  ;;  %v2487_v56 = vadd.f32 %v2486_v33, %v4776_v42  ;;  %v4957_v59 = vsel %vm3113_vm7, %v2877_v37, %v3177_v47 }
 0x3be   : > { %v2489_v55 = vadd.f32 %v2488_v54, %v4780_v44  ;;  %v2615_v60 = vmax.f32 %v2483_v61, 0.0  ;;  %v2616_v63 = vmax.f32 %v2485_v52, 0.0 }
 0x3bf   : > { %v4959_v57 = vsel %vm3114_vm8, %v2880_v31, %v3178_v53  ;;  %v2617_v0 = vmax.f32 %v2487_v56, 0.0 }
 0x3c0   : > { %v3303_v62 = vpack.c.bf16 %v4959_v57, %v4957_v59  ;;  %v2618_v3 = vmax.f32 %v2489_v55, 0.0  ;;  %v2884_v6 = vpop.f32.mrb[144].mxu1 }
 0x3c1   : > { %v2885_v7 = vadd.f32 %v4913_v14, %v2884_v6  ;;  %v2886_v8 = vpop.f32.mrb[145].mxu1  ;;  %v2681_v9 = vpack.c.bf16 %v2617_v0, %v2615_v60 }
 0x3c2   : > { %v2682_v10 = vpack.c.bf16 %v2618_v3, %v2616_v63  ;;  %v2887_v42 = vpop.f32.mrb[146].mxu1 }
 0x3c3   : > { %v3179_v11 = vmul.f32 0.01, %v2885_v7  ;;  %v2888_v44 = vadd.f32 %v4913_v14, %v2887_v42  ;;  %v2889_v12 = vpop.f32.mrb[147].mxu1  ;;  %vm3115_vm9 = vcmp.gt.f32.partialorder %v2885_v7, 0.0 }
 0x3c4   : > { %3098 = vmatprep.mubr.bf16.mxu1 %v2682_v10 }
 0x3c5   : > { %vm3116_vm10 = vcmp.gt.f32.partialorder %v2888_v44, 0.0  ;;  %v3180_v13 = vmul.f32 0.01, %v2888_v44  ;;  %3099 = vmatmul.mubr.bf16.gmra.mrb[252].mxu1 %v2681_v9  ;;  %v4965_v2 = vsel %vm3115_vm9, %v2885_v7, %v3179_v11 }
 0x3c7   : > { %v4967_v15 = vsel %vm3116_vm10, %v2888_v44, %v3180_v13 }
 0x3c8   : > { %v3304_v16 = vpack.c.bf16 %v4967_v15, %v4965_v2  ;;  %v2892_v17 = vpop.f32.mrb[148].mxu1 }
 0x3c9   : > { %v2893_v18 = vadd.f32 %v4913_v14, %v2892_v17  ;;  %v2894_v19 = vpop.f32.mrb[149].mxu1 }
 0x3ca   : > { %v2895_v20 = vpop.f32.mrb[150].mxu1 }
 0x3cb   : > { %v3181_v21 = vmul.f32 0.01, %v2893_v18  ;;  %v2896_v22 = vadd.f32 %v4913_v14, %v2895_v20  ;;  %v2897_v23 = vpop.f32.mrb[151].mxu1  ;;  %vm3117_vm11 = vcmp.gt.f32.partialorder %v2893_v18, 0.0 }
 0x3cd   : > { %vm3118_vm12 = vcmp.gt.f32.partialorder %v2896_v22, 0.0  ;;  %v3182_v24 = vmul.f32 0.01, %v2896_v22  ;;  %v4973_v25 = vsel %vm3117_vm11, %v2893_v18, %v3181_v21 }
 0x3cf   : > { %v4975_v26 = vsel %vm3118_vm12, %v2896_v22, %v3182_v24 }
 0x3d0   : > { %v3305_v28 = vpack.c.bf16 %v4975_v26, %v4973_v25  ;;  %v2900_v32 = vpop.f32.mrb[152].mxu1 }
 0x3d1   : > { %v2901_v34 = vadd.f32 %v4913_v14, %v2900_v32  ;;  %v2902_v35 = vpop.f32.mrb[153].mxu1 }
 0x3d2   : > { %v2903_v36 = vpop.f32.mrb[154].mxu1 }
 0x3d3   : > { %v3183_v37 = vmul.f32 0.01, %v2901_v34  ;;  %v2904_v39 = vadd.f32 %v4913_v14, %v2903_v36  ;;  %v2905_v43 = vpop.f32.mrb[155].mxu1  ;;  %vm3119_vm13 = vcmp.gt.f32.partialorder %v2901_v34, 0.0 }
 0x3d5   : > { %vm3120_vm14 = vcmp.gt.f32.partialorder %v2904_v39, 0.0  ;;  %v3184_v58 = vmul.f32 0.01, %v2904_v39  ;;  %v4981_v45 = vsel %vm3119_vm13, %v2901_v34, %v3183_v37 }
 0x3d7   : > { %v4983_v46 = vsel %vm3120_vm14, %v2904_v39, %v3184_v58 }
 0x3d8   : > { %v3306_v47 = vpack.c.bf16 %v4983_v46, %v4981_v45  ;;  %v2908_v61 = vpop.f32.mrb[156].mxu1  ;;  %v5040_v45 = vld [vmem:[%s5208_s9] sm:$0x1] }
 0x3d9   : > { %v2909_v31 = vadd.f32 %v4913_v14, %v2908_v61  ;;  %v2910_v48 = vpop.f32.mrb[157].mxu1  ;;  %3697 = vmatprep.mubr.bf16.mxu0 %v5040_v45  ;;  %3715 = vmatprep.mubr.bf16.mxu1 %v5040_v45 }
 0x3da   : > { %v2911_v49 = vpop.f32.mrb[158].mxu1 }
 0x3db   : > { %v3185_v52 = vmul.f32 0.01, %v2909_v31  ;;  %v2912_v33 = vadd.f32 %v4913_v14, %v2911_v49  ;;  %v2913_v53 = vpop.f32.mrb[159].mxu1  ;;  %vm3121_vm15 = vcmp.gt.f32.partialorder %v2909_v31, 0.0 }
 0x3dd   : > { %vm3122_vm0 = vcmp.gt.f32.partialorder %v2912_v33, 0.0  ;;  %v3186_v54 = vmul.f32 0.01, %v2912_v33  ;;  %v4989_v56 = vsel %vm3121_vm15, %v2909_v31, %v3185_v52 }
 0x3df   : > { %v4991_v55 = vsel %vm3122_vm0, %v2912_v33, %v3186_v54 }
 0x3e0   : > { %v3307_v60 = vpack.c.bf16 %v4991_v55, %v4989_v56  ;;  %v2916_v63 = vpop.f32.mrb[160].mxu1 }
 0x3e1   : > { %v2917_v0 = vadd.f32 %v4913_v14, %v2916_v63  ;;  %v2918_v3 = vpop.f32.mrb[161].mxu1 }
 0x3e2   : > { %v2919_v6 = vpop.f32.mrb[162].mxu1 }
 0x3e3   : > { %v3187_v7 = vmul.f32 0.01, %v2917_v0  ;;  %v2920_v8 = vadd.f32 %v4913_v14, %v2919_v6  ;;  %v2921_v9 = vpop.f32.mrb[163].mxu1  ;;  %vm3123_vm1 = vcmp.gt.f32.partialorder %v2917_v0, 0.0 }
 0x3e5   : > { %vm3124_vm2 = vcmp.gt.f32.partialorder %v2920_v8, 0.0  ;;  %v3188_v10 = vmul.f32 0.01, %v2920_v8  ;;  %v3251_v42 = vsel %vm3123_vm1, %v2917_v0, %v3187_v7 }
 0x3e7   : > { %v3252_v11 = vsel %vm3124_vm2, %v2920_v8, %v3188_v10 }
 0x3e8   : > { %v2924_v44 = vpop.f32.mrb[164].mxu1  ;;  %v3308_v12 = vpack.c.bf16 %v3252_v11, %v3251_v42 }
 0x3e9   : > { %v2925_v13 = vadd.f32 %v4913_v14, %v2924_v44  ;;  %v2926_v17 = vpop.f32.mrb[165].mxu1 }
 0x3ea   : > { %v2927_v18 = vpop.f32.mrb[166].mxu1  ;;  %3681 = vmatprep.subr.bf16.mxu0 %v3308_v12 }
 0x3eb   : > { %v3189_v19 = vmul.f32 0.01, %v2925_v13  ;;  %v2928_v20 = vadd.f32 %v4913_v14, %v2927_v18  ;;  %v2929_v21 = vpop.f32.mrb[167].mxu1  ;;  %3682 = vmatpush3.bf16.xpose.msra.mxu0 %v3300_v41  ;;  %vm3125_vm3 = vcmp.gt.f32.partialorder %v2925_v13, 0.0 }
 0x3ed   : > { %vm3126_vm4 = vcmp.gt.f32.partialorder %v2928_v20, 0.0  ;;  %v3190_v22 = vmul.f32 0.01, %v2928_v20  ;;  %v3253_v23 = vsel %vm3125_vm3, %v2925_v13, %v3189_v19 }
 0x3ef   : > { %v3254_v24 = vsel %vm3126_vm4, %v2928_v20, %v3190_v22 }
 0x3f0   : > { %v2932_v32 = vpop.f32.mrb[168].mxu1  ;;  %v3309_v34 = vpack.c.bf16 %v3254_v24, %v3253_v23 }
 0x3f1   : > { %v2933_v35 = vadd.f32 %v4913_v14, %v2932_v32  ;;  %v2934_v36 = vpop.f32.mrb[169].mxu1 }
 0x3f2   : > { %v2935_v37 = vpop.f32.mrb[170].mxu1  ;;  %3683 = vmatprep.subr.bf16.mxu0 %v3309_v34 }
 0x3f3   : > { %v3191_v39 = vmul.f32 0.01, %v2933_v35  ;;  %v2936_v43 = vadd.f32 %v4913_v14, %v2935_v37  ;;  %v2937_v58 = vpop.f32.mrb[171].mxu1  ;;  %3684 = vmatpush3.bf16.xpose.msra.mxu0 %v3301_v5  ;;  %vm3127_vm5 = vcmp.gt.f32.partialorder %v2933_v35, 0.0 }
 0x3f5   : > { %vm3128_vm6 = vcmp.gt.f32.partialorder %v2936_v43, 0.0  ;;  %v3192_v38 = vmul.f32 0.01, %v2936_v43  ;;  %v3255_v40 = vsel %vm3127_vm5, %v2933_v35, %v3191_v39 }
 0x3f7   : > { %v3256_v41 = vsel %vm3128_vm6, %v2936_v43, %v3192_v38 }
 0x3f8   : > { %v2940_v61 = vpop.f32.mrb[172].mxu1  ;;  %v3310_v31 = vpack.c.bf16 %v3256_v41, %v3255_v40 }
 0x3f9   : > { %v2941_v48 = vadd.f32 %v4913_v14, %v2940_v61  ;;  %v2942_v49 = vpop.f32.mrb[173].mxu1 }
 0x3fa   : > { %v2943_v52 = vpop.f32.mrb[174].mxu1  ;;  %3685 = vmatprep.subr.bf16.mxu0 %v3310_v31 }
 0x3fb   : > { %v3193_v33 = vmul.f32 0.01, %v2941_v48  ;;  %v2944_v53 = vadd.f32 %v4913_v14, %v2943_v52  ;;  %v2945_v54 = vpop.f32.mrb[175].mxu1  ;;  %3686 = vmatpush3.bf16.xpose.msra.mxu0 %v3302_v30  ;;  %vm3129_vm7 = vcmp.gt.f32.partialorder %v2941_v48, 0.0 }
 0x3fd   : > { %vm3130_vm8 = vcmp.gt.f32.partialorder %v2944_v53, 0.0  ;;  %v3194_v1 = vmul.f32 0.01, %v2944_v53  ;;  %v3257_v4 = vsel %vm3129_vm7, %v2941_v48, %v3193_v33 }
 0x3ff   : > { %v3258_v5 = vsel %vm3130_vm8, %v2944_v53, %v3194_v1 }
 0x400   : > { %v2948_v63 = vpop.f32.mrb[176].mxu1  ;;  %v3311_v0 = vpack.c.bf16 %v3258_v5, %v3257_v4 }
 0x401   : > { %v2949_v3 = vadd.f32 %v4913_v14, %v2948_v63  ;;  %v2950_v6 = vpop.f32.mrb[177].mxu1 }
 0x402   : > { %v2951_v7 = vpop.f32.mrb[178].mxu1  ;;  %3687 = vmatprep.subr.bf16.mxu0 %v3311_v0 }
 0x403   : > { %v3195_v8 = vmul.f32 0.01, %v2949_v3  ;;  %v2952_v9 = vadd.f32 %v4913_v14, %v2951_v7  ;;  %v2953_v10 = vpop.f32.mrb[179].mxu1  ;;  %3688 = vmatpush3.bf16.xpose.msra.mxu0 %v3303_v62  ;;  %vm3131_vm9 = vcmp.gt.f32.partialorder %v2949_v3, 0.0 }
 0x405   : > { %vm3132_vm10 = vcmp.gt.f32.partialorder %v2952_v9, 0.0  ;;  %v3196_v27 = vmul.f32 0.01, %v2952_v9  ;;  %v3259_v29 = vsel %vm3131_vm9, %v2949_v3, %v3195_v8 }
 0x407   : > { %v3260_v30 = vsel %vm3132_vm10, %v2952_v9, %v3196_v27 }
 0x408   : > { %v2956_v42 = vpop.f32.mrb[180].mxu1  ;;  %v3312_v11 = vpack.c.bf16 %v3260_v30, %v3259_v29 }
 0x409   : > { %v2957_v44 = vadd.f32 %v4913_v14, %v2956_v42  ;;  %v2958_v12 = vpop.f32.mrb[181].mxu1 }
 0x40a   : > { %v2959_v13 = vpop.f32.mrb[182].mxu1  ;;  %3689 = vmatprep.subr.bf16.mxu0 %v3312_v11 }
 0x40b   : > { %v3197_v17 = vmul.f32 0.01, %v2957_v44  ;;  %v2960_v18 = vadd.f32 %v4913_v14, %v2959_v13  ;;  %v2961_v19 = vpop.f32.mrb[183].mxu1  ;;  %3690 = vmatpush3.bf16.xpose.msra.mxu0 %v3304_v16  ;;  %vm3133_vm11 = vcmp.gt.f32.partialorder %v2957_v44, 0.0 }
 0x40d   : > { %vm3134_vm12 = vcmp.gt.f32.partialorder %v2960_v18, 0.0  ;;  %v3198_v59 = vmul.f32 0.01, %v2960_v18  ;;  %v3261_v57 = vsel %vm3133_vm11, %v2957_v44, %v3197_v17 }
 0x40f   : > { %v3262_v62 = vsel %vm3134_vm12, %v2960_v18, %v3198_v59 }
 0x410   : > { %v2964_v20 = vpop.f32.mrb[184].mxu1  ;;  %v3313_v21 = vpack.c.bf16 %v3262_v62, %v3261_v57 }
 0x411   : > { %v2965_v22 = vadd.f32 %v4913_v14, %v2964_v20  ;;  %v2966_v23 = vpop.f32.mrb[185].mxu1 }
 0x412   : > { %v2967_v24 = vpop.f32.mrb[186].mxu1  ;;  %3691 = vmatprep.subr.bf16.mxu0 %v3313_v21 }
 0x413   : > { %v3199_v32 = vmul.f32 0.01, %v2965_v22  ;;  %v2968_v34 = vadd.f32 %v4913_v14, %v2967_v24  ;;  %v2969_v35 = vpop.f32.mrb[187].mxu1  ;;  %3692 = vmatpush3.bf16.xpose.msra.mxu0 %v3305_v28  ;;  %vm3135_vm13 = vcmp.gt.f32.partialorder %v2965_v22, 0.0 }
 0x415   : > { %vm3136_vm14 = vcmp.gt.f32.partialorder %v2968_v34, 0.0  ;;  %v3200_v2 = vmul.f32 0.01, %v2968_v34  ;;  %v3263_v15 = vsel %vm3135_vm13, %v2965_v22, %v3199_v32 }
 0x417   : > { %v3264_v16 = vsel %vm3136_vm14, %v2968_v34, %v3200_v2 }
 0x418   : > { %v2972_v36 = vpop.f32.mrb[188].mxu1  ;;  %v3314_v37 = vpack.c.bf16 %v3264_v16, %v3263_v15 }
 0x419   : > { %v2973_v39 = vadd.f32 %v4913_v14, %v2972_v36  ;;  %v2974_v43 = vpop.f32.mrb[189].mxu1 }
 0x41a   : > { %v2975_v58 = vpop.f32.mrb[190].mxu1  ;;  %3693 = vmatprep.subr.bf16.mxu0 %v3314_v37 }
 0x41b   : > { %v3201_v38 = vmul.f32 0.01, %v2973_v39  ;;  %v2976_v40 = vadd.f32 %v4913_v14, %v2975_v58  ;;  %v2977_v41 = vpop.f32.mrb[191].mxu1  ;;  %3694 = vmatpush3.bf16.xpose.msra.mxu0 %v3306_v47  ;;  %vm3137_vm15 = vcmp.gt.f32.partialorder %v2973_v39, 0.0 }
 0x41d   : > { %vm3138_vm0 = vcmp.gt.f32.partialorder %v2976_v40, 0.0  ;;  %v3202_v25 = vmul.f32 0.01, %v2976_v40  ;;  %v3265_v26 = vsel %vm3137_vm15, %v2973_v39, %v3201_v38 }
 0x41f   : > { %v3266_v28 = vsel %vm3138_vm0, %v2976_v40, %v3202_v25 }
 0x420   : > { %v2980_v61 = vpop.f32.mrb[192].mxu1  ;;  %v3315_v31 = vpack.c.bf16 %v3266_v28, %v3265_v26 }
 0x421   : > { %v2981_v48 = vadd.f32 %v4913_v14, %v2980_v61  ;;  %v2982_v49 = vpop.f32.mrb[193].mxu1 }
 0x422   : > { %v2983_v52 = vpop.f32.mrb[194].mxu1  ;;  %3695 = vmatprep.subr.bf16.mxu0 %v3315_v31 }
 0x423   : > { %v3203_v33 = vmul.f32 0.01, %v2981_v48  ;;  %v2984_v53 = vadd.f32 %v4913_v14, %v2983_v52  ;;  %v2985_v54 = vpop.f32.mrb[195].mxu1  ;;  %3696 = vmatpush3.bf16.xpose.msra.mxu0 %v3307_v60  ;;  %vm3139_vm1 = vcmp.gt.f32.partialorder %v2981_v48, 0.0 }
 0x425   : > { %vm3140_vm2 = vcmp.gt.f32.partialorder %v2984_v53, 0.0  ;;  %v3204_v46 = vmul.f32 0.01, %v2984_v53  ;;  %v5044_v47 = vsel %vm3139_vm1, %v2981_v48, %v3203_v33 }
 0x427   : > { %v5046_v1 = vsel %vm3140_vm2, %v2984_v53, %v3204_v46 }
 0x428   : > { %v3316_v56 = vpack.c.bf16 %v5046_v1, %v5044_v47  ;;  %v2988_v55 = vpop.f32.mrb[196].mxu1 }
 0x429   : > { %v2989_v60 = vadd.f32 %v4913_v14, %v2988_v55  ;;  %v2990_v4 = vpop.f32.mrb[197].mxu1 }
 0x42a   : > { %v2991_v5 = vpop.f32.mrb[198].mxu1  ;;  %3698 = vmatmul.mubr.bf16.vlgmr.msra.gmra.mrb[0].mxu0 %v5040_v45 }
 0x42b   : > { %v3205_v63 = vmul.f32 0.01, %v2989_v60  ;;  %v2992_v0 = vadd.f32 %v4913_v14, %v2991_v5  ;;  %v2993_v3 = vpop.f32.mrb[199].mxu1  ;;  %vm3141_vm3 = vcmp.gt.f32.partialorder %v2989_v60, 0.0 }
 0x42d   : > { %vm3142_vm4 = vcmp.gt.f32.partialorder %v2992_v0, 0.0  ;;  %v3206_v6 = vmul.f32 0.01, %v2992_v0  ;;  %v5053_v7 = vsel %vm3141_vm3, %v2989_v60, %v3205_v63 }
 0x42f   : > { %v5055_v8 = vsel %vm3142_vm4, %v2992_v0, %v3206_v6 }
 0x430   : > { %v3317_v9 = vpack.c.bf16 %v5055_v8, %v5053_v7  ;;  %v2996_v10 = vpop.f32.mrb[200].mxu1 }
 0x431   : > { %v2997_v27 = vadd.f32 %v4913_v14, %v2996_v10  ;;  %v2998_v29 = vpop.f32.mrb[201].mxu1 }
 0x432   : > { %v2999_v30 = vpop.f32.mrb[202].mxu1 }
 0x433   : > { %v3207_v42 = vmul.f32 0.01, %v2997_v27  ;;  %v3000_v11 = vadd.f32 %v4913_v14, %v2999_v30  ;;  %v3001_v44 = vpop.f32.mrb[203].mxu1  ;;  %vm3143_vm5 = vcmp.gt.f32.partialorder %v2997_v27, 0.0 }
 0x435   : > { %vm3144_vm6 = vcmp.gt.f32.partialorder %v3000_v11, 0.0  ;;  %v3208_v12 = vmul.f32 0.01, %v3000_v11  ;;  %v5061_v13 = vsel %vm3143_vm5, %v2997_v27, %v3207_v42 }
 0x437   : > { %v5063_v17 = vsel %vm3144_vm6, %v3000_v11, %v3208_v12 }
 0x438   : > { %v3318_v18 = vpack.c.bf16 %v5063_v17, %v5061_v13  ;;  %v3004_v19 = vpop.f32.mrb[204].mxu1 }
 0x439   : > { %v3005_v59 = vadd.f32 %v4913_v14, %v3004_v19  ;;  %v3006_v57 = vpop.f32.mrb[205].mxu1 }
 0x43a   : > { %v3007_v62 = vpop.f32.mrb[206].mxu1 }
 0x43b   : > { %v3209_v20 = vmul.f32 0.01, %v3005_v59  ;;  %v3008_v21 = vadd.f32 %v4913_v14, %v3007_v62  ;;  %v3009_v22 = vpop.f32.mrb[207].mxu1  ;;  %vm3145_vm7 = vcmp.gt.f32.partialorder %v3005_v59, 0.0 }
 0x43d   : > { %vm3146_vm8 = vcmp.gt.f32.partialorder %v3008_v21, 0.0  ;;  %v3210_v23 = vmul.f32 0.01, %v3008_v21  ;;  %v5069_v24 = vsel %vm3145_vm7, %v3005_v59, %v3209_v20 }
 0x43f   : > { %v5071_v32 = vsel %vm3146_vm8, %v3008_v21, %v3210_v23 }
 0x440   : > { %v3319_v34 = vpack.c.bf16 %v5071_v32, %v5069_v24  ;;  %v3012_v35 = vpop.f32.mrb[208].mxu1 }
 0x441   : > { %v3013_v2 = vadd.f32 %v4913_v14, %v3012_v35  ;;  %v3014_v15 = vpop.f32.mrb[209].mxu1 }
 0x442   : > { %v3015_v16 = vpop.f32.mrb[210].mxu1 }
 0x443   : > { %v3211_v36 = vmul.f32 0.01, %v3013_v2  ;;  %v3016_v37 = vadd.f32 %v4913_v14, %v3015_v16  ;;  %v3017_v39 = vpop.f32.mrb[211].mxu1  ;;  %vm3147_vm9 = vcmp.gt.f32.partialorder %v3013_v2, 0.0 }
 0x445   : > { %vm3148_vm10 = vcmp.gt.f32.partialorder %v3016_v37, 0.0  ;;  %v3212_v43 = vmul.f32 0.01, %v3016_v37  ;;  %v5077_v58 = vsel %vm3147_vm9, %v3013_v2, %v3211_v36 }
 0x447   : > { %v5079_v38 = vsel %vm3148_vm10, %v3016_v37, %v3212_v43 }
 0x448   : > { %v3320_v40 = vpack.c.bf16 %v5079_v38, %v5077_v58  ;;  %v3020_v41 = vpop.f32.mrb[212].mxu1 }
 0x449   : > { %v3021_v25 = vadd.f32 %v4913_v14, %v3020_v41  ;;  %v3022_v26 = vpop.f32.mrb[213].mxu1 }
 0x44a   : > { %v3023_v28 = vpop.f32.mrb[214].mxu1 }
 0x44b   : > { %v3213_v61 = vmul.f32 0.01, %v3021_v25  ;;  %v3024_v31 = vadd.f32 %v4913_v14, %v3023_v28  ;;  %v3025_v48 = vpop.f32.mrb[215].mxu1  ;;  %vm3149_vm11 = vcmp.gt.f32.partialorder %v3021_v25, 0.0 }
 0x44d   : > { %vm3150_vm12 = vcmp.gt.f32.partialorder %v3024_v31, 0.0  ;;  %v3214_v49 = vmul.f32 0.01, %v3024_v31  ;;  %v5085_v52 = vsel %vm3149_vm11, %v3021_v25, %v3213_v61 }
 0x44f   : > { %v5087_v33 = vsel %vm3150_vm12, %v3024_v31, %v3214_v49 }
 0x450   : > { %v3321_v53 = vpack.c.bf16 %v5087_v33, %v5085_v52  ;;  %v3028_v54 = vpop.f32.mrb[216].mxu1 }
 0x451   : > { %v3029_v46 = vadd.f32 %v4913_v14, %v3028_v54  ;;  %v3030_v55 = vpop.f32.mrb[217].mxu1 }
 0x452   : > { %v3031_v60 = vpop.f32.mrb[218].mxu1 }
 0x453   : > { %v3215_v4 = vmul.f32 0.01, %v3029_v46  ;;  %v3032_v5 = vadd.f32 %v4913_v14, %v3031_v60  ;;  %v3033_v63 = vpop.f32.mrb[219].mxu1  ;;  %vm3151_vm13 = vcmp.gt.f32.partialorder %v3029_v46, 0.0 }
 0x455   : > { %vm3152_vm14 = vcmp.gt.f32.partialorder %v3032_v5, 0.0  ;;  %v3216_v0 = vmul.f32 0.01, %v3032_v5  ;;  %v5093_v3 = vsel %vm3151_vm13, %v3029_v46, %v3215_v4 }
 0x457   : > { %v5095_v6 = vsel %vm3152_vm14, %v3032_v5, %v3216_v0 }
 0x458   : > { %v3322_v10 = vpack.c.bf16 %v5095_v6, %v5093_v3  ;;  %v3036_v27 = vpop.f32.mrb[220].mxu1 }
 0x459   : > { %v3037_v29 = vadd.f32 %v4913_v14, %v3036_v27  ;;  %v3038_v30 = vpop.f32.mrb[221].mxu1 }
 0x45a   : > { %v3039_v42 = vpop.f32.mrb[222].mxu1 }
 0x45b   : > { %v3217_v11 = vmul.f32 0.01, %v3037_v29  ;;  %v3040_v44 = vadd.f32 %v4913_v14, %v3039_v42  ;;  %v3041_v12 = vpop.f32.mrb[223].mxu1  ;;  %vm3153_vm15 = vcmp.gt.f32.partialorder %v3037_v29, 0.0 }
 0x45d   : > { %vm3154_vm0 = vcmp.gt.f32.partialorder %v3040_v44, 0.0  ;;  %v3218_v19 = vmul.f32 0.01, %v3040_v44  ;;  %v5101_v59 = vsel %vm3153_vm15, %v3037_v29, %v3217_v11 }
 0x45f   : > { %v5103_v57 = vsel %vm3154_vm0, %v3040_v44, %v3218_v19 }
 0x460   : > { %v3323_v62 = vpack.c.bf16 %v5103_v57, %v5101_v59  ;;  %v3044_v20 = vpop.f32.mrb[224].mxu1 }
 0x461   : > { %v3045_v21 = vadd.f32 %v4913_v14, %v3044_v20  ;;  %v3046_v22 = vpop.f32.mrb[225].mxu1 }
 0x462   : > { %v3047_v23 = vpop.f32.mrb[226].mxu1 }
 0x463   : > { %v3219_v35 = vmul.f32 0.01, %v3045_v21  ;;  %v3048_v2 = vadd.f32 %v4913_v14, %v3047_v23  ;;  %v3049_v15 = vpop.f32.mrb[227].mxu1  ;;  %vm3155_vm1 = vcmp.gt.f32.partialorder %v3045_v21, 0.0 }
 0x465   : > { %vm3156_vm2 = vcmp.gt.f32.partialorder %v3048_v2, 0.0  ;;  %v3220_v16 = vmul.f32 0.01, %v3048_v2  ;;  %v3283_v36 = vsel %vm3155_vm1, %v3045_v21, %v3219_v35  ;;  %vm3461_vm1 = vcmp.lt.s32.totalorder %v523_v50, 512 }
 0x467   : > { %v3284_v37 = vsel %vm3156_vm2, %v3048_v2, %v3220_v16 }
 0x468   : > { %v3052_v39 = vpop.f32.mrb[228].mxu1  ;;  %v3324_v43 = vpack.c.bf16 %v3284_v37, %v3283_v36 }
 0x469   : > { %v3053_v41 = vadd.f32 %v4913_v14, %v3052_v39  ;;  %v3054_v25 = vpop.f32.mrb[229].mxu1 }
 0x46a   : > { %v3055_v26 = vpop.f32.mrb[230].mxu1  ;;  %3699 = vmatprep.subr.bf16.mxu1 %v3324_v43 }
 0x46b   : > { %v3221_v28 = vmul.f32 0.01, %v3053_v41  ;;  %v3056_v61 = vadd.f32 %v4913_v14, %v3055_v26  ;;  %3700 = vmatpush3.bf16.xpose.msra.mxu1 %v3316_v56  ;;  %v3057_v31 = vpop.f32.mrb[231].mxu1  ;;  %vm3157_vm3 = vcmp.gt.f32.partialorder %v3053_v41, 0.0 }
 0x46d   : > { %vm3158_vm4 = vcmp.gt.f32.partialorder %v3056_v61, 0.0  ;;  %v3222_v48 = vmul.f32 0.01, %v3056_v61  ;;  %v3285_v49 = vsel %vm3157_vm3, %v3053_v41, %v3221_v28 }
 0x46f   : > { %v3286_v54 = vsel %vm3158_vm4, %v3056_v61, %v3222_v48 }
 0x470   : > { %v3060_v46 = vpop.f32.mrb[232].mxu1  ;;  %v3325_v55 = vpack.c.bf16 %v3286_v54, %v3285_v49 }
 0x471   : > { %v3061_v60 = vadd.f32 %v4913_v14, %v3060_v46  ;;  %v3062_v4 = vpop.f32.mrb[233].mxu1 }
 0x472   : > { %v3063_v5 = vpop.f32.mrb[234].mxu1  ;;  %3701 = vmatprep.subr.bf16.mxu1 %v3325_v55 }
 0x473   : > { %v3223_v63 = vmul.f32 0.01, %v3061_v60  ;;  %v3064_v0 = vadd.f32 %v4913_v14, %v3063_v5  ;;  %3702 = vmatpush3.bf16.xpose.msra.mxu1 %v3317_v9  ;;  %v3065_v47 = vpop.f32.mrb[235].mxu1  ;;  %vm3159_vm5 = vcmp.gt.f32.partialorder %v3061_v60, 0.0 }
 0x475   : > { %vm3160_vm6 = vcmp.gt.f32.partialorder %v3064_v0, 0.0  ;;  %v3224_v1 = vmul.f32 0.01, %v3064_v0  ;;  %v3287_v56 = vsel %vm3159_vm5, %v3061_v60, %v3223_v63 }
 0x477   : > { %v3288_v27 = vsel %vm3160_vm6, %v3064_v0, %v3224_v1 }
 0x478   : > { %v3068_v29 = vpop.f32.mrb[236].mxu1  ;;  %v3326_v30 = vpack.c.bf16 %v3288_v27, %v3287_v56  ;;  %v3892_v27 = vld [vmem:[%s5207_s8] ss:$0 sm:$0xff] }
 0x479   : > { %v3069_v42 = vadd.f32 %v4913_v14, %v3068_v29  ;;  %v3070_v11 = vpop.f32.mrb[237].mxu1 }
 0x47a   : > { %v3071_v44 = vpop.f32.mrb[238].mxu1  ;;  %3703 = vmatprep.subr.bf16.mxu1 %v3326_v30 }
 0x47b   : > { %v3225_v12 = vmul.f32 0.01, %v3069_v42  ;;  %v3072_v19 = vadd.f32 %v4913_v14, %v3071_v44  ;;  %3704 = vmatpush3.bf16.xpose.msra.mxu1 %v3318_v18  ;;  %v3073_v7 = vpop.f32.mrb[239].mxu1  ;;  %vm3161_vm7 = vcmp.gt.f32.partialorder %v3069_v42, 0.0 }
 0x47d   : > { %vm3162_vm8 = vcmp.gt.f32.partialorder %v3072_v19, 0.0  ;;  %v3226_v8 = vmul.f32 0.01, %v3072_v19  ;;  %v3289_v9 = vsel %vm3161_vm7, %v3069_v42, %v3225_v12  ;;  %v3334_v42 = vstv %s3333_s14  ;;  %s3908_s14 = scalar_lea.vmem %s5159_s25, 64 }
 0x47e   : > { %p3909_p9 = scmp.ne.s32.totalorder %s5159_s25, %s3908_s14 }
 0x47f   : > { %v3290_v20 = vsel %vm3162_vm8, %v3072_v19, %v3226_v8  ;;  %v3425_v8 = vstv %s3674_s21  ;;  %s3979_s21 = smov [#allocation5]  }
 0x480   : > { %v3076_v21 = vpop.f32.mrb[240].mxu1  ;;  %v3327_v22 = vpack.c.bf16 %v3290_v20, %v3289_v9  ;;  %p3910_p11 = pnand %p3909_p9, %p4078_p5  ;;  %s3912_s22 = sshll.u32 %s3979_s21, 4  ;;  %s3913_s22 = int_to_ptr.vmem [resolvable:$false] %s3912_s22 }
 0x481   : > { %v3077_v23 = vadd.f32 %v4913_v14, %v3076_v21  ;;  %v3078_v35 = vpop.f32.mrb[241].mxu1  ;;  %s3914_s0 = scalar_lea.vmem %s3913_s22, 128  ;;  %p3915_p13 = scmp.lt.s32.totalorder %s5159_s25, %s3913_s22 }
 0x482   : > { %v3079_v2 = vpop.f32.mrb[242].mxu1  ;;  %3705 = vmatprep.subr.bf16.mxu1 %v3327_v22  ;;  %p3911_p12 = pneg %p3910_p11  ;;  %p3916_p0 = scmp.lt.s32.totalorder %s3914_s0, %s3908_s14 }
 0x483   : > { %v3227_v15 = vmul.f32 0.01, %v3077_v23  ;;  %v3080_v16 = vadd.f32 %v4913_v14, %v3079_v2  ;;  %3706 = vmatpush3.bf16.xpose.msra.mxu1 %v3319_v34  ;;  %v3081_v13 = vpop.f32.mrb[243].mxu1  ;;  %vm3163_vm9 = vcmp.gt.f32.partialorder %v3077_v23, 0.0 }
 0x484   : > { %v3978_v13 = vmov 1966171168   ;;  %p3917_p1 = por %p3916_p0, %p3915_p13 }
 0x485   : > { %vm3164_vm10 = vcmp.gt.f32.partialorder %v3080_v16, 0.0  ;;  %v3228_v17 = vmul.f32 0.01, %v3080_v16  ;;  %v3291_v18 = vsel %vm3163_vm9, %v3077_v23, %v3227_v15 }
 0x486   : > { %p3918_p2 = pnand %p3917_p1, %p3911_p12 }
 0x487   : > { %v3292_v36 = vsel %vm3164_vm10, %v3080_v16, %v3228_v17  ;;  %v3437_v17 = vunpack.c.l.s4 %v3978_v13 }
 0x488   : > { %v3084_v37 = vpop.f32.mrb[244].mxu1  ;;  %v3328_v39 = vpack.c.bf16 %v3292_v36, %v3291_v18 }
 0x489   : > { %v3085_v43 = vadd.f32 %v4913_v14, %v3084_v37  ;;  %v3086_v41 = vpop.f32.mrb[245].mxu1  ;;  %v3438_v18 = vunpack.c.0.s8 %v3437_v17 }
 0x48a   : > { %v3087_v25 = vpop.f32.mrb[246].mxu1  ;;  %3707 = vmatprep.subr.bf16.mxu1 %v3328_v39 }
 0x48b   : > { %v3229_v26 = vmul.f32 0.01, %v3085_v43  ;;  %v3088_v28 = vadd.f32 %v4913_v14, %v3087_v25  ;;  %3708 = vmatpush3.bf16.xpose.msra.mxu1 %v3320_v40  ;;  %v3089_v24 = vpop.f32.mrb[247].mxu1  ;;  %vm3165_vm11 = vcmp.gt.f32.partialorder %v3085_v43, 0.0  ;;  %v3441_v37 = vsub.s32 %v3438_v18, %v4324_v51 }
 0x48d   : > { %vm3166_vm12 = vcmp.gt.f32.partialorder %v3088_v28, 0.0  ;;  %v3230_v32 = vmul.f32 0.01, %v3088_v28  ;;  %v3293_v34 = vsel %vm3165_vm11, %v3085_v43, %v3229_v26 }
 0x48f   : > { %v3294_v61 = vsel %vm3166_vm12, %v3088_v28, %v3230_v32 }
 0x490   : > { %v3092_v31 = vpop.f32.mrb[248].mxu1  ;;  %v3329_v48 = vpack.c.bf16 %v3294_v61, %v3293_v34 }
 0x491   : > { %v3093_v49 = vadd.f32 %v4913_v14, %v3092_v31  ;;  %v3094_v54 = vpop.f32.mrb[249].mxu1 }
 0x492   : > { %v3095_v46 = vpop.f32.mrb[250].mxu1  ;;  %3709 = vmatprep.subr.bf16.mxu1 %v3329_v48 }
 0x493   : > { %v3231_v55 = vmul.f32 0.01, %v3093_v49  ;;  %v3096_v60 = vadd.f32 %v4913_v14, %v3095_v46  ;;  %3710 = vmatpush3.bf16.xpose.msra.mxu1 %v3321_v53  ;;  %v3097_v58 = vpop.f32.mrb[251].mxu1  ;;  %vm3167_vm13 = vcmp.gt.f32.partialorder %v3093_v49, 0.0 }
 0x495   : > { %vm3168_vm14 = vcmp.gt.f32.partialorder %v3096_v60, 0.0  ;;  %v3232_v38 = vmul.f32 0.01, %v3096_v60  ;;  %v3295_v40 = vsel %vm3167_vm13, %v3093_v49, %v3231_v55 }
 0x497   : > { %v3296_v4 = vsel %vm3168_vm14, %v3096_v60, %v3232_v38 }
 0x498   : > { %v3100_v5 = vpop.f32.mrb[252].mxu1  ;;  %v3330_v63 = vpack.c.bf16 %v3296_v4, %v3295_v40 }
 0x499   : > { %v3101_v0 = vadd.f32 %v4913_v14, %v3100_v5  ;;  %v3102_v47 = vpop.f32.mrb[253].mxu1 }
 0x49a   : > { %v3103_v1 = vpop.f32.mrb[254].mxu1  ;;  %3711 = vmatprep.subr.bf16.mxu1 %v3330_v63 }
 0x49b   : > { %v3233_v56 = vmul.f32 0.01, %v3101_v0  ;;  %v3104_v52 = vadd.f32 %v3892_v27, %v3103_v1  ;;  %3712 = vmatpush3.bf16.xpose.msra.mxu1 %v3322_v10  ;;  %v3105_v33 = vpop.f32.mrb[255].mxu1  ;;  %vm3169_vm15 = vcmp.gt.f32.partialorder %v3101_v0, 0.0 }
 0x49d   : > { %vm3170_vm0 = vcmp.gt.f32.partialorder %v3104_v52, 0.0  ;;  %v3234_v53 = vmul.f32 0.01, %v3104_v52  ;;  %v3297_v29 = vsel %vm3169_vm15, %v3101_v0, %v3233_v56 }
 0x49f   : > { %v3298_v30 = vsel %vm3170_vm0, %v3104_v52, %v3234_v53 }
 0x4a0   : > { %v3331_v14 = vpack.c.bf16 %v3298_v30, %v3297_v29 }
 0x4a2   : > { %3713 = vmatprep.subr.bf16.mxu1 %v3331_v14 }
 0x4a3   : > { %3714 = vmatpush3.bf16.xpose.msra.mxu1 %v3323_v62 }
 0x4aa   : > { %3716 = vmatmul.mubr.bf16.vlgmr.msra.gmra.mrb[0].mxu1 %v5040_v45 }
 0x4fd   : > { %v3369_v11 = vpop.f32.mrb[0].mxu0 }
 0x4fe   : > { %v3370_v44 = vadd.f32 %v3369_v11, %v3334_v42  ;;  %v3371_v3 = vpop.f32.mrb[1].mxu0 }
 0x4ff   : > { %v3372_v6 = vadd.f32 %v3371_v3, %v3334_v42  ;;  %v3373_v10 = vpop.f32.mrb[2].mxu0 }
 0x500   : > { %v3417_v12 = vmul.f32 1.442695, %v3370_v44  ;;  %v3374_v19 = vpop.f32.mrb[3].mxu0 }
 0x501   : > { %v3419_v7 = vmul.f32 1.442695, %v3372_v6 }
 0x502   : > { %3884 = vpow2.f32 %v3417_v12 }
 0x503   : > { %3886 = vpow2.f32 %v3419_v7 }
 0x50c   : > { %v3885_v9 = vpop.eup %3884 }
 0x50d   : > { %v3887_v20 = vpop.eup %3886  ;;  %v3426_v59 = vmul.f32 %v3885_v9, %v3425_v8 }
 0x50e   : > { %v3427_v57 = vmul.f32 %v3887_v20, %v3425_v8 }
 0x510   : > { %v3434_v45 = vcombine.low %v3426_v59, %v3427_v57 }
 0x512   : > { %v3442_v26 = vrot.slane %v3434_v45, %v3441_v37 }
 0x57d   : > { %v3410_v62 = vpop.f32.mrb[0].mxu1 }
 0x57e   : > { %v3411_v21 = vadd.f32 %v3410_v62, %v3334_v42  ;;  %v3412_v22 = vpop.f32.mrb[1].mxu1 }
 0x57f   : > { %v3413_v23 = vadd.f32 %v3412_v22, %v3334_v42  ;;  %v3414_v35 = vpop.f32.mrb[2].mxu1 }
 0x580   : > { %v3421_v2 = vmul.f32 1.442695, %v3411_v21  ;;  %v3415_v15 = vpop.f32.mrb[3].mxu1 }
 0x581   : > { %v3423_v16 = vmul.f32 1.442695, %v3413_v23 }
 0x582   : > { %3888 = vpow2.f32 %v3421_v2 }
 0x583   : > { %3890 = vpow2.f32 %v3423_v16 }
 0x58c   : > { %v3889_v36 = vpop.eup %3888 }
 0x58d   : > { %v3891_v39 = vpop.eup %3890  ;;  %v3428_v43 = vmul.f32 %v3889_v36, %v3425_v8 }
 0x58e   : > { %v3429_v41 = vmul.f32 %v3891_v39, %v3425_v8 }
 0x590   : > { %v3435_v25 = vcombine.low %v3428_v43, %v3429_v41 }
 0x592   : > { %v3449_v28 = vrot.slane %v3435_v25, %v3441_v37 }
 0x594   : > { %v3450_v24 = vcombine.low %v3442_v26, %v3449_v28 }
 0x596   : > { %v3457_v32 = vrot.slane %v3450_v24, %v3441_v37 }
 0x598   : > { %3463 = vst.msk [vmem:[%s406_s15] sm:$0xf] %vm3461_vm1, %v3457_v32 }
 0x599   : > { %3921 = shalt.err (!%p3918_p2)
}
 0x59a   : > { %s3922_s24 = scalar_lea.hbm %s5157_s12, 64  ;;  %s3926_s30 = scalar_lea.hbm %s5210_s11, 128 }
 0x59b   : > { %p3923_p3 = scmp.ne.s32.totalorder %s5157_s12, %s3922_s24  ;;  %p3927_p8 = scmp.lt.u32.totalorder %s5157_s12, %s5210_s11 }
 0x59c   : > { %p3928_p10 = scmp.lt.u32.totalorder %s3926_s30, %s3922_s24  ;;  %p3930_p11 = scmp.lt.u32.totalorder %s3922_s24, %s5157_s12 }
 0x59d   : > { %p3924_p4 = pnand %p3923_p3, %p4078_p5 }
 0x59e   : > { %p3929_p9 = por %p3928_p10, %p3927_p8 }
 0x59f   : > { %p3925_p7 = pneg %p3924_p4 }
 0x5a0   : > { %p3931_p12 = por %p3930_p11, %p3929_p9 }
 0x5a2   : > { %p3932_p13 = pnand %p3931_p12, %p3925_p7 }
 0x5a4   : > { %3935 = shalt.err (!%p3932_p13)
}
 0x5a5   : > { %3721 = dma.vmem_to_hbm [thread:$0]  (%p4078_p5), %s5159_s25, 64, %s5157_s12, %s3465_s13  }
 0x5a6 PF: > { %p3733_p0 = scmp.ge.s32.totalorder %s3974_s20, 2  ;;  %s3491_s0 = sand.u32 1, %s3962_s17  }
 0x5a7   : > { %s3492_s14 = scalar_lea.sflag [#allocation3], %s3491_s0 }
 0x5a8   : > { %p3728_p1 = pnand %p3733_p0, %p4082_p6 }
 0x5aa   : > { %3957 = dma.done.wait (!%p3728_p1), %s3492_s14, 64  }
 0x5ab   : > { %3959 = vsyncadd (!%p3728_p1), %s3492_s14, 4294967232  ;;  %p22_p2 = scmp.ge.s32.totalorder %s4065_s23, 4   ;;  %s5216_s17 = smov %s3966_s18 }
 0x5ac   : > { %s5217_s18 = smov %s3970_s19  ;;  %s5218_s19 = smov %s4076_s26 }
 0x5ad   : > { %s5219_s20 = smov %s4065_s23  ;;  %24 = sbr.rel (!%p22_p2) target bundleno = 6 (0x6), region = 104 }
 0x5b4   :  { %3497 = vsyncpa [#allocation3], 1 }
 0x5b5   :  { %3499 = vsyncpa [#allocation3 + $0x1], 1 }
 0x5b6   :  { %3500 = vsyncpa [#allocation4], 1 }
 0x5b7   :  { %3502 = vsyncpa [#allocation4 + $0x1], 1 }

</bundles_post_ra>
